<compile_context>
chip_gen: v7x
topology: tpu7x:2x2x1
jax: 0.10.0
libtpu: 0.0.40
codegen_flags: <defaults>
</compile_context>

<pallas_src>
import functools

import jax
import jax.numpy as jnp
from jax.experimental import pallas as pl
from jax.experimental.pallas import tpu as pltpu


# ----------------------------------------------------------------------------
# Fused Pallas kernel
# ----------------------------------------------------------------------------

def _raddet_kernel(
    x_ref,                                   # (dense, C)   per-batch input (f32)
    fc1_w_ref, fc1_b_ref,                    # (2d, d) bf16, (2d, 1) f32
    fc2_w_ref, fc2_b_ref,                    # (2d, 2d) bf16, (2d, 1) f32
    c1_w_ref, c1_s_ref, c1_t_ref,            # (9C, C) bf16, (1, C) f32, (1, C) f32
    c2_w_ref, c2_s_ref, c2_t_ref,
    c3_w_ref, c3_s_ref, c3_t_ref,
    ch_w_ref, ch_s_ref, ch_t_ref,            # (9C, 2C) bf16, (1, 2C), (1, 2C)
    hd_w_ref, hd_b_ref,                      # (2C, head) bf16, (1, head) f32
    o_ref,                                   # (H*W, head) f32
    pad_ref,                                 # VMEM scratch (H+2, W+2, C) f32
    *, H, W, C):
  f32 = jnp.float32
  bf16 = jnp.bfloat16

  # ---- FC path (transposed orientation: rows = spatial feature, cols = chan)
  # h[j, c] == relu(fc(x))[b, c, j]  ->  row j = h*W + w is already the conv
  # spatial index after the 'b c (h w) -> b c h w' rearrange.
  x = x_ref[...].astype(bf16)                                    # (dense, C)
  h = jnp.dot(fc1_w_ref[...], x, preferred_element_type=f32)     # (2*dense, C)
  h = jnp.maximum(h + fc1_b_ref[...], 0.0)
  h = jnp.dot(fc2_w_ref[...], h.astype(bf16), preferred_element_type=f32)
  h = jnp.maximum(h + fc2_b_ref[...], 0.0)                       # (H*W, C)

  res = h                                                        # residual

  # Zero the conv halo once; only the interior is rewritten per conv layer,
  # so the border stays zero for every conv (padding=1 with zeros).
  pad_ref[...] = jnp.zeros(pad_ref.shape, pad_ref.dtype)

  def conv3x3_bn_relu(x_flat, w_ref, s_ref, t_ref):
    """3x3 conv (pad=1) via in-kernel im2col + a single K=9*C matmul,
    with folded eval-mode BN (scale/shift) and ReLU.  x_flat: (H*W, C)."""
    pad_ref[1:H + 1, 1:W + 1, :] = x_flat.reshape(H, W, C)
    taps = []
    for ky in range(3):
      for kx in range(3):
        taps.append(pad_ref[ky:ky + H, kx:kx + W, :].reshape(H * W, C))
    col = jnp.concatenate(taps, axis=-1).astype(bf16)            # (H*W, 9*C)
    y = jnp.dot(col, w_ref[...], preferred_element_type=f32)     # (H*W, Cout)
    return jnp.maximum(y * s_ref[...] + t_ref[...], 0.0)         # f32 epilogue

  x1 = conv3x3_bn_relu(h,  c1_w_ref, c1_s_ref, c1_t_ref)
  x2 = conv3x3_bn_relu(x1, c2_w_ref, c2_s_ref, c2_t_ref)
  x3 = conv3x3_bn_relu(x2, c3_w_ref, c3_s_ref, c3_t_ref) + res   # relu then add (as in PyTorch)
  xh = conv3x3_bn_relu(x3, ch_w_ref, ch_s_ref, ch_t_ref)         # (H*W, 2C)

  # Fused 1x1 head conv (no ReLU), consumed directly from the convh result.
  out = jnp.dot(xh.astype(bf16), hd_w_ref[...], preferred_element_type=f32)
  o_ref[...] = out + hd_b_ref[...]                               # (H*W, head)


# ----------------------------------------------------------------------------
# Parameters (deterministic, synthetic — shapes match the nn.Module, with
# eval-mode BN folded and conv weights pre-reshaped to im2col layout)
# ----------------------------------------------------------------------------

def fold_bn(gamma, beta, mean, var, conv_bias, eps=1e-5):
  scale = gamma / jnp.sqrt(var + eps)
  shift = beta + scale * (conv_bias - mean)
  return scale, shift


def make_params(key, input_shape, num_anchors, num_class):
  H0, W0, C = input_shape
  dense = H0 * W0
  head_out = num_anchors * (num_class + 5)
  keys = jax.random.split(key, 32)
  k = iter(keys)

  def w(shape, s=0.05):
    return (s * jax.random.normal(next(k), shape)).astype(jnp.float32)

  def bn(c):
    gamma = 1.0 + 0.1 * jax.random.normal(next(k), (c,))
    beta = 0.1 * jax.random.normal(next(k), (c,))
    mean = 0.1 * jax.random.normal(next(k), (c,))
    var = 1.0 + 0.1 * jnp.abs(jax.random.normal(next(k), (c,)))
    return (gamma.astype(jnp.float32), beta.astype(jnp.float32),
            mean.astype(jnp.float32), var.astype(jnp.float32))

  bf16 = jnp.bfloat16
  p = {}
  # nn.Linear weights kept in PyTorch (out, in) layout; used as  W @ x^T.
  p['fc1_w'] = w((2 * dense, dense)).astype(bf16)
  p['fc1_b'] = w((2 * dense,)).reshape(2 * dense, 1)
  p['fc2_w'] = w((2 * dense, 2 * dense)).astype(bf16)
  p['fc2_b'] = w((2 * dense,)).reshape(2 * dense, 1)

  # 3x3 convs: HWIO weights reshaped to im2col layout (9*Cin, Cout), BN folded.
  for name, cin, cout in [('conv1', C, C), ('conv2', C, C), ('conv3', C, C),
                          ('convh', C, 2 * C)]:
    cw = w((3, 3, cin, cout))
    cb = w((cout,))
    g, b_, m, v = bn(cout)
    scale, shift = fold_bn(g, b_, m, v, cb)
    p[name + '_w'] = cw.reshape(9 * cin, cout).astype(bf16)
    p[name + '_scale'] = scale.reshape(1, cout)
    p[name + '_shift'] = shift.reshape(1, cout)

  # 1x1 head conv as a (Cin, Cout) matmul.
  p['head_w'] = w((2 * C, head_out)).astype(bf16)
  p['head_b'] = w((head_out,)).reshape(1, head_out)
  return p


# ----------------------------------------------------------------------------
# Forward pass (mirrors RADDetCart.forward) — single pallas_call
# ----------------------------------------------------------------------------

_WEIGHT_ORDER = (
    'fc1_w', 'fc1_b', 'fc2_w', 'fc2_b',
    'conv1_w', 'conv1_scale', 'conv1_shift',
    'conv2_w', 'conv2_scale', 'conv2_shift',
    'conv3_w', 'conv3_scale', 'conv3_shift',
    'convh_w', 'convh_scale', 'convh_shift',
    'head_w', 'head_b',
)


def raddet_cart_forward(x_nchw, params, *, input_shape, num_anchors, num_class):
  H0, W0, C = input_shape
  B = x_nchw.shape[0]
  dense = H0 * W0
  H, W = H0, 2 * W0                     # fc doubles features -> width doubles
  head_out = num_anchors * (num_class + 5)

  # TODO(synk): backbone submodule is external/undefined here -> identity.
  # 'b c h w -> b c (h w)', then put features on rows / channels on lanes so
  # the kernel's transposed-weight matmuls produce the conv layout directly.
  x_t = jnp.transpose(x_nchw.reshape(B, C, dense), (0, 2, 1)).astype(jnp.float32)

  weights = [params[n] for n in _WEIGHT_ORDER]

  def full_spec(a):
    nd = a.ndim
    return pl.BlockSpec(a.shape, lambda *_: (0,) * nd)

  out = pl.pallas_call(
      functools.partial(_raddet_kernel, H=H, W=W, C=C),
      out_shape=jax.ShapeDtypeStruct((B, H * W, head_out), jnp.float32),
      grid=(B,),
      in_specs=([pl.BlockSpec((None, dense, C), lambda b: (b, 0, 0))]
                + [full_spec(a) for a in weights]),
      out_specs=pl.BlockSpec((None, H * W, head_out), lambda b: (b, 0, 0)),
      scratch_shapes=[pltpu.VMEM((H + 2, W + 2, C), jnp.float32)],
      compiler_params=pltpu.CompilerParams(
          dimension_semantics=("parallel",)),
  )(x_t, *weights)

  # 'b c h w -> b h w c' + '(c1 c2)' split: kernel rows are already (h, w)
  # ordered and columns are the head channels in (anchor, class+5) order.
  return out.reshape(B, H, W, num_anchors, num_class + 5)


# ----------------------------------------------------------------------------

if __name__ == "__main__":
  input_shape = (8, 8, 4)          # (H0, W0, C); dense_feature_size = 64
  num_anchors = 4                  # len(anchor_boxes)
  num_class = 3                    # len(config_data['all_classes'])
  B = 2

  key = jax.random.PRNGKey(0)
  kx, kp = jax.random.split(key)
  x = jax.random.normal(kx, (B, input_shape[2], input_shape[0], input_shape[1]),
                        dtype=jnp.float32)   # NCHW, like the PyTorch module
  params = make_params(kp, input_shape, num_anchors, num_class)

  fwd = jax.jit(functools.partial(
      raddet_cart_forward, input_shape=input_shape,
      num_anchors=num_anchors, num_class=num_class))
  out = jax.block_until_ready(fwd(x, params))

  expected_shape = (B, input_shape[0], 2 * input_shape[1],
                    num_anchors, num_class + 5)
  assert out.shape == expected_shape, (out.shape, expected_shape)
  assert bool(jnp.all(jnp.isfinite(out)))
  print("KERNEL_OK")
</pallas_src>

<mosaic_0001>
module attributes {stable_mosaic.version = 11 : i64} {
  func.func @_raddet_kernel(%arg0: i32, %arg1: memref<1x64x4xf32, #tpu.memory_space<vmem>>, %arg2: memref<128x64xbf16, #tpu.memory_space<vmem>>, %arg3: memref<128x1xf32, #tpu.memory_space<vmem>>, %arg4: memref<128x128xbf16, #tpu.memory_space<vmem>>, %arg5: memref<128x1xf32, #tpu.memory_space<vmem>>, %arg6: memref<36x4xbf16, #tpu.memory_space<vmem>>, %arg7: memref<1x4xf32, #tpu.memory_space<vmem>>, %arg8: memref<1x4xf32, #tpu.memory_space<vmem>>, %arg9: memref<36x4xbf16, #tpu.memory_space<vmem>>, %arg10: memref<1x4xf32, #tpu.memory_space<vmem>>, %arg11: memref<1x4xf32, #tpu.memory_space<vmem>>, %arg12: memref<36x4xbf16, #tpu.memory_space<vmem>>, %arg13: memref<1x4xf32, #tpu.memory_space<vmem>>, %arg14: memref<1x4xf32, #tpu.memory_space<vmem>>, %arg15: memref<36x8xbf16, #tpu.memory_space<vmem>>, %arg16: memref<1x8xf32, #tpu.memory_space<vmem>>, %arg17: memref<1x8xf32, #tpu.memory_space<vmem>>, %arg18: memref<8x32xbf16, #tpu.memory_space<vmem>>, %arg19: memref<1x32xf32, #tpu.memory_space<vmem>>, %arg20: memref<1x128x32xf32, #tpu.memory_space<vmem>>, %arg21: memref<10x18x4xf32, #tpu.memory_space<vmem>>) attributes {dimension_semantics = [#tpu.dimension_semantics<parallel>], iteration_bounds = array<i64: 2>, scalar_prefetch = 0 : i64, scratch_operands = 1 : i64, tpu.core_type = #tpu.core_type<tc>, window_params = [{transform_indices = @transform_0, window_bounds = array<i64: 1, 64, 4>}, {pipeline_mode = #tpu.pipeline_mode<synchronous>, transform_indices = @transform_1, window_bounds = array<i64: 128, 64>}, {pipeline_mode = #tpu.pipeline_mode<synchronous>, transform_indices = @transform_2, window_bounds = array<i64: 128, 1>}, {pipeline_mode = #tpu.pipeline_mode<synchronous>, transform_indices = @transform_3, window_bounds = array<i64: 128, 128>}, {pipeline_mode = #tpu.pipeline_mode<synchronous>, transform_indices = @transform_4, window_bounds = array<i64: 128, 1>}, {pipeline_mode = #tpu.pipeline_mode<synchronous>, transform_indices = @transform_5, window_bounds = array<i64: 36, 4>}, {pipeline_mode = #tpu.pipeline_mode<synchronous>, transform_indices = @transform_6, window_bounds = array<i64: 1, 4>}, {pipeline_mode = #tpu.pipeline_mode<synchronous>, transform_indices = @transform_7, window_bounds = array<i64: 1, 4>}, {pipeline_mode = #tpu.pipeline_mode<synchronous>, transform_indices = @transform_8, window_bounds = array<i64: 36, 4>}, {pipeline_mode = #tpu.pipeline_mode<synchronous>, transform_indices = @transform_9, window_bounds = array<i64: 1, 4>}, {pipeline_mode = #tpu.pipeline_mode<synchronous>, transform_indices = @transform_10, window_bounds = array<i64: 1, 4>}, {pipeline_mode = #tpu.pipeline_mode<synchronous>, transform_indices = @transform_11, window_bounds = array<i64: 36, 4>}, {pipeline_mode = #tpu.pipeline_mode<synchronous>, transform_indices = @transform_12, window_bounds = array<i64: 1, 4>}, {pipeline_mode = #tpu.pipeline_mode<synchronous>, transform_indices = @transform_13, window_bounds = array<i64: 1, 4>}, {pipeline_mode = #tpu.pipeline_mode<synchronous>, transform_indices = @transform_14, window_bounds = array<i64: 36, 8>}, {pipeline_mode = #tpu.pipeline_mode<synchronous>, transform_indices = @transform_15, window_bounds = array<i64: 1, 8>}, {pipeline_mode = #tpu.pipeline_mode<synchronous>, transform_indices = @transform_16, window_bounds = array<i64: 1, 8>}, {pipeline_mode = #tpu.pipeline_mode<synchronous>, transform_indices = @transform_17, window_bounds = array<i64: 8, 32>}, {pipeline_mode = #tpu.pipeline_mode<synchronous>, transform_indices = @transform_18, window_bounds = array<i64: 1, 32>}, {transform_indices = @transform_19, window_bounds = array<i64: 1, 128, 32>}]} {
    %c0 = arith.constant 0 : index
    %c0_0 = arith.constant 0 : index
    %c0_1 = arith.constant 0 : index
    %0 = vector.load %arg1[%c0, %c0_0, %c0_1] : memref<1x64x4xf32, #tpu.memory_space<vmem>>, vector<1x64x4xf32>
    %1 = vector.shape_cast %0 : vector<1x64x4xf32> to vector<64x4xf32>
    %2 = arith.truncf %1 : vector<64x4xf32> to vector<64x4xbf16>
    %c0_2 = arith.constant 0 : index
    %c0_3 = arith.constant 0 : index
    %3 = vector.load %arg2[%c0_2, %c0_3] : memref<128x64xbf16, #tpu.memory_space<vmem>>, vector<128x64xbf16>
    %cst = arith.constant dense<0.000000e+00> : vector<128x4xf32>
    %4 = tpu.matmul %3, %2, %cst {dimension_numbers = #tpu.dot_dimension_numbers<[1], [0], [0], [1], [0, 0, 1, 1], [], []>} : vector<128x64xbf16>, vector<64x4xbf16>, vector<128x4xf32> -> vector<128x4xf32>
    %c0_4 = arith.constant 0 : index
    %c0_5 = arith.constant 0 : index
    %5 = vector.load %arg3[%c0_4, %c0_5] : memref<128x1xf32, #tpu.memory_space<vmem>>, vector<128x1xf32>
    %6 = vector.broadcast %5 : vector<128x1xf32> to vector<128x4xf32>
    %7 = arith.addf %4, %6 : vector<128x4xf32>
    %cst_6 = arith.constant 0.000000e+00 : f32
    %8 = vector.broadcast %cst_6 : f32 to vector<128x4xf32>
    %9 = arith.maximumf %7, %8 : vector<128x4xf32>
    %c0_7 = arith.constant 0 : index
    %c0_8 = arith.constant 0 : index
    %10 = vector.load %arg4[%c0_7, %c0_8] : memref<128x128xbf16, #tpu.memory_space<vmem>>, vector<128x128xbf16>
    %11 = arith.truncf %9 : vector<128x4xf32> to vector<128x4xbf16>
    %cst_9 = arith.constant dense<0.000000e+00> : vector<128x4xf32>
    %12 = tpu.matmul %10, %11, %cst_9 {dimension_numbers = #tpu.dot_dimension_numbers<[1], [0], [0], [1], [0, 0, 1, 1], [], []>} : vector<128x128xbf16>, vector<128x4xbf16>, vector<128x4xf32> -> vector<128x4xf32>
    %c0_10 = arith.constant 0 : index
    %c0_11 = arith.constant 0 : index
    %13 = vector.load %arg5[%c0_10, %c0_11] : memref<128x1xf32, #tpu.memory_space<vmem>>, vector<128x1xf32>
    %14 = vector.broadcast %13 : vector<128x1xf32> to vector<128x4xf32>
    %15 = arith.addf %12, %14 : vector<128x4xf32>
    %cst_12 = arith.constant 0.000000e+00 : f32
    %16 = vector.broadcast %cst_12 : f32 to vector<128x4xf32>
    %17 = arith.maximumf %15, %16 : vector<128x4xf32>
    %cst_13 = arith.constant 0.000000e+00 : f32
    %18 = vector.broadcast %cst_13 : f32 to vector<10x18x4xf32>
    %c0_14 = arith.constant 0 : index
    %c0_15 = arith.constant 0 : index
    %c0_16 = arith.constant 0 : index
    %19 = vector.load %arg21[%c0_14, %c0_15, %c0_16] : memref<10x18x4xf32, #tpu.memory_space<vmem>>, vector<10x18x4xf32>
    tpu.vector_store %arg21[%c0_14, %c0_15, %c0_16], %18 {strides = array<i32>} : memref<10x18x4xf32, #tpu.memory_space<vmem>>, vector<10x18x4xf32>,
    %20 = vector.shape_cast %17 : vector<128x4xf32> to vector<8x16x4xf32>
    %c1 = arith.constant 1 : index
    %c1_17 = arith.constant 1 : index
    %c0_18 = arith.constant 0 : index
    %21 = vector.load %arg21[%c1, %c1_17, %c0_18] : memref<10x18x4xf32, #tpu.memory_space<vmem>>, vector<8x16x4xf32>
    tpu.vector_store %arg21[%c1, %c1_17, %c0_18], %20 {strides = array<i32>} : memref<10x18x4xf32, #tpu.memory_space<vmem>>, vector<8x16x4xf32>,
    %c0_19 = arith.constant 0 : index
    %c0_20 = arith.constant 0 : index
    %c0_21 = arith.constant 0 : index
    %22 = vector.load %arg21[%c0_19, %c0_20, %c0_21] : memref<10x18x4xf32, #tpu.memory_space<vmem>>, vector<8x16x4xf32>
    %23 = vector.shape_cast %22 : vector<8x16x4xf32> to vector<128x4xf32>
    %c0_22 = arith.constant 0 : index
    %c1_23 = arith.constant 1 : index
    %c0_24 = arith.constant 0 : index
    %24 = vector.load %arg21[%c0_22, %c1_23, %c0_24] : memref<10x18x4xf32, #tpu.memory_space<vmem>>, vector<8x16x4xf32>
    %25 = vector.shape_cast %24 : vector<8x16x4xf32> to vector<128x4xf32>
    %c0_25 = arith.constant 0 : index
    %c2 = arith.constant 2 : index
    %c0_26 = arith.constant 0 : index
    %26 = vector.load %arg21[%c0_25, %c2, %c0_26] : memref<10x18x4xf32, #tpu.memory_space<vmem>>, vector<8x16x4xf32>
    %27 = vector.shape_cast %26 : vector<8x16x4xf32> to vector<128x4xf32>
    %c1_27 = arith.constant 1 : index
    %c0_28 = arith.constant 0 : index
    %c0_29 = arith.constant 0 : index
    %28 = vector.load %arg21[%c1_27, %c0_28, %c0_29] : memref<10x18x4xf32, #tpu.memory_space<vmem>>, vector<8x16x4xf32>
    %29 = vector.shape_cast %28 : vector<8x16x4xf32> to vector<128x4xf32>
    %c1_30 = arith.constant 1 : index
    %c1_31 = arith.constant 1 : index
    %c0_32 = arith.constant 0 : index
    %30 = vector.load %arg21[%c1_30, %c1_31, %c0_32] : memref<10x18x4xf32, #tpu.memory_space<vmem>>, vector<8x16x4xf32>
    %31 = vector.shape_cast %30 : vector<8x16x4xf32> to vector<128x4xf32>
    %c1_33 = arith.constant 1 : index
    %c2_34 = arith.constant 2 : index
    %c0_35 = arith.constant 0 : index
    %32 = vector.load %arg21[%c1_33, %c2_34, %c0_35] : memref<10x18x4xf32, #tpu.memory_space<vmem>>, vector<8x16x4xf32>
    %33 = vector.shape_cast %32 : vector<8x16x4xf32> to vector<128x4xf32>
    %c2_36 = arith.constant 2 : index
    %c0_37 = arith.constant 0 : index
    %c0_38 = arith.constant 0 : index
    %34 = vector.load %arg21[%c2_36, %c0_37, %c0_38] : memref<10x18x4xf32, #tpu.memory_space<vmem>>, vector<8x16x4xf32>
    %35 = vector.shape_cast %34 : vector<8x16x4xf32> to vector<128x4xf32>
    %c2_39 = arith.constant 2 : index
    %c1_40 = arith.constant 1 : index
    %c0_41 = arith.constant 0 : index
    %36 = vector.load %arg21[%c2_39, %c1_40, %c0_41] : memref<10x18x4xf32, #tpu.memory_space<vmem>>, vector<8x16x4xf32>
    %37 = vector.shape_cast %36 : vector<8x16x4xf32> to vector<128x4xf32>
    %c2_42 = arith.constant 2 : index
    %c2_43 = arith.constant 2 : index
    %c0_44 = arith.constant 0 : index
    %38 = vector.load %arg21[%c2_42, %c2_43, %c0_44] : memref<10x18x4xf32, #tpu.memory_space<vmem>>, vector<8x16x4xf32>
    %39 = vector.shape_cast %38 : vector<8x16x4xf32> to vector<128x4xf32>
    %40 = tpu.concatenate %23, %25, %27, %29, %31, %33, %35, %37, %39 in 1 : vector<128x4xf32>, vector<128x4xf32>, vector<128x4xf32>, vector<128x4xf32>, vector<128x4xf32>, vector<128x4xf32>, vector<128x4xf32>, vector<128x4xf32>, vector<128x4xf32> -> vector<128x36xf32>
    %41 = arith.truncf %40 : vector<128x36xf32> to vector<128x36xbf16>
    %c0_45 = arith.constant 0 : index
    %c0_46 = arith.constant 0 : index
    %42 = vector.load %arg6[%c0_45, %c0_46] : memref<36x4xbf16, #tpu.memory_space<vmem>>, vector<36x4xbf16>
    %cst_47 = arith.constant dense<0.000000e+00> : vector<128x4xf32>
    %43 = tpu.matmul %41, %42, %cst_47 {dimension_numbers = #tpu.dot_dimension_numbers<[1], [0], [0], [1], [0, 0, 1, 1], [], []>} : vector<128x36xbf16>, vector<36x4xbf16>, vector<128x4xf32> -> vector<128x4xf32>
    %c0_48 = arith.constant 0 : index
    %c0_49 = arith.constant 0 : index
    %44 = vector.load %arg7[%c0_48, %c0_49] : memref<1x4xf32, #tpu.memory_space<vmem>>, vector<1x4xf32>
    %45 = vector.broadcast %44 : vector<1x4xf32> to vector<128x4xf32>
    %46 = arith.mulf %43, %45 : vector<128x4xf32>
    %c0_50 = arith.constant 0 : index
    %c0_51 = arith.constant 0 : index
    %47 = vector.load %arg8[%c0_50, %c0_51] : memref<1x4xf32, #tpu.memory_space<vmem>>, vector<1x4xf32>
    %48 = vector.broadcast %47 : vector<1x4xf32> to vector<128x4xf32>
    %49 = arith.addf %46, %48 : vector<128x4xf32>
    %cst_52 = arith.constant 0.000000e+00 : f32
    %50 = vector.broadcast %cst_52 : f32 to vector<128x4xf32>
    %51 = arith.maximumf %49, %50 : vector<128x4xf32>
    %52 = vector.shape_cast %51 : vector<128x4xf32> to vector<8x16x4xf32>
    %c1_53 = arith.constant 1 : index
    %c1_54 = arith.constant 1 : index
    %c0_55 = arith.constant 0 : index
    %53 = vector.load %arg21[%c1_53, %c1_54, %c0_55] : memref<10x18x4xf32, #tpu.memory_space<vmem>>, vector<8x16x4xf32>
    tpu.vector_store %arg21[%c1_53, %c1_54, %c0_55], %52 {strides = array<i32>} : memref<10x18x4xf32, #tpu.memory_space<vmem>>, vector<8x16x4xf32>,
    %c0_56 = arith.constant 0 : index
    %c0_57 = arith.constant 0 : index
    %c0_58 = arith.constant 0 : index
    %54 = vector.load %arg21[%c0_56, %c0_57, %c0_58] : memref<10x18x4xf32, #tpu.memory_space<vmem>>, vector<8x16x4xf32>
    %55 = vector.shape_cast %54 : vector<8x16x4xf32> to vector<128x4xf32>
    %c0_59 = arith.constant 0 : index
    %c1_60 = arith.constant 1 : index
    %c0_61 = arith.constant 0 : index
    %56 = vector.load %arg21[%c0_59, %c1_60, %c0_61] : memref<10x18x4xf32, #tpu.memory_space<vmem>>, vector<8x16x4xf32>
    %57 = vector.shape_cast %56 : vector<8x16x4xf32> to vector<128x4xf32>
    %c0_62 = arith.constant 0 : index
    %c2_63 = arith.constant 2 : index
    %c0_64 = arith.constant 0 : index
    %58 = vector.load %arg21[%c0_62, %c2_63, %c0_64] : memref<10x18x4xf32, #tpu.memory_space<vmem>>, vector<8x16x4xf32>
    %59 = vector.shape_cast %58 : vector<8x16x4xf32> to vector<128x4xf32>
    %c1_65 = arith.constant 1 : index
    %c0_66 = arith.constant 0 : index
    %c0_67 = arith.constant 0 : index
    %60 = vector.load %arg21[%c1_65, %c0_66, %c0_67] : memref<10x18x4xf32, #tpu.memory_space<vmem>>, vector<8x16x4xf32>
    %61 = vector.shape_cast %60 : vector<8x16x4xf32> to vector<128x4xf32>
    %c1_68 = arith.constant 1 : index
    %c1_69 = arith.constant 1 : index
    %c0_70 = arith.constant 0 : index
    %62 = vector.load %arg21[%c1_68, %c1_69, %c0_70] : memref<10x18x4xf32, #tpu.memory_space<vmem>>, vector<8x16x4xf32>
    %63 = vector.shape_cast %62 : vector<8x16x4xf32> to vector<128x4xf32>
    %c1_71 = arith.constant 1 : index
    %c2_72 = arith.constant 2 : index
    %c0_73 = arith.constant 0 : index
    %64 = vector.load %arg21[%c1_71, %c2_72, %c0_73] : memref<10x18x4xf32, #tpu.memory_space<vmem>>, vector<8x16x4xf32>
    %65 = vector.shape_cast %64 : vector<8x16x4xf32> to vector<128x4xf32>
    %c2_74 = arith.constant 2 : index
    %c0_75 = arith.constant 0 : index
    %c0_76 = arith.constant 0 : index
    %66 = vector.load %arg21[%c2_74, %c0_75, %c0_76] : memref<10x18x4xf32, #tpu.memory_space<vmem>>, vector<8x16x4xf32>
    %67 = vector.shape_cast %66 : vector<8x16x4xf32> to vector<128x4xf32>
    %c2_77 = arith.constant 2 : index
    %c1_78 = arith.constant 1 : index
    %c0_79 = arith.constant 0 : index
    %68 = vector.load %arg21[%c2_77, %c1_78, %c0_79] : memref<10x18x4xf32, #tpu.memory_space<vmem>>, vector<8x16x4xf32>
    %69 = vector.shape_cast %68 : vector<8x16x4xf32> to vector<128x4xf32>
    %c2_80 = arith.constant 2 : index
    %c2_81 = arith.constant 2 : index
    %c0_82 = arith.constant 0 : index
    %70 = vector.load %arg21[%c2_80, %c2_81, %c0_82] : memref<10x18x4xf32, #tpu.memory_space<vmem>>, vector<8x16x4xf32>
    %71 = vector.shape_cast %70 : vector<8x16x4xf32> to vector<128x4xf32>
    %72 = tpu.concatenate %55, %57, %59, %61, %63, %65, %67, %69, %71 in 1 : vector<128x4xf32>, vector<128x4xf32>, vector<128x4xf32>, vector<128x4xf32>, vector<128x4xf32>, vector<128x4xf32>, vector<128x4xf32>, vector<128x4xf32>, vector<128x4xf32> -> vector<128x36xf32>
    %73 = arith.truncf %72 : vector<128x36xf32> to vector<128x36xbf16>
    %c0_83 = arith.constant 0 : index
    %c0_84 = arith.constant 0 : index
    %74 = vector.load %arg9[%c0_83, %c0_84] : memref<36x4xbf16, #tpu.memory_space<vmem>>, vector<36x4xbf16>
    %cst_85 = arith.constant dense<0.000000e+00> : vector<128x4xf32>
    %75 = tpu.matmul %73, %74, %cst_85 {dimension_numbers = #tpu.dot_dimension_numbers<[1], [0], [0], [1], [0, 0, 1, 1], [], []>} : vector<128x36xbf16>, vector<36x4xbf16>, vector<128x4xf32> -> vector<128x4xf32>
    %c0_86 = arith.constant 0 : index
    %c0_87 = arith.constant 0 : index
    %76 = vector.load %arg10[%c0_86, %c0_87] : memref<1x4xf32, #tpu.memory_space<vmem>>, vector<1x4xf32>
    %77 = vector.broadcast %76 : vector<1x4xf32> to vector<128x4xf32>
    %78 = arith.mulf %75, %77 : vector<128x4xf32>
    %c0_88 = arith.constant 0 : index
    %c0_89 = arith.constant 0 : index
    %79 = vector.load %arg11[%c0_88, %c0_89] : memref<1x4xf32, #tpu.memory_space<vmem>>, vector<1x4xf32>
    %80 = vector.broadcast %79 : vector<1x4xf32> to vector<128x4xf32>
    %81 = arith.addf %78, %80 : vector<128x4xf32>
    %cst_90 = arith.constant 0.000000e+00 : f32
    %82 = vector.broadcast %cst_90 : f32 to vector<128x4xf32>
    %83 = arith.maximumf %81, %82 : vector<128x4xf32>
    %84 = vector.shape_cast %83 : vector<128x4xf32> to vector<8x16x4xf32>
    %c1_91 = arith.constant 1 : index
    %c1_92 = arith.constant 1 : index
    %c0_93 = arith.constant 0 : index
    %85 = vector.load %arg21[%c1_91, %c1_92, %c0_93] : memref<10x18x4xf32, #tpu.memory_space<vmem>>, vector<8x16x4xf32>
    tpu.vector_store %arg21[%c1_91, %c1_92, %c0_93], %84 {strides = array<i32>} : memref<10x18x4xf32, #tpu.memory_space<vmem>>, vector<8x16x4xf32>,
    %c0_94 = arith.constant 0 : index
    %c0_95 = arith.constant 0 : index
    %c0_96 = arith.constant 0 : index
    %86 = vector.load %arg21[%c0_94, %c0_95, %c0_96] : memref<10x18x4xf32, #tpu.memory_space<vmem>>, vector<8x16x4xf32>
    %87 = vector.shape_cast %86 : vector<8x16x4xf32> to vector<128x4xf32>
    %c0_97 = arith.constant 0 : index
    %c1_98 = arith.constant 1 : index
    %c0_99 = arith.constant 0 : index
    %88 = vector.load %arg21[%c0_97, %c1_98, %c0_99] : memref<10x18x4xf32, #tpu.memory_space<vmem>>, vector<8x16x4xf32>
    %89 = vector.shape_cast %88 : vector<8x16x4xf32> to vector<128x4xf32>
    %c0_100 = arith.constant 0 : index
    %c2_101 = arith.constant 2 : index
    %c0_102 = arith.constant 0 : index
    %90 = vector.load %arg21[%c0_100, %c2_101, %c0_102] : memref<10x18x4xf32, #tpu.memory_space<vmem>>, vector<8x16x4xf32>
    %91 = vector.shape_cast %90 : vector<8x16x4xf32> to vector<128x4xf32>
    %c1_103 = arith.constant 1 : index
    %c0_104 = arith.constant 0 : index
    %c0_105 = arith.constant 0 : index
    %92 = vector.load %arg21[%c1_103, %c0_104, %c0_105] : memref<10x18x4xf32, #tpu.memory_space<vmem>>, vector<8x16x4xf32>
    %93 = vector.shape_cast %92 : vector<8x16x4xf32> to vector<128x4xf32>
    %c1_106 = arith.constant 1 : index
    %c1_107 = arith.constant 1 : index
    %c0_108 = arith.constant 0 : index
    %94 = vector.load %arg21[%c1_106, %c1_107, %c0_108] : memref<10x18x4xf32, #tpu.memory_space<vmem>>, vector<8x16x4xf32>
    %95 = vector.shape_cast %94 : vector<8x16x4xf32> to vector<128x4xf32>
    %c1_109 = arith.constant 1 : index
    %c2_110 = arith.constant 2 : index
    %c0_111 = arith.constant 0 : index
    %96 = vector.load %arg21[%c1_109, %c2_110, %c0_111] : memref<10x18x4xf32, #tpu.memory_space<vmem>>, vector<8x16x4xf32>
    %97 = vector.shape_cast %96 : vector<8x16x4xf32> to vector<128x4xf32>
    %c2_112 = arith.constant 2 : index
    %c0_113 = arith.constant 0 : index
    %c0_114 = arith.constant 0 : index
    %98 = vector.load %arg21[%c2_112, %c0_113, %c0_114] : memref<10x18x4xf32, #tpu.memory_space<vmem>>, vector<8x16x4xf32>
    %99 = vector.shape_cast %98 : vector<8x16x4xf32> to vector<128x4xf32>
    %c2_115 = arith.constant 2 : index
    %c1_116 = arith.constant 1 : index
    %c0_117 = arith.constant 0 : index
    %100 = vector.load %arg21[%c2_115, %c1_116, %c0_117] : memref<10x18x4xf32, #tpu.memory_space<vmem>>, vector<8x16x4xf32>
    %101 = vector.shape_cast %100 : vector<8x16x4xf32> to vector<128x4xf32>
    %c2_118 = arith.constant 2 : index
    %c2_119 = arith.constant 2 : index
    %c0_120 = arith.constant 0 : index
    %102 = vector.load %arg21[%c2_118, %c2_119, %c0_120] : memref<10x18x4xf32, #tpu.memory_space<vmem>>, vector<8x16x4xf32>
    %103 = vector.shape_cast %102 : vector<8x16x4xf32> to vector<128x4xf32>
    %104 = tpu.concatenate %87, %89, %91, %93, %95, %97, %99, %101, %103 in 1 : vector<128x4xf32>, vector<128x4xf32>, vector<128x4xf32>, vector<128x4xf32>, vector<128x4xf32>, vector<128x4xf32>, vector<128x4xf32>, vector<128x4xf32>, vector<128x4xf32> -> vector<128x36xf32>
    %105 = arith.truncf %104 : vector<128x36xf32> to vector<128x36xbf16>
    %c0_121 = arith.constant 0 : index
    %c0_122 = arith.constant 0 : index
    %106 = vector.load %arg12[%c0_121, %c0_122] : memref<36x4xbf16, #tpu.memory_space<vmem>>, vector<36x4xbf16>
    %cst_123 = arith.constant dense<0.000000e+00> : vector<128x4xf32>
    %107 = tpu.matmul %105, %106, %cst_123 {dimension_numbers = #tpu.dot_dimension_numbers<[1], [0], [0], [1], [0, 0, 1, 1], [], []>} : vector<128x36xbf16>, vector<36x4xbf16>, vector<128x4xf32> -> vector<128x4xf32>
    %c0_124 = arith.constant 0 : index
    %c0_125 = arith.constant 0 : index
    %108 = vector.load %arg13[%c0_124, %c0_125] : memref<1x4xf32, #tpu.memory_space<vmem>>, vector<1x4xf32>
    %109 = vector.broadcast %108 : vector<1x4xf32> to vector<128x4xf32>
    %110 = arith.mulf %107, %109 : vector<128x4xf32>
    %c0_126 = arith.constant 0 : index
    %c0_127 = arith.constant 0 : index
    %111 = vector.load %arg14[%c0_126, %c0_127] : memref<1x4xf32, #tpu.memory_space<vmem>>, vector<1x4xf32>
    %112 = vector.broadcast %111 : vector<1x4xf32> to vector<128x4xf32>
    %113 = arith.addf %110, %112 : vector<128x4xf32>
    %cst_128 = arith.constant 0.000000e+00 : f32
    %114 = vector.broadcast %cst_128 : f32 to vector<128x4xf32>
    %115 = arith.maximumf %113, %114 : vector<128x4xf32>
    %116 = arith.addf %115, %17 : vector<128x4xf32>
    %117 = vector.shape_cast %116 : vector<128x4xf32> to vector<8x16x4xf32>
    %c1_129 = arith.constant 1 : index
    %c1_130 = arith.constant 1 : index
    %c0_131 = arith.constant 0 : index
    %118 = vector.load %arg21[%c1_129, %c1_130, %c0_131] : memref<10x18x4xf32, #tpu.memory_space<vmem>>, vector<8x16x4xf32>
    tpu.vector_store %arg21[%c1_129, %c1_130, %c0_131], %117 {strides = array<i32>} : memref<10x18x4xf32, #tpu.memory_space<vmem>>, vector<8x16x4xf32>,
    %c0_132 = arith.constant 0 : index
    %c0_133 = arith.constant 0 : index
    %c0_134 = arith.constant 0 : index
    %119 = vector.load %arg21[%c0_132, %c0_133, %c0_134] : memref<10x18x4xf32, #tpu.memory_space<vmem>>, vector<8x16x4xf32>
    %120 = vector.shape_cast %119 : vector<8x16x4xf32> to vector<128x4xf32>
    %c0_135 = arith.constant 0 : index
    %c1_136 = arith.constant 1 : index
    %c0_137 = arith.constant 0 : index
    %121 = vector.load %arg21[%c0_135, %c1_136, %c0_137] : memref<10x18x4xf32, #tpu.memory_space<vmem>>, vector<8x16x4xf32>
    %122 = vector.shape_cast %121 : vector<8x16x4xf32> to vector<128x4xf32>
    %c0_138 = arith.constant 0 : index
    %c2_139 = arith.constant 2 : index
    %c0_140 = arith.constant 0 : index
    %123 = vector.load %arg21[%c0_138, %c2_139, %c0_140] : memref<10x18x4xf32, #tpu.memory_space<vmem>>, vector<8x16x4xf32>
    %124 = vector.shape_cast %123 : vector<8x16x4xf32> to vector<128x4xf32>
    %c1_141 = arith.constant 1 : index
    %c0_142 = arith.constant 0 : index
    %c0_143 = arith.constant 0 : index
    %125 = vector.load %arg21[%c1_141, %c0_142, %c0_143] : memref<10x18x4xf32, #tpu.memory_space<vmem>>, vector<8x16x4xf32>
    %126 = vector.shape_cast %125 : vector<8x16x4xf32> to vector<128x4xf32>
    %c1_144 = arith.constant 1 : index
    %c1_145 = arith.constant 1 : index
    %c0_146 = arith.constant 0 : index
    %127 = vector.load %arg21[%c1_144, %c1_145, %c0_146] : memref<10x18x4xf32, #tpu.memory_space<vmem>>, vector<8x16x4xf32>
    %128 = vector.shape_cast %127 : vector<8x16x4xf32> to vector<128x4xf32>
    %c1_147 = arith.constant 1 : index
    %c2_148 = arith.constant 2 : index
    %c0_149 = arith.constant 0 : index
    %129 = vector.load %arg21[%c1_147, %c2_148, %c0_149] : memref<10x18x4xf32, #tpu.memory_space<vmem>>, vector<8x16x4xf32>
    %130 = vector.shape_cast %129 : vector<8x16x4xf32> to vector<128x4xf32>
    %c2_150 = arith.constant 2 : index
    %c0_151 = arith.constant 0 : index
    %c0_152 = arith.constant 0 : index
    %131 = vector.load %arg21[%c2_150, %c0_151, %c0_152] : memref<10x18x4xf32, #tpu.memory_space<vmem>>, vector<8x16x4xf32>
    %132 = vector.shape_cast %131 : vector<8x16x4xf32> to vector<128x4xf32>
    %c2_153 = arith.constant 2 : index
    %c1_154 = arith.constant 1 : index
    %c0_155 = arith.constant 0 : index
    %133 = vector.load %arg21[%c2_153, %c1_154, %c0_155] : memref<10x18x4xf32, #tpu.memory_space<vmem>>, vector<8x16x4xf32>
    %134 = vector.shape_cast %133 : vector<8x16x4xf32> to vector<128x4xf32>
    %c2_156 = arith.constant 2 : index
    %c2_157 = arith.constant 2 : index
    %c0_158 = arith.constant 0 : index
    %135 = vector.load %arg21[%c2_156, %c2_157, %c0_158] : memref<10x18x4xf32, #tpu.memory_space<vmem>>, vector<8x16x4xf32>
    %136 = vector.shape_cast %135 : vector<8x16x4xf32> to vector<128x4xf32>
    %137 = tpu.concatenate %120, %122, %124, %126, %128, %130, %132, %134, %136 in 1 : vector<128x4xf32>, vector<128x4xf32>, vector<128x4xf32>, vector<128x4xf32>, vector<128x4xf32>, vector<128x4xf32>, vector<128x4xf32>, vector<128x4xf32>, vector<128x4xf32> -> vector<128x36xf32>
    %138 = arith.truncf %137 : vector<128x36xf32> to vector<128x36xbf16>
    %c0_159 = arith.constant 0 : index
    %c0_160 = arith.constant 0 : index
    %139 = vector.load %arg15[%c0_159, %c0_160] : memref<36x8xbf16, #tpu.memory_space<vmem>>, vector<36x8xbf16>
    %cst_161 = arith.constant dense<0.000000e+00> : vector<128x8xf32>
    %140 = tpu.matmul %138, %139, %cst_161 {dimension_numbers = #tpu.dot_dimension_numbers<[1], [0], [0], [1], [0, 0, 1, 1], [], []>} : vector<128x36xbf16>, vector<36x8xbf16>, vector<128x8xf32> -> vector<128x8xf32>
    %c0_162 = arith.constant 0 : index
    %c0_163 = arith.constant 0 : index
    %141 = vector.load %arg16[%c0_162, %c0_163] : memref<1x8xf32, #tpu.memory_space<vmem>>, vector<1x8xf32>
    %142 = vector.broadcast %141 : vector<1x8xf32> to vector<128x8xf32>
    %143 = arith.mulf %140, %142 : vector<128x8xf32>
    %c0_164 = arith.constant 0 : index
    %c0_165 = arith.constant 0 : index
    %144 = vector.load %arg17[%c0_164, %c0_165] : memref<1x8xf32, #tpu.memory_space<vmem>>, vector<1x8xf32>
    %145 = vector.broadcast %144 : vector<1x8xf32> to vector<128x8xf32>
    %146 = arith.addf %143, %145 : vector<128x8xf32>
    %cst_166 = arith.constant 0.000000e+00 : f32
    %147 = vector.broadcast %cst_166 : f32 to vector<128x8xf32>
    %148 = arith.maximumf %146, %147 : vector<128x8xf32>
    %149 = arith.truncf %148 : vector<128x8xf32> to vector<128x8xbf16>
    %c0_167 = arith.constant 0 : index
    %c0_168 = arith.constant 0 : index
    %150 = vector.load %arg18[%c0_167, %c0_168] : memref<8x32xbf16, #tpu.memory_space<vmem>>, vector<8x32xbf16>
    %cst_169 = arith.constant dense<0.000000e+00> : vector<128x32xf32>
    %151 = tpu.matmul %149, %150, %cst_169 {dimension_numbers = #tpu.dot_dimension_numbers<[1], [0], [0], [1], [0, 0, 1, 1], [], []>} : vector<128x8xbf16>, vector<8x32xbf16>, vector<128x32xf32> -> vector<128x32xf32>
    %c0_170 = arith.constant 0 : index
    %c0_171 = arith.constant 0 : index
    %152 = vector.load %arg19[%c0_170, %c0_171] : memref<1x32xf32, #tpu.memory_space<vmem>>, vector<1x32xf32>
    %153 = vector.broadcast %152 : vector<1x32xf32> to vector<128x32xf32>
    %154 = arith.addf %151, %153 : vector<128x32xf32>
    %c0_172 = arith.constant 0 : index
    %c0_173 = arith.constant 0 : index
    %c0_174 = arith.constant 0 : index
    %155 = vector.load %arg20[%c0_172, %c0_173, %c0_174] : memref<1x128x32xf32, #tpu.memory_space<vmem>>, vector<1x128x32xf32>
    %156 = vector.shape_cast %155 : vector<1x128x32xf32> to vector<128x32xf32>
    %157 = vector.shape_cast %154 : vector<128x32xf32> to vector<1x128x32xf32>
    tpu.vector_store %arg20[%c0_172, %c0_173, %c0_174], %157 {strides = array<i32>} : memref<1x128x32xf32, #tpu.memory_space<vmem>>, vector<1x128x32xf32>,
    return
  }
  func.func @transform_0(%arg0: i32) -> (i32, i32, i32) {
    %c0_i32 = arith.constant 0 : i32
    %c0_i32_0 = arith.constant 0 : i32
    %c0_i32_1 = arith.constant 0 : i32
    return %arg0, %c0_i32, %c0_i32_0 : i32, i32, i32
  }
  func.func @transform_1(%arg0: i32) -> (i32, i32) {
    %c0_i32 = arith.constant 0 : i32
    %c0_i32_0 = arith.constant 0 : i32
    %c0_i32_1 = arith.constant 0 : i32
    return %c0_i32, %c0_i32_0 : i32, i32
  }
  func.func @transform_2(%arg0: i32) -> (i32, i32) {
    %c0_i32 = arith.constant 0 : i32
    %c0_i32_0 = arith.constant 0 : i32
    %c0_i32_1 = arith.constant 0 : i32
    return %c0_i32, %c0_i32_0 : i32, i32
  }
  func.func @transform_3(%arg0: i32) -> (i32, i32) {
    %c0_i32 = arith.constant 0 : i32
    %c0_i32_0 = arith.constant 0 : i32
    %c0_i32_1 = arith.constant 0 : i32
    return %c0_i32, %c0_i32_0 : i32, i32
  }
  func.func @transform_4(%arg0: i32) -> (i32, i32) {
    %c0_i32 = arith.constant 0 : i32
    %c0_i32_0 = arith.constant 0 : i32
    %c0_i32_1 = arith.constant 0 : i32
    return %c0_i32, %c0_i32_0 : i32, i32
  }
  func.func @transform_5(%arg0: i32) -> (i32, i32) {
    %c0_i32 = arith.constant 0 : i32
    %c0_i32_0 = arith.constant 0 : i32
    %c0_i32_1 = arith.constant 0 : i32
    return %c0_i32, %c0_i32_0 : i32, i32
  }
  func.func @transform_6(%arg0: i32) -> (i32, i32) {
    %c0_i32 = arith.constant 0 : i32
    %c0_i32_0 = arith.constant 0 : i32
    %c0_i32_1 = arith.constant 0 : i32
    return %c0_i32, %c0_i32_0 : i32, i32
  }
  func.func @transform_7(%arg0: i32) -> (i32, i32) {
    %c0_i32 = arith.constant 0 : i32
    %c0_i32_0 = arith.constant 0 : i32
    %c0_i32_1 = arith.constant 0 : i32
    return %c0_i32, %c0_i32_0 : i32, i32
  }
  func.func @transform_8(%arg0: i32) -> (i32, i32) {
    %c0_i32 = arith.constant 0 : i32
    %c0_i32_0 = arith.constant 0 : i32
    %c0_i32_1 = arith.constant 0 : i32
    return %c0_i32, %c0_i32_0 : i32, i32
  }
  func.func @transform_9(%arg0: i32) -> (i32, i32) {
    %c0_i32 = arith.constant 0 : i32
    %c0_i32_0 = arith.constant 0 : i32
    %c0_i32_1 = arith.constant 0 : i32
    return %c0_i32, %c0_i32_0 : i32, i32
  }
  func.func @transform_10(%arg0: i32) -> (i32, i32) {
    %c0_i32 = arith.constant 0 : i32
    %c0_i32_0 = arith.constant 0 : i32
    %c0_i32_1 = arith.constant 0 : i32
    return %c0_i32, %c0_i32_0 : i32, i32
  }
  func.func @transform_11(%arg0: i32) -> (i32, i32) {
    %c0_i32 = arith.constant 0 : i32
    %c0_i32_0 = arith.constant 0 : i32
    %c0_i32_1 = arith.constant 0 : i32
    return %c0_i32, %c0_i32_0 : i32, i32
  }
  func.func @transform_12(%arg0: i32) -> (i32, i32) {
    %c0_i32 = arith.constant 0 : i32
    %c0_i32_0 = arith.constant 0 : i32
    %c0_i32_1 = arith.constant 0 : i32
    return %c0_i32, %c0_i32_0 : i32, i32
  }
  func.func @transform_13(%arg0: i32) -> (i32, i32) {
    %c0_i32 = arith.constant 0 : i32
    %c0_i32_0 = arith.constant 0 : i32
    %c0_i32_1 = arith.constant 0 : i32
    return %c0_i32, %c0_i32_0 : i32, i32
  }
  func.func @transform_14(%arg0: i32) -> (i32, i32) {
    %c0_i32 = arith.constant 0 : i32
    %c0_i32_0 = arith.constant 0 : i32
    %c0_i32_1 = arith.constant 0 : i32
    return %c0_i32, %c0_i32_0 : i32, i32
  }
  func.func @transform_15(%arg0: i32) -> (i32, i32) {
    %c0_i32 = arith.constant 0 : i32
    %c0_i32_0 = arith.constant 0 : i32
    %c0_i32_1 = arith.constant 0 : i32
    return %c0_i32, %c0_i32_0 : i32, i32
  }
  func.func @transform_16(%arg0: i32) -> (i32, i32) {
    %c0_i32 = arith.constant 0 : i32
    %c0_i32_0 = arith.constant 0 : i32
    %c0_i32_1 = arith.constant 0 : i32
    return %c0_i32, %c0_i32_0 : i32, i32
  }
  func.func @transform_17(%arg0: i32) -> (i32, i32) {
    %c0_i32 = arith.constant 0 : i32
    %c0_i32_0 = arith.constant 0 : i32
    %c0_i32_1 = arith.constant 0 : i32
    return %c0_i32, %c0_i32_0 : i32, i32
  }
  func.func @transform_18(%arg0: i32) -> (i32, i32) {
    %c0_i32 = arith.constant 0 : i32
    %c0_i32_0 = arith.constant 0 : i32
    %c0_i32_1 = arith.constant 0 : i32
    return %c0_i32, %c0_i32_0 : i32, i32
  }
  func.func @transform_19(%arg0: i32) -> (i32, i32, i32) {
    %c0_i32 = arith.constant 0 : i32
    %c0_i32_0 = arith.constant 0 : i32
    %c0_i32_1 = arith.constant 0 : i32
    return %arg0, %c0_i32, %c0_i32_0 : i32, i32, i32
  }
}

</mosaic_0001>

<bundles_post_ra>
// kernel: raddet_cart_forward.1
= control target key start
LH: loop header
LB: loop body
LE: loop exit
PB: predicated region body
PF: predicated region fallthrough
CT: control target
= control target key end

     0   :  { %s9414_s0 = inlined_call_operand.vmem [shape: f32[2,64,4], index: 0, kind: input, shape index: {}]   ;;  %s9415_s1 = inlined_call_operand.vmem [shape: bf16[128,64], index: 1, kind: input, shape index: {}]   ;;  %s9416_s2 = inlined_call_operand.vmem [shape: f32[128,1], index: 2, kind: input, shape index: {}]   ;;  %s9417_s3 = inlined_call_operand.vmem [shape: bf16[128,128], index: 3, kind: input, shape index: {}]   ;;  %s9418_s4 = inlined_call_operand.vmem [shape: f32[128,1], index: 4, kind: input, shape index: {}]   ;;  %s9419_s5 = inlined_call_operand.vmem [shape: bf16[36,4], index: 5, kind: input, shape index: {}]   ;;  %s9420_s6 = inlined_call_operand.vmem [shape: f32[1,4], index: 6, kind: input, shape index: {}]   ;;  %s9421_s7 = inlined_call_operand.vmem [shape: f32[1,4], index: 7, kind: input, shape index: {}]   ;;  %s9422_s8 = inlined_call_operand.vmem [shape: bf16[36,4], index: 8, kind: input, shape index: {}]   ;;  %s9423_s9 = inlined_call_operand.vmem [shape: f32[1,4], index: 9, kind: input, shape index: {}]   ;;  %s9424_s10 = inlined_call_operand.vmem [shape: f32[1,4], index: 10, kind: input, shape index: {}]   ;;  %s9425_s11 = inlined_call_operand.vmem [shape: bf16[36,4], index: 11, kind: input, shape index: {}]   ;;  %s9426_s12 = inlined_call_operand.vmem [shape: f32[1,4], index: 12, kind: input, shape index: {}]   ;;  %s9427_s13 = inlined_call_operand.vmem [shape: f32[1,4], index: 13, kind: input, shape index: {}]   ;;  %s9428_s14 = inlined_call_operand.vmem [shape: bf16[36,8], index: 14, kind: input, shape index: {}]   ;;  %s9429_s15 = inlined_call_operand.vmem [shape: f32[1,8], index: 15, kind: input, shape index: {}]   ;;  %s9430_s16 = inlined_call_operand.vmem [shape: f32[1,8], index: 16, kind: input, shape index: {}]   ;;  %s9431_s17 = inlined_call_operand.vmem [shape: bf16[8,32], index: 17, kind: input, shape index: {}]   ;;  %s9432_s18 = inlined_call_operand.vmem [shape: f32[1,32], index: 18, kind: input, shape index: {}]   ;;  %s9433_s19 = inlined_call_operand.vmem [shape: f32[2,128,32], index: 19, kind: output, shape index: {}]  }
   0x1   :  { %9468 = sst [smem:[#allocation3_spill]] %s9414_s0  ;;  %s7309_s0 = smov 0  }
   0x2   :  { %9469 = sst [smem:[#allocation4_spill]] %s9415_s1 }
   0x3   :  { %9470 = sst [smem:[#allocation5_spill]] %s9416_s2 }
   0x4   :  { %9471 = sst [smem:[#allocation6_spill]] %s9417_s3 }
   0x5   :  { %9472 = sst [smem:[#allocation7_spill]] %s9418_s4 }
   0x6 LB: > { %s5514_s30 = sadd.s32 4294967295, %s7197_s0   ;;  %p5518_p0 = scmp.ge.s32.totalorder %s7197_s0, 1  ;;  %s7197_s0 = sphi %s7309_s0, %s29_s0  }
   0x7   : > { %p537_p1 = scmp.lt.s32.totalorder %s7197_s0, 3 }
   0x9   : > { %p538_p2 = pnand %p5518_p0, %p537_p1 }
   0xa   : > { %p593_p3 = scmp.lt.s32.totalorder (!%p538_p2), %s5514_s30, 1  ;;  %s9473_s1 = sld [smem:[#allocation4_spill]] (!%p538_p2)  ;;  %vm768_vm0 = vcmask (!%p538_p2), 523264   ;;  %v7199_v1 = vmov (!%p538_p2), 0   ;;  %vm1187_vm1 = vcmask (!%p538_p2), 31744   ;;  %vm1190_vm2 = vcmask (!%p538_p2), 25600  }
   0xb   : > { %541 = sbr.rel (%p538_p2) target bundleno = 2414 (0x96e), region = 96  ;;  %5881 = vset.pattern.permute.xlu0 (!%p538_p2), %v7199_v1  ;;  %5882 = vset.pattern.permute.xlu1 (!%p538_p2), %v7199_v1  ;;  %s9474_s24 = sld [smem:[#allocation3_spill]] (!%p538_p2)  ;;  %vm2081_vm3 = vcmask (!%p538_p2), 1041408   ;;  %vm1909_vm4 = vcmask (!%p538_p2), 64512   ;;  %vm1926_vm5 = vcmask (!%p538_p2), 97280   ;;  %vm1943_vm6 = vcmask (!%p538_p2), 130048  }
   0xc   : > { %s9475_s27 = sld [smem:[#allocation5_spill]] (!%p538_p2)  ;;  %s9476_s4 = sld [smem:[#allocation7_spill]] (!%p538_p2)  ;;  %vm1960_vm7 = vcmask (!%p538_p2), 162816   ;;  %vm1977_vm8 = vcmask (!%p538_p2), 195584   ;;  %vm1994_vm9 = vcmask (!%p538_p2), 228352   ;;  %vm2011_vm10 = vcmask (!%p538_p2), 261120  }
   0xd   : > { %s9477_s29 = sld [smem:[#allocation6_spill]] (!%p538_p2)  ;;  %s9460_s23 = smov (!%p538_p2), 4   ;;  %vm2056_vm11 = vcmask (!%p538_p2), 293888   ;;  %vm5342_vm12 = vcmask (!%p538_p2), 1043456  }
   0xe   : > { %s9458_s3 = smov (!%p538_p2), 24   ;;  %s9437_s26 = smov (!%p538_p2), 12  }
   0xf   : > { %s9463_s28 = smov (!%p538_p2), 16   ;;  %s9456_s20 = smov (!%p538_p2), 32  }
  0x10   : > { %v7163_v0 = vld [vmem:[%s9473_s1] sm:$0xff] (!%p538_p2)   ;;  %v7164_v21 = vld [vmem:[%s9473_s1 + $0x8] sm:$0xff] (!%p538_p2)   ;;  %v7165_v22 = vld [vmem:[%s9473_s1 + $0x10] sm:$0xff] (!%p538_p2)   ;;  %s9454_s21 = smov (!%p538_p2), 20  }
  0x11   : > { %5701 = vmatprep.mubr.msk.bf16.mxu0 (!%p538_p2), %vm768_vm0, %v7163_v0  ;;  %v7166_v27 = vld [vmem:[%s9473_s1 + $0x18] sm:$0xff] (!%p538_p2)   ;;  %v7167_v29 = vld [vmem:[%s9473_s1 + $0x20] sm:$0xff] (!%p538_p2)   ;;  %v7168_v33 = vld [vmem:[%s9473_s1 + $0x28] sm:$0xff] (!%p538_p2)  }
  0x12   : > { %s9501_s30 = smov (!%p593_p3, %s5514_s30), 1  ;;  %v632_v10 = vld [vmem:[%s9475_s27] sm:$0xff]  ;;  %v634_v12 = vld [vmem:[%s9475_s27 + $0x10] sm:$0xff]  ;;  %v633_v13 = vld [vmem:[%s9475_s27 + $0x8] sm:$0xff] }
  0x13   : > { %s5610_s22 = sshll.u32 %s9501_s30, 6  ;;  %650 = vperm.xlu0 %5881, %v632_v10   ;;  %660 = vperm.xlu1 %5882, %v634_v12   ;;  %v635_v16 = vld [vmem:[%s9475_s27 + $0x18] sm:$0xff]  ;;  %v636_v18 = vld [vmem:[%s9475_s27 + $0x20] sm:$0xff]  ;;  %v637_v19 = vld [vmem:[%s9475_s27 + $0x28] sm:$0xff] }
  0x14   : > { %s597_s25 = scalar_lea.vmem %s9474_s24, %s5610_s22  ;;  %v638_v20 = vld [vmem:[%s9475_s27 + $0x30] sm:$0xff]  ;;  %v639_v23 = vld [vmem:[%s9475_s27 + $0x38] sm:$0xff]  ;;  %v640_v24 = vld [vmem:[%s9475_s27 + $0x40] sm:$0xff]  ;;  %s9439_s24 = smov 8  }
  0x15   : > { %v604_v2 = vld [vmem:[%s597_s25] sm:$0xff]  ;;  %v605_v3 = vld [vmem:[%s597_s25 + $0x8] sm:$0xff]  ;;  %v606_v4 = vld [vmem:[%s597_s25 + $0x10] sm:$0xff] }
  0x16   : > { %v612_v5 = vpack.c.bf16 %v605_v3, %v604_v2  ;;  %v607_v6 = vld [vmem:[%s597_s25 + $0x18] sm:$0xff]  ;;  %v608_v8 = vld [vmem:[%s597_s25 + $0x20] sm:$0xff]  ;;  %v609_v9 = vld [vmem:[%s597_s25 + $0x28] sm:$0xff] }
  0x17   : > { %v613_v7 = vpack.c.bf16 %v607_v6, %v606_v4  ;;  %v614_v11 = vpack.c.bf16 %v609_v9, %v608_v8  ;;  %v610_v14 = vld [vmem:[%s597_s25 + $0x30] sm:$0xff]  ;;  %v611_v15 = vld [vmem:[%s597_s25 + $0x38] sm:$0xff]  ;;  %655 = vperm.xlu0 %5881, %v633_v13   ;;  %665 = vperm.xlu1 %5882, %v635_v16   ;;  %v641_v25 = vld [vmem:[%s9475_s27 + $0x48] sm:$0xff]  ;;  %s9465_s25 = smov 28  }
  0x18   : > { %5693 = vmatprep.subr.bf16.mxu0 %v612_v5  ;;  %v615_v17 = vpack.c.bf16 %v611_v15, %v610_v14  ;;  %v642_v26 = vld [vmem:[%s9475_s27 + $0x50] sm:$0xff]  ;;  %v643_v28 = vld [vmem:[%s9475_s27 + $0x58] sm:$0xff]  ;;  %v644_v30 = vld [vmem:[%s9475_s27 + $0x60] sm:$0xff] }
  0x19   : > { %5694 = vmatpush3.bf16.msra.mxu0 %v612_v5  ;;  %v645_v31 = vld [vmem:[%s9475_s27 + $0x68] sm:$0xff]  ;;  %v646_v32 = vld [vmem:[%s9475_s27 + $0x70] sm:$0xff]  ;;  %v647_v34 = vld [vmem:[%s9475_s27 + $0x78] sm:$0xff] }
  0x1a   : > { %5695 = vmatprep.subr.bf16.mxu0 %v613_v7  ;;  %v7169_v35 = vld [vmem:[%s9473_s1 + $0x30] sm:$0xff]   ;;  %v930_v36 = vld [vmem:[%s9476_s4] sm:$0xff]  ;;  %v931_v37 = vld [vmem:[%s9476_s4 + $0x8] sm:$0xff] }
  0x1b   : > { %670 = vperm.xlu0 %5881, %v636_v18   ;;  %675 = vperm.xlu1 %5882, %v637_v19   ;;  %v932_v38 = vld [vmem:[%s9476_s4 + $0x10] sm:$0xff]  ;;  %v7170_v39 = vld [vmem:[%s9473_s1 + $0x38] sm:$0xff]   ;;  %v934_v41 = vld [vmem:[%s9476_s4 + $0x20] sm:$0xff] }
  0x1c   : > { %v933_v40 = vld [vmem:[%s9476_s4 + $0x18] sm:$0xff]  ;;  %v935_v42 = vld [vmem:[%s9476_s4 + $0x28] sm:$0xff]  ;;  %v936_v43 = vld [vmem:[%s9476_s4 + $0x30] sm:$0xff] }
  0x1d   : > { %5696 = vmatpush3.bf16.msra.mxu0 %v613_v7  ;;  %v937_v44 = vld [vmem:[%s9476_s4 + $0x38] sm:$0xff]  ;;  %v938_v45 = vld [vmem:[%s9476_s4 + $0x40] sm:$0xff]  ;;  %v939_v46 = vld [vmem:[%s9476_s4 + $0x48] sm:$0xff] }
  0x1e   : > { %5697 = vmatprep.subr.bf16.mxu0 %v614_v11  ;;  %v940_v47 = vld [vmem:[%s9476_s4 + $0x50] sm:$0xff]  ;;  %v941_v48 = vld [vmem:[%s9476_s4 + $0x58] sm:$0xff]  ;;  %v942_v49 = vld [vmem:[%s9476_s4 + $0x60] sm:$0xff] }
  0x1f   : > { %680 = vperm.xlu0 %5881, %v638_v20   ;;  %685 = vperm.xlu1 %5882, %v639_v23   ;;  %v943_v50 = vld [vmem:[%s9476_s4 + $0x68] sm:$0xff]  ;;  %v944_v51 = vld [vmem:[%s9476_s4 + $0x70] sm:$0xff]  ;;  %v945_v52 = vld [vmem:[%s9476_s4 + $0x78] sm:$0xff] }
  0x20   : > { %v7171_v53 = vld [vmem:[%s9477_s29] sm:$0xff]  }
  0x21   : > { %5698 = vmatpush3.bf16.msra.mxu0 %v614_v11  ;;  %5733 = vmatprep.mubr.bf16.mxu1 %v7171_v53 }
  0x22   : > { %5699 = vmatprep.subr.bf16.mxu0 %v615_v17 }
  0x23   : > { %690 = vperm.xlu0 %5881, %v640_v24   ;;  %695 = vperm.xlu1 %5882, %v641_v25  }
  0x25   : > { %5700 = vmatpush3.bf16.msra.mxu0 %v615_v17 }
  0x27   : > { %700 = vperm.xlu0 %5881, %v642_v26   ;;  %705 = vperm.xlu1 %5882, %v643_v28  }
  0x28   : > { %5702 = vmatmul.mubr.msk.bf16.vlgmr.msra.gmra.mrb[0].mxu0 %vm768_vm0, %v7164_v21 }
  0x29   : > { %5705 = vmatprep.mubr.msk.bf16.mxu0 %vm768_vm0, %v7165_v22 }
  0x2b   : > { %710 = vperm.xlu0 %5881, %v644_v30   ;;  %715 = vperm.xlu1 %5882, %v645_v31  }
  0x2f   : > { %720 = vperm.xlu0 %5881, %v646_v32   ;;  %725 = vperm.xlu1 %5882, %v647_v34  }
  0x30   : > { %5706 = vmatmul.mubr.msk.bf16.gmra.mrb[4].mxu0 %vm768_vm0, %v7166_v27 }
  0x31   : > { %5709 = vmatprep.mubr.msk.bf16.mxu0 %vm768_vm0, %v7167_v29 }
  0x33   : > { %948 = vperm.xlu0 %5881, %v930_v36   ;;  %953 = vperm.xlu1 %5882, %v931_v37  }
  0x37   : > { %958 = vperm.xlu0 %5881, %v932_v38   ;;  %963 = vperm.xlu1 %5882, %v933_v40  }
  0x38   : > { %5710 = vmatmul.mubr.msk.bf16.gmra.mrb[8].mxu0 %vm768_vm0, %v7168_v33 }
  0x39   : > { %5713 = vmatprep.mubr.msk.bf16.mxu0 %vm768_vm0, %v7169_v35 }
  0x3b   : > { %968 = vperm.xlu0 %5881, %v934_v41   ;;  %973 = vperm.xlu1 %5882, %v935_v42  }
  0x3f   : > { %978 = vperm.xlu0 %5881, %v936_v43   ;;  %983 = vperm.xlu1 %5882, %v937_v44  }
  0x40   : > { %5714 = vmatmul.mubr.msk.bf16.gmra.mrb[12].mxu0 %vm768_vm0, %v7170_v39 }
  0x43   : > { %988 = vperm.xlu0 %5881, %v938_v45   ;;  %993 = vperm.xlu1 %5882, %v939_v46  }
  0x47   : > { %998 = vperm.xlu0 %5881, %v940_v47   ;;  %1003 = vperm.xlu1 %5882, %v941_v48  }
  0x4b   : > { %1008 = vperm.xlu0 %5881, %v942_v49   ;;  %1013 = vperm.xlu1 %5882, %v943_v50  }
  0x4f   : > { %1018 = vperm.xlu0 %5881, %v944_v51   ;;  %1023 = vperm.xlu1 %5882, %v945_v52  }
  0x92   : > { %v651_v54 = vpop.permute.xlu0 %650  ;;  %v661_v55 = vpop.permute.xlu1 %660 }
  0x96   : > { %v656_v56 = vpop.permute.xlu0 %655  ;;  %v666_v57 = vpop.permute.xlu1 %665 }
  0x9a   : > { %v671_v58 = vpop.permute.xlu0 %670  ;;  %v676_v59 = vpop.permute.xlu1 %675 }
  0x9e   : > { %v681_v60 = vpop.permute.xlu0 %680  ;;  %v686_v0 = vpop.permute.xlu1 %685 }
  0xa2   : > { %v691_v8 = vpop.permute.xlu0 %690  ;;  %v696_v12 = vpop.permute.xlu1 %695 }
  0xa6   : > { %v701_v21 = vpop.permute.xlu0 %700  ;;  %v706_v25 = vpop.permute.xlu1 %705 }
  0xaa   : > { %v711_v33 = vpop.permute.xlu0 %710  ;;  %v716_v38 = vpop.permute.xlu1 %715 }
  0xae   : > { %v721_v45 = vpop.permute.xlu0 %720  ;;  %v726_v50 = vpop.permute.xlu1 %725 }
  0xfb   : > { %v5703_v61 = vpop.f32.mrb[0].mxu0 }
  0xfc   : > { %v836_v62 = vadd.f32 %v5703_v61, %v661_v55  ;;  %v827_v63 = vpop.f32.mrb[1].mxu0 }
  0xfd   : > { %v828_v1 = vadd.f32 %v827_v63, %v651_v54  ;;  %v5704_v2 = vpop.f32.mrb[2].mxu0  ;;  %v7173_v63 = vld [vmem:[%s9477_s29 + $0x10] sm:$0xff]  }
  0xfe   : > { %v839_v3 = vadd.f32 %v5704_v2, %v666_v57  ;;  %v830_v4 = vpop.f32.mrb[3].mxu0  ;;  %v892_v6 = vmax.f32 %v836_v62, 0.0  ;;  %v7172_v62 = vld [vmem:[%s9477_s29 + $0x8] sm:$0xff]  }
  0xff   : > { %v831_v5 = vadd.f32 %v830_v4, %v656_v56  ;;  %v890_v9 = vmax.f32 %v828_v1, 0.0  ;;  %v7175_v1 = vld [vmem:[%s9477_s29 + $0x20] sm:$0xff]   ;;  %v7176_v2 = vld [vmem:[%s9477_s29 + $0x28] sm:$0xff]   ;;  %v7178_v4 = vld [vmem:[%s9477_s29 + $0x38] sm:$0xff]  }
 0x100   : > { %v893_v7 = vmax.f32 %v839_v3, 0.0  ;;  %v7177_v3 = vld [vmem:[%s9477_s29 + $0x30] sm:$0xff]  }
 0x101   : > { %v891_v10 = vmax.f32 %v831_v5, 0.0  ;;  %v7200_v5 = vmov 0.0  }
 0x102   : > { %v923_v11 = vpack.c.bf16 %v893_v7, %v892_v6  ;;  %1195 = vst.msk [vmem:[#allocation2 + $0x30] sm:$0xff] %vm1187_vm1, %v7200_v5  ;;  %1196 = vst.msk [vmem:[#allocation2 + $0x38] sm:$0xff] %vm1187_vm1, %v7200_v5 }
 0x103   : > { %v5707_v13 = vpop.f32.mrb[4].mxu0  ;;  %v922_v14 = vpack.c.bf16 %v891_v10, %v890_v9  ;;  %1188 = vst.msk [vmem:[#allocation2] sm:$0xff] %vm1187_vm1, %v7200_v5  ;;  %1189 = vst.msk [vmem:[#allocation2 + $0x8] sm:$0xff] %vm1187_vm1, %v7200_v5 }
 0x104   : > { %v852_v15 = vadd.f32 %v5707_v13, %v681_v60  ;;  %v843_v16 = vpop.f32.mrb[5].mxu0  ;;  %1192 = vst.msk [vmem:[#allocation2 + $0x18] sm:$0xff] %vm1187_vm1, %v7200_v5  ;;  %1193 = vst.msk [vmem:[#allocation2 + $0x20] sm:$0xff] %vm1187_vm1, %v7200_v5 }
 0x105   : > { %v844_v17 = vadd.f32 %v843_v16, %v671_v58  ;;  %v5708_v18 = vpop.f32.mrb[6].mxu0  ;;  %5717 = vmatprep.subr.bf16.mxu1 %v922_v14  ;;  %1198 = vst.msk [vmem:[#allocation2 + $0x48] sm:$0xff] %vm1187_vm1, %v7200_v5  ;;  %1199 = vst.msk [vmem:[#allocation2 + $0x50] sm:$0xff] %vm1187_vm1, %v7200_v5  ;;  %v954_v16 = vpop.permute.xlu1 %953 }
 0x106   : > { %v855_v19 = vadd.f32 %v5708_v18, %v686_v0  ;;  %v846_v20 = vpop.f32.mrb[7].mxu0  ;;  %5718 = vmatpush3.bf16.msra.mxu1 %v922_v14  ;;  %v896_v23 = vmax.f32 %v852_v15, 0.0  ;;  %v7174_v0 = vld [vmem:[%s9477_s29 + $0x18] sm:$0xff]   ;;  %1201 = vst.msk [vmem:[#allocation2 + $0x60] sm:$0xff] %vm1187_vm1, %v7200_v5  ;;  %1202 = vst.msk [vmem:[#allocation2 + $0x68] sm:$0xff] %vm1187_vm1, %v7200_v5  ;;  %v949_v15 = vpop.permute.xlu0 %948 }
 0x107   : > { %v847_v22 = vadd.f32 %v846_v20, %v676_v59  ;;  %5719 = vmatprep.subr.bf16.mxu1 %v923_v11  ;;  %v894_v26 = vmax.f32 %v844_v17, 0.0  ;;  %1204 = vst.msk [vmem:[#allocation2 + $0x78] sm:$0xff] %vm1187_vm1, %v7200_v5  ;;  %1205 = vst.msk [vmem:[#allocation2 + $0x80] sm:$0xff] %vm1187_vm1, %v7200_v5 }
 0x108   : > { %v897_v24 = vmax.f32 %v855_v19, 0.0  ;;  %1207 = vst.msk [vmem:[#allocation2 + $0x90] sm:$0xff] %vm1187_vm1, %v7200_v5  ;;  %1208 = vst.msk [vmem:[#allocation2 + $0x98] sm:$0xff] %vm1187_vm1, %v7200_v5 }
 0x109   : > { %v895_v27 = vmax.f32 %v847_v22, 0.0  ;;  %1210 = vst.msk [vmem:[#allocation2 + $0xa8] sm:$0xff] %vm1187_vm1, %v7200_v5  ;;  %1211 = vst.msk [vmem:[#allocation2 + $0xb0] sm:$0xff] %vm1187_vm1, %v7200_v5  ;;  %v964_v18 = vpop.permute.xlu1 %963 }
 0x10a   : > { %v925_v28 = vpack.c.bf16 %v897_v24, %v896_v23  ;;  %5720 = vmatpush3.bf16.msra.mxu1 %v923_v11  ;;  %1213 = vst.msk [vmem:[#allocation2 + $0xc0] sm:$0xff] %vm1187_vm1, %v7200_v5  ;;  %1214 = vst.msk [vmem:[#allocation2 + $0xc8] sm:$0xff] %vm1187_vm1, %v7200_v5  ;;  %v1252_v6 = vld [vmem:[#allocation2 + $0x1] sm:$0xff]  ;;  %v959_v17 = vpop.permute.xlu0 %958 }
 0x10b   : > { %v924_v29 = vpack.c.bf16 %v895_v27, %v894_v26  ;;  %v5711_v30 = vpop.f32.mrb[8].mxu0  ;;  %1216 = vst.msk [vmem:[#allocation2 + $0xd8] sm:$0xff] %vm1187_vm1, %v7200_v5  ;;  %1217 = vst.msk [vmem:[#allocation2 + $0xe0] sm:$0xff] %vm1187_vm1, %v7200_v5  ;;  %v1268_v9 = vld [vmem:[#allocation2 + $0x2] sm:$0xff] }
 0x10c   : > { %v868_v31 = vadd.f32 %v5711_v30, %v701_v21  ;;  %v859_v32 = vpop.f32.mrb[9].mxu0  ;;  %1197 = vst.msk [vmem:[#allocation2 + $0x40] sm:$0x3] %vm1190_vm2, %v7200_v5  ;;  %1191 = vst.msk [vmem:[#allocation2 + $0x10] sm:$0x3] %vm1190_vm2, %v7200_v5 }
 0x10d   : > { %v860_v34 = vadd.f32 %v859_v32, %v691_v8  ;;  %v5712_v35 = vpop.f32.mrb[10].mxu0  ;;  %5721 = vmatprep.subr.bf16.mxu1 %v924_v29  ;;  %1194 = vst.msk [vmem:[#allocation2 + $0x28] sm:$0x3] %vm1190_vm2, %v7200_v5  ;;  %1200 = vst.msk [vmem:[#allocation2 + $0x58] sm:$0x3] %vm1190_vm2, %v7200_v5  ;;  %v974_v20 = vpop.permute.xlu1 %973 }
 0x10e   : > { %v871_v36 = vadd.f32 %v5712_v35, %v706_v25  ;;  %v862_v37 = vpop.f32.mrb[11].mxu0  ;;  %5722 = vmatpush3.bf16.msra.mxu1 %v924_v29  ;;  %v900_v40 = vmax.f32 %v868_v31, 0.0  ;;  %1203 = vst.msk [vmem:[#allocation2 + $0x70] sm:$0x3] %vm1190_vm2, %v7200_v5  ;;  %1206 = vst.msk [vmem:[#allocation2 + $0x88] sm:$0x3] %vm1190_vm2, %v7200_v5  ;;  %v969_v19 = vpop.permute.xlu0 %968 }
 0x10f   : > { %v863_v39 = vadd.f32 %v862_v37, %v696_v12  ;;  %5723 = vmatprep.subr.bf16.mxu1 %v925_v28  ;;  %v898_v42 = vmax.f32 %v860_v34, 0.0  ;;  %1209 = vst.msk [vmem:[#allocation2 + $0xa0] sm:$0x3] %vm1190_vm2, %v7200_v5  ;;  %1212 = vst.msk [vmem:[#allocation2 + $0xb8] sm:$0x3] %vm1190_vm2, %v7200_v5 }
 0x110   : > { %v901_v41 = vmax.f32 %v871_v36, 0.0  ;;  %1215 = vst.msk [vmem:[#allocation2 + $0xd0] sm:$0x3] %vm1190_vm2, %v7200_v5  ;;  %1218 = vst.msk [vmem:[#allocation2 + $0xe8] sm:$0x3] %vm1190_vm2, %v7200_v5 }
 0x111   : > { %v899_v43 = vmax.f32 %v863_v39, 0.0  ;;  %v984_v25 = vpop.permute.xlu1 %983 }
 0x112   : > { %v927_v44 = vpack.c.bf16 %v901_v41, %v900_v40  ;;  %5724 = vmatpush3.bf16.msra.mxu1 %v925_v28  ;;  %v1347_v12 = vld [vmem:[#allocation2 + $0xd8] sm:$0xff]  ;;  %v1348_v13 = vld [vmem:[#allocation2 + $0xe0] sm:$0xff]  ;;  %v979_v21 = vpop.permute.xlu0 %978 }
 0x113   : > { %v926_v46 = vpack.c.bf16 %v899_v43, %v898_v42  ;;  %v5715_v47 = vpop.f32.mrb[12].mxu0  ;;  %v1253_v7 = vld [vmem:[#allocation2 + $0x9] sm:$0xff]  ;;  %v5893_v14 = vpack.i.bf16 %v1348_v13, %v1347_v12 }
 0x114   : > { %v884_v48 = vadd.f32 %v5715_v47, %v721_v45  ;;  %v875_v49 = vpop.f32.mrb[13].mxu0  ;;  %v5883_v8 = vpack.i.bf16 %v1253_v7, %v1252_v6  ;;  %v1269_v10 = vld [vmem:[#allocation2 + $0xa] sm:$0xff] }
 0x115   : > { %v876_v51 = vadd.f32 %v875_v49, %v711_v33  ;;  %v5716_v52 = vpop.f32.mrb[14].mxu0  ;;  %5725 = vmatprep.subr.bf16.mxu1 %v926_v46  ;;  %v5888_v11 = vpack.i.bf16 %v1269_v10, %v1268_v9  ;;  %5894 = vrot.lane.b32.xlu1 %v5893_v14, %s9458_s3  ;;  %v994_v36 = vpop.permute.xlu1 %993 }
 0x116   : > { %v887_v53 = vadd.f32 %v5716_v52, %v726_v50  ;;  %v878_v54 = vpop.f32.mrb[15].mxu0  ;;  %5726 = vmatpush3.bf16.msra.mxu1 %v926_v46  ;;  %v904_v56 = vmax.f32 %v884_v48, 0.0  ;;  %5884 = vrot.lane.b32.xlu0 %v5883_v8, %s9460_s23  ;;  %v989_v34 = vpop.permute.xlu0 %988 }
 0x117   : > { %v879_v55 = vadd.f32 %v878_v54, %v716_v38  ;;  %5727 = vmatprep.subr.bf16.mxu1 %v927_v44  ;;  %v902_v58 = vmax.f32 %v876_v51, 0.0 }
 0x118   : > { %v905_v57 = vmax.f32 %v887_v53, 0.0 }
 0x119   : > { %v903_v59 = vmax.f32 %v879_v55, 0.0  ;;  %v1004_v49 = vpop.permute.xlu1 %1003 }
 0x11a   : > { %v929_v60 = vpack.c.bf16 %v905_v57, %v904_v56  ;;  %5728 = vmatpush3.bf16.msra.mxu1 %v927_v44  ;;  %5889 = vrot.lane.b32.xlu0 %v5888_v11, %s9439_s24  ;;  %v999_v45 = vpop.permute.xlu0 %998 }
 0x11b   : > { %v928_v61 = vpack.c.bf16 %v903_v59, %v902_v58 }
 0x11d   : > { %5729 = vmatprep.subr.bf16.mxu1 %v928_v61 }
 0x11e   : > { %5730 = vmatpush3.bf16.msra.mxu1 %v928_v61  ;;  %v1009_v58 = vpop.permute.xlu0 %1008 }
 0x11f   : > { %5731 = vmatprep.subr.bf16.mxu1 %v929_v60 }
 0x122   : > { %5732 = vmatpush3.bf16.msra.mxu1 %v929_v60  ;;  %v1019_v10 = vpop.permute.xlu0 %1018 }
 0x125   : > { %5734 = vmatmul.mubr.bf16.vlgmr.msra.gmra.mrb[0].mxu1 %v7172_v62 }
 0x126   : > { %5737 = vmatprep.mubr.bf16.mxu1 %v7173_v63 }
 0x12d   : > { %5738 = vmatmul.mubr.bf16.gmra.mrb[4].mxu1 %v7174_v0 }
 0x12e   : > { %5741 = vmatprep.mubr.bf16.mxu1 %v7175_v1 }
 0x135   : > { %5742 = vmatmul.mubr.bf16.gmra.mrb[8].mxu1 %v7176_v2  ;;  %v1014_v2 = vpop.permute.xlu1 %1013 }
 0x136   : > { %5745 = vmatprep.mubr.bf16.mxu1 %v7177_v3 }
 0x139   : > { %v1024_v14 = vpop.permute.xlu1 %1023 }
 0x13d   : > { %5746 = vmatmul.mubr.bf16.gmra.mrb[12].mxu1 %v7178_v4 }
 0x1f8   : > { %v5735_v22 = vpop.f32.mrb[0].mxu1 }
 0x1f9   : > { %v7508_v23 = vadd.f32 %v5735_v22, %v959_v17  ;;  %v1108_v24 = vpop.f32.mrb[1].mxu1 }
 0x1fa   : > { %v7510_v26 = vadd.f32 %v1108_v24, %v949_v15  ;;  %v5736_v27 = vpop.f32.mrb[2].mxu1 }
 0x1fb   : > { %v1173_v28 = vmax.f32 %v7508_v23, 0.0  ;;  %v7513_v29 = vadd.f32 %v5736_v27, %v964_v18  ;;  %v1111_v30 = vpop.f32.mrb[3].mxu1 }
 0x1fc   : > { %v1171_v31 = vmax.f32 %v7510_v26, 0.0  ;;  %v7516_v32 = vadd.f32 %v1111_v30, %v954_v16 }
 0x1fd   : > { %1222 = vst.msk [vmem:[#allocation2 + $0x31] sm:$0xff] %vm1187_vm1, %v1173_v28  ;;  %v9462_v33 = vmax.f32 %v7513_v29, 0.0 }
 0x1fe   : > { %1220 = vst.msk [vmem:[#allocation2 + $0x19] sm:$0xff] %vm1187_vm1, %v1171_v31  ;;  %v9453_v35 = vmax.f32 %v7516_v32, 0.0 }
 0x1ff   : > { %1223 = vst.msk [vmem:[#allocation2 + $0x39] sm:$0xff] %vm1187_vm1, %v9462_v33 }
 0x200   : > { %1221 = vst.msk [vmem:[#allocation2 + $0x21] sm:$0xff] %vm1187_vm1, %v9453_v35  ;;  %v5739_v37 = vpop.f32.mrb[4].mxu1 }
 0x201   : > { %v7532_v38 = vadd.f32 %v5739_v37, %v979_v21  ;;  %v1124_v39 = vpop.f32.mrb[5].mxu1 }
 0x202   : > { %v7534_v40 = vadd.f32 %v1124_v39, %v969_v19  ;;  %v5740_v41 = vpop.f32.mrb[6].mxu1 }
 0x203   : > { %v9452_v42 = vmax.f32 %v7532_v38, 0.0  ;;  %v7537_v43 = vadd.f32 %v5740_v41, %v984_v25  ;;  %v1127_v44 = vpop.f32.mrb[7].mxu1 }
 0x204   : > { %v9451_v46 = vmax.f32 %v7534_v40, 0.0  ;;  %v7540_v47 = vadd.f32 %v1127_v44, %v974_v20  ;;  %v7550_v51 = vld [vmem:[#allocation2 + $0x30] sm:$0xff]  ;;  %v7179_v44 = vld [vmem:[%s9419_s5] sm:$0xff]  }
 0x205   : > { %1226 = vst.msk [vmem:[#allocation2 + $0x61] sm:$0xff] %vm1187_vm1, %v9452_v42  ;;  %v9450_v48 = vmax.f32 %v7537_v43, 0.0  ;;  %v1349_v61 = vld [vmem:[#allocation2 + $0x31] sm:$0xff]  ;;  %5749 = vmatprep.subr.bf16.mxu0 %v7179_v44 }
 0x206   : > { %1224 = vst.msk [vmem:[#allocation2 + $0x49] sm:$0xff] %vm1187_vm1, %v9451_v46  ;;  %v9449_v50 = vmax.f32 %v7540_v47, 0.0  ;;  %v7552_v52 = vld [vmem:[#allocation2 + $0x38] sm:$0xff]  ;;  %5750 = vmatpush3.bf16.msra.mxu0 %v7179_v44 }
 0x207   : > { %1227 = vst.msk [vmem:[#allocation2 + $0x69] sm:$0xff] %vm1187_vm1, %v9450_v48  ;;  %v5913_v53 = vpack.i.bf16 %v7552_v52, %v7550_v51  ;;  %v1350_v55 = vld [vmem:[#allocation2 + $0x39] sm:$0xff]  ;;  %v1255_v24 = vld [vmem:[#allocation2 + $0x21] sm:$0xff] }
 0x208   : > { %1225 = vst.msk [vmem:[#allocation2 + $0x51] sm:$0xff] %vm1187_vm1, %v9449_v50  ;;  %v5743_v54 = vpop.f32.mrb[8].mxu1  ;;  %v5918_v1 = vpack.i.bf16 %v1350_v55, %v1349_v61  ;;  %v1365_v5 = vld [vmem:[#allocation2 + $0x32] sm:$0xff]  ;;  %v1366_v6 = vld [vmem:[#allocation2 + $0x3a] sm:$0xff]  ;;  %v1271_v41 = vld [vmem:[#allocation2 + $0x22] sm:$0xff] }
 0x209   : > { %v7562_v56 = vadd.f32 %v5743_v54, %v999_v45  ;;  %5914 = vrot.lane.b32.xlu0 %v5913_v53, %s9458_s3  ;;  %5899 = vrot.lane.b32.xlu1 %v5913_v53, %s9437_s26  ;;  %v1140_v57 = vpop.f32.mrb[9].mxu1  ;;  %v5923_v9 = vpack.i.bf16 %v1366_v6, %v1365_v5  ;;  %v7602_v22 = vld [vmem:[#allocation2 + $0x20] sm:$0xff]  ;;  %v7614_v30 = vld [vmem:[#allocation2 + $0x18] sm:$0xff] }
 0x20a   : > { %v7566_v59 = vadd.f32 %v1140_v57, %v989_v34  ;;  %v5744_v60 = vpop.f32.mrb[10].mxu1  ;;  %v1254_v34 = vld [vmem:[#allocation2 + $0x19] sm:$0xff] }
 0x20b   : > { %v9448_v62 = vmax.f32 %v7562_v56, 0.0  ;;  %v7569_v63 = vadd.f32 %v5744_v60, %v1004_v49  ;;  %v1143_v0 = vpop.f32.mrb[11].mxu1  ;;  %v5938_v37 = vpack.i.bf16 %v1255_v24, %v1254_v34  ;;  %v1270_v39 = vld [vmem:[#allocation2 + $0x1a] sm:$0xff] }
 0x20c   : > { %v9447_v3 = vmax.f32 %v7566_v59, 0.0  ;;  %v7572_v4 = vadd.f32 %v1143_v0, %v994_v36  ;;  %v5948_v36 = vpack.i.bf16 %v7602_v22, %v7614_v30  ;;  %v5943_v45 = vpack.i.bf16 %v1271_v41, %v1270_v39  ;;  %v7633_v53 = vld [vmem:[#allocation2 + $0x60] sm:$0xff] }
 0x20d   : > { %1230 = vst.msk [vmem:[#allocation2 + $0x91] sm:$0xff] %vm1187_vm1, %v9448_v62  ;;  %v9446_v7 = vmax.f32 %v7569_v63, 0.0  ;;  %5919 = vrot.lane.b32.xlu0 %v5918_v1, %s9465_s25  ;;  %5904 = vrot.lane.b32.xlu1 %v5918_v1, %s9463_s28  ;;  %v1306_v57 = vld [vmem:[#allocation2 + $0x61] sm:$0xff] }
 0x20e   : > { %1228 = vst.msk [vmem:[#allocation2 + $0x79] sm:$0xff] %vm1187_vm1, %v9447_v3  ;;  %v9445_v8 = vmax.f32 %v7572_v4, 0.0  ;;  %v7629_v49 = vld [vmem:[#allocation2 + $0x68] sm:$0xff] }
 0x20f   : > { %1231 = vst.msk [vmem:[#allocation2 + $0x99] sm:$0xff] %vm1187_vm1, %v9446_v7  ;;  %v5963_v54 = vpack.i.bf16 %v7629_v49, %v7633_v53  ;;  %v1307_v55 = vld [vmem:[#allocation2 + $0x69] sm:$0xff] }
 0x210   : > { %1229 = vst.msk [vmem:[#allocation2 + $0x81] sm:$0xff] %vm1187_vm1, %v9445_v8  ;;  %v5747_v11 = vpop.f32.mrb[12].mxu1  ;;  %v5968_v60 = vpack.i.bf16 %v1307_v55, %v1306_v57  ;;  %v1322_v61 = vld [vmem:[#allocation2 + $0x62] sm:$0xff]  ;;  %v1323_v0 = vld [vmem:[#allocation2 + $0x6a] sm:$0xff] }
 0x211   : > { %v7590_v12 = vadd.f32 %v5747_v11, %v1019_v10  ;;  %5924 = vrot.lane.b32.xlu0 %v5923_v9, %s9456_s20  ;;  %5909 = vrot.lane.b32.xlu1 %v5923_v9, %s9454_s21  ;;  %v1156_v13 = vpop.f32.mrb[13].mxu1  ;;  %v7651_v6 = vld [vmem:[#allocation2 + $0x50] sm:$0xff] }
 0x212   : > { %v7594_v15 = vadd.f32 %v1156_v13, %v1009_v58  ;;  %v5748_v16 = vpop.f32.mrb[14].mxu1  ;;  %v7180_v58 = vld [vmem:[%s9419_s5 + $0x8] sm:$0xff]   ;;  %v1368_v13 = vld [vmem:[#allocation2 + $0x52] sm:$0xff] }
 0x213   : > { %v9444_v17 = vmax.f32 %v7590_v12, 0.0  ;;  %v7597_v18 = vadd.f32 %v5748_v16, %v1024_v14  ;;  %v1159_v19 = vpop.f32.mrb[15].mxu1  ;;  %5751 = vmatprep.subr.bf16.mxu0 %v7180_v58  ;;  %v1367_v11 = vld [vmem:[#allocation2 + $0x4a] sm:$0xff] }
 0x214   : > { %v9443_v20 = vmax.f32 %v7594_v15, 0.0  ;;  %v7600_v21 = vadd.f32 %v1159_v19, %v1014_v2  ;;  %5752 = vmatpush3.bf16.msra.mxu0 %v7180_v58  ;;  %v7181_v2 = vld [vmem:[%s9419_s5 + $0x10] ss:$0 sps:$4 sm:$0x33]   ;;  %v1352_v14 = vld [vmem:[#allocation2 + $0x51] sm:$0xff]  ;;  %v6013_v19 = vpack.i.bf16 %v1368_v13, %v1367_v11 }
 0x215   : > { %1234 = vst.msk [vmem:[#allocation2 + $0xc1] sm:$0xff] %vm1187_vm1, %v9444_v17  ;;  %v9442_v25 = vmax.f32 %v7597_v18, 0.0  ;;  %5934 = vrot.lane.b32.xlu0 %v5923_v9, %s9439_s24  ;;  %5929 = vrot.lane.b32.xlu1 %v5918_v1, %s9460_s23  ;;  %v5973_v1 = vpack.i.bf16 %v1323_v0, %v1322_v61  ;;  %v2083_v5 = vsel %vm2081_vm3, %v7181_v2, 0  ;;  %v7655_v9 = vld [vmem:[#allocation2 + $0x48] sm:$0xff]  ;;  %v1310_v41 = vld [vmem:[#allocation2 + $0x91] sm:$0xff] }
 0x216   : > { %1232 = vst.msk [vmem:[#allocation2 + $0xa9] sm:$0xff] %vm1187_vm1, %v9443_v20  ;;  %v9441_v27 = vmax.f32 %v7600_v21, 0.0  ;;  %5857 = vmatprep.subr.msk.bf16.mxu0 %vm2081_vm3, %v7181_v2  ;;  %v6003_v10 = vpack.i.bf16 %v7651_v6, %v7655_v9  ;;  %v1351_v16 = vld [vmem:[#allocation2 + $0x49] sm:$0xff]  ;;  %v7665_v34 = vld [vmem:[#allocation2 + $0x98] sm:$0xff] }
 0x217   : > { %1235 = vst.msk [vmem:[#allocation2 + $0xc9] sm:$0xff] %vm1187_vm1, %v9442_v25  ;;  %v6008_v24 = vpack.i.bf16 %v1352_v14, %v1351_v16  ;;  %v1311_v39 = vld [vmem:[#allocation2 + $0x99] sm:$0xff]  ;;  %v1372_v0 = vld [vmem:[#allocation2 + $0x82] sm:$0xff] }
 0x218   : > { %1233 = vst.msk [vmem:[#allocation2 + $0xb1] sm:$0xff] %vm1187_vm1, %v9441_v27  ;;  %5754 = vmatpush3.bf16.msra.mxu0 %v2083_v5  ;;  %v6048_v44 = vpack.i.bf16 %v1311_v39, %v1310_v41  ;;  %v7679_v57 = vld [vmem:[#allocation2 + $0x80] sm:$0xff]  ;;  %v7683_v58 = vld [vmem:[#allocation2 + $0x78] sm:$0xff]  ;;  %v1237_v20 = vld [vmem:[#allocation2 + $0x8] sm:$0xff] }
 0x219   : > { %5949 = vrot.lane.b32.xlu0 %v5948_v36, %s9437_s26  ;;  %5939 = vrot.lane.b32.xlu1 %v5938_v37, %s9460_s23  ;;  %v7669_v36 = vld [vmem:[#allocation2 + $0x90] sm:$0xff]  ;;  %v1371_v61 = vld [vmem:[#allocation2 + $0x7a] sm:$0xff] }
 0x21a   : > { %v1355_v2 = vld [vmem:[#allocation2 + $0x79] sm:$0xff]  ;;  %v6093_v5 = vpack.i.bf16 %v1372_v0, %v1371_v61 }
 0x21c   : > { %v1298_v13 = vld [vmem:[#allocation2 + $0xc0] sm:$0xff] }
 0x21d   : > { %5954 = vrot.lane.b32.xlu0 %v5938_v37, %s9463_s28  ;;  %5944 = vrot.lane.b32.xlu1 %v5943_v45, %s9439_s24  ;;  %s9478_s24 = smov 8   ;;  %v6043_v37 = vpack.i.bf16 %v7665_v34, %v7669_v36 }
 0x21e   : > { %v1299_v11 = vld [vmem:[#allocation2 + $0xc8] sm:$0xff] }
 0x21f   : > { %v6123_v14 = vpack.i.bf16 %v1299_v11, %v1298_v13  ;;  %v1315_v16 = vld [vmem:[#allocation2 + $0xc9] sm:$0xff]  ;;  %v1360_v0 = vld [vmem:[#allocation2 + $0xb1] sm:$0xff]  ;;  %v1363_v11 = vld [vmem:[#allocation2 + $0xd9] sm:$0xff] }
 0x220   : > { %v1331_v39 = vld [vmem:[#allocation2 + $0xca] sm:$0xff]  ;;  %v1364_v13 = vld [vmem:[#allocation2 + $0xe1] sm:$0xff] }
 0x221   : > { %5959 = vrot.lane.b32.xlu0 %v5943_v45, %s9454_s21  ;;  %5964 = vrot.lane.b32.xlu1 %v5963_v54, %s9437_s26  ;;  %s9479_s26 = smov 12   ;;  %v1326_v45 = vld [vmem:[#allocation2 + $0x92] sm:$0xff] }
 0x225   : > { %5979 = vrot.lane.b32.xlu0 %v5963_v54, %s9458_s3  ;;  %5969 = vrot.lane.b32.xlu1 %v5968_v60, %s9463_s28  ;;  %v1327_v54 = vld [vmem:[#allocation2 + $0x9a] sm:$0xff] }
 0x226   : > { %v6053_v55 = vpack.i.bf16 %v1327_v54, %v1326_v45  ;;  %v1376_v45 = vld [vmem:[#allocation2 + $0xb2] sm:$0xff] }
 0x227   : > { %v7699_v54 = vld [vmem:[#allocation2 + $0xb0] sm:$0xff] }
 0x229   : > { %5984 = vrot.lane.b32.xlu0 %v5968_v60, %s9465_s25  ;;  %5974 = vrot.lane.b32.xlu1 %v5973_v1, %s9454_s21 }
 0x22d   : > { %5989 = vrot.lane.b32.xlu0 %v5973_v1, %s9456_s20  ;;  %5994 = vrot.lane.b32.xlu1 %v5968_v60, %s9460_s23  ;;  %v6083_v60 = vpack.i.bf16 %v7679_v57, %v7683_v58 }
 0x231   : > { %5999 = vrot.lane.b32.xlu0 %v5973_v1, %s9478_s24  ;;  %6004 = vrot.lane.b32.xlu1 %v6003_v10, %s9458_s3  ;;  %v1356_v1 = vld [vmem:[#allocation2 + $0x81] sm:$0xff] }
 0x235   : > { %6014 = vrot.lane.b32.xlu0 %v6013_v19, %s9456_s20  ;;  %6009 = vrot.lane.b32.xlu1 %v6008_v24, %s9465_s25 }
 0x239   : > { %6029 = vrot.lane.b32.xlu0 %v6003_v10, %s9479_s26  ;;  %6019 = vrot.lane.b32.xlu1 %v6008_v24, %s9460_s23  ;;  %v6088_v10 = vpack.i.bf16 %v1356_v1, %v1355_v2  ;;  %v1359_v1 = vld [vmem:[#allocation2 + $0xa9] sm:$0xff] }
 0x23a   : > { %v6153_v2 = vpack.i.bf16 %v1360_v0, %v1359_v1 }
 0x23d   : > { %6034 = vrot.lane.b32.xlu0 %v6008_v24, %s9463_s28  ;;  %6024 = vrot.lane.b32.xlu1 %v6013_v19, %s9478_s24 }
 0x241   : > { %6039 = vrot.lane.b32.xlu0 %v6013_v19, %s9454_s21  ;;  %6044 = vrot.lane.b32.xlu1 %v6043_v37, %s9479_s26  ;;  %v1314_v19 = vld [vmem:[#allocation2 + $0xc1] sm:$0xff] }
 0x242   : > { %v6128_v24 = vpack.i.bf16 %v1315_v16, %v1314_v19  ;;  %v6173_v16 = vpack.i.bf16 %v1364_v13, %v1363_v11  ;;  %v1379_v19 = vld [vmem:[#allocation2 + $0xda] sm:$0xff] }
 0x245   : > { %6059 = vrot.lane.b32.xlu0 %v6043_v37, %s9458_s3  ;;  %6049 = vrot.lane.b32.xlu1 %v6048_v44, %s9463_s28  ;;  %v1330_v37 = vld [vmem:[#allocation2 + $0xc2] sm:$0xff] }
 0x246   : > { %v6133_v41 = vpack.i.bf16 %v1331_v39, %v1330_v37 }
 0x249   : > { %6064 = vrot.lane.b32.xlu0 %v6048_v44, %s9465_s25  ;;  %6054 = vrot.lane.b32.xlu1 %v6053_v55, %s9454_s21 }
 0x24d   : > { %6069 = vrot.lane.b32.xlu0 %v6053_v55, %s9456_s20  ;;  %6074 = vrot.lane.b32.xlu1 %v6048_v44, %s9460_s23  ;;  %v1375_v44 = vld [vmem:[#allocation2 + $0xaa] sm:$0xff] }
 0x251   : > { %6079 = vrot.lane.b32.xlu0 %v6053_v55, %s9478_s24  ;;  %6084 = vrot.lane.b32.xlu1 %v6083_v60, %s9458_s3  ;;  %v7703_v55 = vld [vmem:[#allocation2 + $0xa8] sm:$0xff] }
 0x252   : > { %v6148_v61 = vpack.i.bf16 %v7699_v54, %v7703_v55 }
 0x255   : > { %6094 = vrot.lane.b32.xlu0 %v6093_v5, %s9456_s20  ;;  %6089 = vrot.lane.b32.xlu1 %v6088_v10, %s9465_s25 }
 0x259   : > { %6109 = vrot.lane.b32.xlu0 %v6083_v60, %s9479_s26  ;;  %6099 = vrot.lane.b32.xlu1 %v6088_v10, %s9460_s23  ;;  %v6158_v60 = vpack.i.bf16 %v1376_v45, %v1375_v44 }
 0x25d   : > { %6114 = vrot.lane.b32.xlu0 %v6088_v10, %s9463_s28  ;;  %6104 = vrot.lane.b32.xlu1 %v6093_v5, %s9478_s24  ;;  %v7713_v10 = vpop.permute.xlu1 %5894 }
 0x261   : > { %6119 = vrot.lane.b32.xlu0 %v6093_v5, %s9454_s21  ;;  %6124 = vrot.lane.b32.xlu1 %v6123_v14, %s9479_s26  ;;  %v5885_v5 = vpop.permute.xlu0 %5884 }
 0x262   : > { %v5887_v27 = vunpack.i.h.bf16 %v5885_v5  ;;  %v5886_v25 = vunpack.i.l.bf16 %v5885_v5 }
 0x265   : > { %6139 = vrot.lane.b32.xlu0 %v6123_v14, %s9458_s3  ;;  %6129 = vrot.lane.b32.xlu1 %v6128_v24, %s9463_s28  ;;  %v5890_v14 = vpop.permute.xlu0 %5889 }
 0x269   : > { %6144 = vrot.lane.b32.xlu0 %v6128_v24, %s9465_s25  ;;  %6134 = vrot.lane.b32.xlu1 %v6133_v41, %s9454_s21  ;;  %v1380_v24 = vld [vmem:[#allocation2 + $0xe2] sm:$0xff] }
 0x26a   : > { %v6198_v44 = vpack.i.bf16 %v1380_v24, %v1379_v19  ;;  %v5891_v19 = vunpack.i.l.bf16 %v5890_v14 }
 0x26d   : > { %6159 = vrot.lane.b32.xlu0 %v6158_v60, %s9456_s20  ;;  %6149 = vrot.lane.b32.xlu1 %v6148_v61, %s9458_s3 }
 0x271   : > { %6179 = vrot.lane.b32.xlu0 %v6148_v61, %s9479_s26  ;;  %6154 = vrot.lane.b32.xlu1 %v6153_v2, %s9465_s25 }
 0x275   : > { %6184 = vrot.lane.b32.xlu0 %v6153_v2, %s9463_s28  ;;  %6164 = vrot.lane.b32.xlu1 %v6153_v2, %s9460_s23 }
 0x279   : > { %6189 = vrot.lane.b32.xlu0 %v6158_v60, %s9454_s21  ;;  %6169 = vrot.lane.b32.xlu1 %v6158_v60, %s9478_s24  ;;  %s9481_s21 = smov 20  }
 0x27b   : > { %v5915_v37 = vpop.permute.xlu0 %5914  ;;  %v7717_v39 = vpop.permute.xlu1 %5899 }
 0x27d   : > { %6194 = vrot.lane.b32.xlu0 %v6133_v41, %s9456_s20  ;;  %6174 = vrot.lane.b32.xlu1 %v6173_v16, %s9465_s25  ;;  %v1236_v41 = vld [vmem:[#allocation2] sm:$0xff]  ;;  %v5892_v16 = vunpack.i.h.bf16 %v5890_v14 }
 0x27e   : > { %v1893_v8 = vsel %vm1187_vm1, %v1236_v41, %v5886_v25  ;;  %v5916_v41 = vunpack.i.l.bf16 %v5915_v37 }
 0x27f   : > { %v5920_v45 = vpop.permute.xlu0 %5919  ;;  %v7721_v61 = vpop.permute.xlu1 %5904  ;;  %v1910_v48 = vsel %vm1909_vm4, %v1893_v8, %v5891_v19 }
 0x280   : > { %v5922_v19 = vunpack.i.h.bf16 %v5920_v45 }
 0x281   : > { %6199 = vrot.lane.b32.xlu1 %v6198_v44, %s9456_s20  ;;  %v1894_v44 = vsel %vm1187_vm1, %v1237_v20, %v5887_v27  ;;  %s9480_s20 = smov 32  }
 0x282   : > { %v1911_v5 = vsel %vm1909_vm4, %v1894_v44, %v5892_v16  ;;  %v5921_v44 = vunpack.i.l.bf16 %v5920_v45 }
 0x283   : > { %v5925_v0 = vpop.permute.xlu0 %5924  ;;  %v7724_v1 = vpop.permute.xlu1 %5909 }
 0x287   : > { %v7726_v60 = vpop.permute.xlu0 %5934  ;;  %v7728_v2 = vpop.permute.xlu1 %5929 }
 0x28b   : > { %v5950_v11 = vpop.permute.xlu0 %5949  ;;  %v5940_v13 = vpop.permute.xlu1 %5939 }
 0x28c   : > { %v5952_v7 = vunpack.i.h.bf16 %v5950_v11  ;;  %v5951_v3 = vunpack.i.l.bf16 %v5950_v11  ;;  %v5917_v11 = vunpack.i.h.bf16 %v5915_v37  ;;  %v5927_v37 = vunpack.i.h.bf16 %v5925_v0 }
 0x28e   : > { %v1928_v42 = vsel %vm1926_vm5, %v1911_v5, %v5952_v7  ;;  %v1927_v20 = vsel %vm1926_vm5, %v1910_v48, %v5951_v3 }
 0x28f   : > { %v5955_v24 = vpop.permute.xlu0 %5954  ;;  %v5945_v17 = vpop.permute.xlu1 %5944 }
 0x290   : > { %v5957_v62 = vunpack.i.h.bf16 %v5955_v24  ;;  %v5956_v50 = vunpack.i.l.bf16 %v5955_v24 }
 0x292   : > { %v1944_v24 = vsel %vm1943_vm6, %v1927_v20, %v5956_v50  ;;  %v1945_v35 = vsel %vm1943_vm6, %v1928_v42, %v5957_v62  ;;  %v5926_v50 = vunpack.i.l.bf16 %v5925_v0  ;;  %v5942_v42 = vunpack.i.h.bf16 %v5940_v13 }
 0x293   : > { %v5960_v46 = vpop.permute.xlu0 %5959  ;;  %v7734_v14 = vpop.permute.xlu1 %5964  ;;  %v5941_v62 = vunpack.i.l.bf16 %v5940_v13  ;;  %v5947_v20 = vunpack.i.h.bf16 %v5945_v17 }
 0x294   : > { %v5962_v25 = vunpack.i.h.bf16 %v5960_v46  ;;  %v5961_v27 = vunpack.i.l.bf16 %v5960_v46  ;;  %v1896_v13 = vsel %vm1187_vm1, %v7602_v22, %v5942_v42  ;;  %v5907_v22 = vunpack.i.h.bf16 %v7721_v61 }
 0x295   : > { %v1895_v0 = vsel %vm1187_vm1, %v7614_v30, %v5941_v62 }
 0x296   : > { %v1961_v8 = vsel %vm1960_vm7, %v1944_v24, %v5961_v27  ;;  %v1962_v16 = vsel %vm1960_vm7, %v1945_v35, %v5962_v25  ;;  %v5946_v25 = vunpack.i.l.bf16 %v5945_v17  ;;  %v1913_v17 = vsel %vm1909_vm4, %v1896_v13, %v5947_v20 }
 0x297   : > { %v1978_v7 = vsel %vm1977_vm8, %v1961_v8, %v5916_v41  ;;  %v1979_v48 = vsel %vm1977_vm8, %v1962_v16, %v5917_v11  ;;  %v7744_v3 = vpop.permute.xlu0 %5979  ;;  %v7746_v46 = vpop.permute.xlu1 %5969  ;;  %v5902_v16 = vunpack.i.h.bf16 %v7717_v39 }
 0x298   : > { %v1995_v5 = vsel %vm1994_vm9, %v1978_v7, %v5921_v44  ;;  %v1996_v35 = vsel %vm1994_vm9, %v1979_v48, %v5922_v19  ;;  %v1912_v8 = vsel %vm1909_vm4, %v1895_v0, %v5946_v25  ;;  %v5901_v19 = vunpack.i.l.bf16 %v7717_v39 }
 0x299   : > { %v2012_v45 = vsel %vm2011_vm10, %v1995_v5, %v5926_v50  ;;  %v2013_v27 = vsel %vm2011_vm10, %v1996_v35, %v5927_v37  ;;  %v1930_v30 = vsel %vm1926_vm5, %v1913_v17, %v5902_v16  ;;  %v5906_v37 = vunpack.i.l.bf16 %v7721_v61 }
 0x29a   : > { %v2028_v24 = vpack.c.bf16 %v2013_v27, %v2012_v45  ;;  %v1929_v48 = vsel %vm1926_vm5, %v1912_v8, %v5901_v19  ;;  %v1947_v5 = vsel %vm1943_vm6, %v1930_v30, %v5907_v22  ;;  %v5912_v39 = vunpack.i.h.bf16 %v7724_v1 }
 0x29b   : > { %v7752_v11 = vpop.permute.xlu0 %5984  ;;  %v7754_v41 = vpop.permute.xlu1 %5974  ;;  %v1946_v62 = vsel %vm1943_vm6, %v1929_v48, %v5906_v37  ;;  %v5911_v35 = vunpack.i.l.bf16 %v7724_v1 }
 0x29c   : > { %5755 = vmatprep.mubr.msk.bf16.mxu0 %vm2056_vm11, %v2028_v24  ;;  %v1964_v27 = vsel %vm1960_vm7, %v1947_v5, %v5912_v39  ;;  %v5931_v5 = vunpack.i.l.bf16 %v7728_v2 }
 0x29d   : > { %v1963_v45 = vsel %vm1960_vm7, %v1946_v62, %v5911_v35  ;;  %v5932_v62 = vunpack.i.h.bf16 %v7728_v2  ;;  %v5937_v35 = vunpack.i.h.bf16 %v7726_v60 }
 0x29f   : > { %v7765_v44 = vpop.permute.xlu0 %5989  ;;  %v7767_v7 = vpop.permute.xlu1 %5994 }
 0x2a3   : > { %v7773_v50 = vpop.permute.xlu0 %5999  ;;  %v6005_v42 = vpop.permute.xlu1 %6004 }
 0x2a4   : > { %v6007_v20 = vunpack.i.h.bf16 %v6005_v42  ;;  %v6006_v25 = vunpack.i.l.bf16 %v6005_v42 }
 0x2a6   : > { %v1980_v16 = vsel %vm1977_vm8, %v1963_v45, %v6006_v25  ;;  %v1981_v19 = vsel %vm1977_vm8, %v1964_v27, %v6007_v20  ;;  %v5936_v20 = vunpack.i.l.bf16 %v7726_v60  ;;  %v1897_v27 = vsel %vm1187_vm1, %v7550_v51, %v5931_v5 }
 0x2a7   : > { %v6015_v24 = vpop.permute.xlu0 %6014  ;;  %v6010_v0 = vpop.permute.xlu1 %6009 }
 0x2a8   : > { %v6017_v61 = vunpack.i.h.bf16 %v6015_v24  ;;  %v6016_v13 = vunpack.i.l.bf16 %v6015_v24  ;;  %v6012_v8 = vunpack.i.h.bf16 %v6010_v0  ;;  %v6011_v17 = vunpack.i.l.bf16 %v6010_v0 }
 0x2a9   : > { %v1898_v24 = vsel %vm1187_vm1, %v7552_v52, %v5932_v62  ;;  %v1914_v2 = vsel %vm1909_vm4, %v1897_v27, %v5936_v20  ;;  %v5981_v52 = vunpack.i.l.bf16 %v7744_v3 }
 0x2aa   : > { %v1997_v48 = vsel %vm1994_vm9, %v1980_v16, %v6011_v17  ;;  %v1998_v1 = vsel %vm1994_vm9, %v1981_v19, %v6012_v8  ;;  %v1915_v17 = vsel %vm1909_vm4, %v1898_v24, %v5937_v35  ;;  %v5986_v35 = vunpack.i.l.bf16 %v7752_v11 }
 0x2ab   : > { %v2014_v30 = vsel %vm2011_vm10, %v1997_v48, %v6016_v13  ;;  %v2015_v22 = vsel %vm2011_vm10, %v1998_v1, %v6017_v61  ;;  %v6030_v37 = vpop.permute.xlu0 %6029  ;;  %v6020_v42 = vpop.permute.xlu1 %6019 }
 0x2ac   : > { %v2029_v39 = vpack.c.bf16 %v2015_v22, %v2014_v30  ;;  %v6032_v0 = vunpack.i.h.bf16 %v6030_v37  ;;  %v6031_v61 = vunpack.i.l.bf16 %v6030_v37  ;;  %v5982_v30 = vunpack.i.h.bf16 %v7744_v3 }
 0x2ad   : > { %v5992_v3 = vunpack.i.h.bf16 %v7765_v44 }
 0x2ae   : > { %5756 = vmatmul.mubr.msk.bf16.vlgmr.msra.gmra.mrb[16].mxu0 %vm2056_vm11, %v2029_v39  ;;  %v1932_v60 = vsel %vm1926_vm5, %v1915_v17, %v6032_v0  ;;  %v1931_v48 = vsel %vm1926_vm5, %v1914_v2, %v6031_v61  ;;  %v5987_v39 = vunpack.i.h.bf16 %v7752_v11  ;;  %v5991_v0 = vunpack.i.l.bf16 %v7765_v44 }
 0x2af   : > { %v6035_v25 = vpop.permute.xlu0 %6034  ;;  %v6025_v45 = vpop.permute.xlu1 %6024  ;;  %v6022_v61 = vunpack.i.h.bf16 %v6020_v42 }
 0x2b0   : > { %v6037_v13 = vunpack.i.h.bf16 %v6035_v25  ;;  %v6036_v8 = vunpack.i.l.bf16 %v6035_v25  ;;  %v6027_v17 = vunpack.i.h.bf16 %v6025_v45  ;;  %v6026_v11 = vunpack.i.l.bf16 %v6025_v45 }
 0x2b1   : > { %v1900_v44 = vsel %vm1187_vm1, %v7651_v6, %v6022_v61 }
 0x2b2   : > { %v1948_v22 = vsel %vm1943_vm6, %v1931_v48, %v6036_v8  ;;  %v1949_v37 = vsel %vm1943_vm6, %v1932_v60, %v6037_v13  ;;  %v6021_v13 = vunpack.i.l.bf16 %v6020_v42  ;;  %v1917_v45 = vsel %vm1909_vm4, %v1900_v44, %v6027_v17 }
 0x2b3   : > { %v6040_v16 = vpop.permute.xlu0 %6039  ;;  %v7798_v19 = vpop.permute.xlu1 %6044 }
 0x2b4   : > { %v6042_v1 = vunpack.i.h.bf16 %v6040_v16  ;;  %v6041_v51 = vunpack.i.l.bf16 %v6040_v16  ;;  %v1899_v42 = vsel %vm1187_vm1, %v7655_v9, %v6021_v13  ;;  %v5972_v9 = vunpack.i.h.bf16 %v7746_v46 }
 0x2b6   : > { %v1965_v62 = vsel %vm1960_vm7, %v1948_v22, %v6041_v51  ;;  %v1966_v5 = vsel %vm1960_vm7, %v1949_v37, %v6042_v1  ;;  %v5966_v22 = vunpack.i.l.bf16 %v7734_v14 }
 0x2b7   : > { %v1982_v20 = vsel %vm1977_vm8, %v1965_v62, %v5981_v52  ;;  %v1983_v25 = vsel %vm1977_vm8, %v1966_v5, %v5982_v30  ;;  %v7812_v27 = vpop.permute.xlu0 %6059  ;;  %v7814_v24 = vpop.permute.xlu1 %6049  ;;  %v1916_v30 = vsel %vm1909_vm4, %v1899_v42, %v6026_v11  ;;  %v5967_v52 = vunpack.i.h.bf16 %v7734_v14 }
 0x2b8   : > { %v1999_v8 = vsel %vm1994_vm9, %v1982_v20, %v5986_v35  ;;  %v2000_v2 = vsel %vm1994_vm9, %v1983_v25, %v5987_v39  ;;  %v1933_v5 = vsel %vm1926_vm5, %v1916_v30, %v5966_v22  ;;  %v5971_v39 = vunpack.i.l.bf16 %v7746_v46 }
 0x2b9   : > { %v2016_v16 = vsel %vm2011_vm10, %v1999_v8, %v5991_v0  ;;  %v2017_v60 = vsel %vm2011_vm10, %v2000_v2, %v5992_v3  ;;  %v1934_v6 = vsel %vm1926_vm5, %v1917_v45, %v5967_v52  ;;  %v5977_v14 = vunpack.i.h.bf16 %v7754_v41 }
 0x2ba   : > { %v2030_v51 = vpack.c.bf16 %v2017_v60, %v2016_v16  ;;  %v1950_v25 = vsel %vm1943_vm6, %v1933_v5, %v5971_v39  ;;  %v1951_v3 = vsel %vm1943_vm6, %v1934_v6, %v5972_v9  ;;  %v5976_v0 = vunpack.i.l.bf16 %v7754_v41 }
 0x2bb   : > { %v7822_v48 = vpop.permute.xlu0 %6064  ;;  %v7824_v1 = vpop.permute.xlu1 %6054  ;;  %v1968_v2 = vsel %vm1960_vm7, %v1951_v3, %v5977_v14  ;;  %v5997_v9 = vunpack.i.h.bf16 %v7767_v7  ;;  %v5996_v39 = vunpack.i.l.bf16 %v7767_v7 }
 0x2bc   : > { %5759 = vmatprep.mubr.msk.bf16.mxu0 %vm2056_vm11, %v2030_v51  ;;  %v1967_v8 = vsel %vm1960_vm7, %v1950_v25, %v5976_v0  ;;  %v6001_v25 = vunpack.i.l.bf16 %v7773_v50 }
 0x2bf   : > { %v7835_v37 = vpop.permute.xlu0 %6069  ;;  %v7837_v62 = vpop.permute.xlu1 %6074 }
 0x2c3   : > { %v7843_v35 = vpop.permute.xlu0 %6079  ;;  %v6085_v20 = vpop.permute.xlu1 %6084 }
 0x2c4   : > { %v6087_v61 = vunpack.i.h.bf16 %v6085_v20  ;;  %v6086_v13 = vunpack.i.l.bf16 %v6085_v20  ;;  %v6002_v20 = vunpack.i.h.bf16 %v7773_v50  ;;  %v6062_v50 = vunpack.i.h.bf16 %v7812_v27 }
 0x2c6   : > { %v1984_v44 = vsel %vm1977_vm8, %v1967_v8, %v6086_v13  ;;  %v1985_v42 = vsel %vm1977_vm8, %v1968_v2, %v6087_v61  ;;  %v1902_v2 = vsel %vm1187_vm1, %v7629_v49, %v5997_v9 }
 0x2c7   : > { %v6095_v17 = vpop.permute.xlu0 %6094  ;;  %v6090_v11 = vpop.permute.xlu1 %6089 }
 0x2c8   : > { %v6097_v46 = vunpack.i.h.bf16 %v6095_v17  ;;  %v6096_v16 = vunpack.i.l.bf16 %v6095_v17  ;;  %v6092_v60 = vunpack.i.h.bf16 %v6090_v11  ;;  %v6091_v51 = vunpack.i.l.bf16 %v6090_v11 }
 0x2c9   : > { %v1901_v17 = vsel %vm1187_vm1, %v7633_v53, %v5996_v39  ;;  %v1919_v11 = vsel %vm1909_vm4, %v1902_v2, %v6002_v20  ;;  %v6066_v53 = vunpack.i.l.bf16 %v7822_v48 }
 0x2ca   : > { %v2001_v30 = vsel %vm1994_vm9, %v1984_v44, %v6091_v51  ;;  %v2002_v41 = vsel %vm1994_vm9, %v1985_v42, %v6092_v60  ;;  %v1918_v7 = vsel %vm1909_vm4, %v1901_v17, %v6001_v25 }
 0x2cb   : > { %v6110_v45 = vpop.permute.xlu0 %6109  ;;  %v6100_v52 = vpop.permute.xlu1 %6099  ;;  %v2018_v22 = vsel %vm2011_vm10, %v2001_v30, %v6096_v16  ;;  %v2019_v5 = vsel %vm2011_vm10, %v2002_v41, %v6097_v46  ;;  %v6061_v46 = vunpack.i.l.bf16 %v7812_v27  ;;  %v6067_v30 = vunpack.i.h.bf16 %v7822_v48 }
 0x2cc   : > { %v2031_v6 = vpack.c.bf16 %v2019_v5, %v2018_v22  ;;  %v6112_v0 = vunpack.i.h.bf16 %v6110_v45  ;;  %v6111_v61 = vunpack.i.l.bf16 %v6110_v45  ;;  %v6102_v22 = vunpack.i.h.bf16 %v6100_v52 }
 0x2cd   : > { %v6101_v5 = vunpack.i.l.bf16 %v6100_v52  ;;  %v6072_v48 = vunpack.i.h.bf16 %v7835_v37 }
 0x2ce   : > { %5760 = vmatmul.mubr.msk.bf16.gmra.mrb[20].mxu0 %vm2056_vm11, %v2031_v6  ;;  %v1935_v51 = vsel %vm1926_vm5, %v1918_v7, %v6111_v61  ;;  %v1936_v44 = vsel %vm1926_vm5, %v1919_v11, %v6112_v0  ;;  %v6071_v61 = vunpack.i.l.bf16 %v7835_v37 }
 0x2cf   : > { %v6115_v3 = vpop.permute.xlu0 %6114  ;;  %v6105_v14 = vpop.permute.xlu1 %6104 }
 0x2d0   : > { %v6117_v13 = vunpack.i.h.bf16 %v6115_v3  ;;  %v6116_v8 = vunpack.i.l.bf16 %v6115_v3  ;;  %v6107_v9 = vunpack.i.h.bf16 %v6105_v14  ;;  %v6106_v39 = vunpack.i.l.bf16 %v6105_v14 }
 0x2d1   : > { %v1903_v14 = vsel %vm1187_vm1, %v7683_v58, %v6101_v5  ;;  %v6076_v58 = vunpack.i.l.bf16 %v7837_v62 }
 0x2d2   : > { %v1952_v41 = vsel %vm1943_vm6, %v1935_v51, %v6116_v8  ;;  %v1953_v45 = vsel %vm1943_vm6, %v1936_v44, %v6117_v13  ;;  %v1904_v8 = vsel %vm1187_vm1, %v7679_v57, %v6102_v22  ;;  %v1920_v7 = vsel %vm1909_vm4, %v1903_v14, %v6106_v39 }
 0x2d3   : > { %v6120_v16 = vpop.permute.xlu0 %6119  ;;  %v7870_v60 = vpop.permute.xlu1 %6124  ;;  %v1921_v11 = vsel %vm1909_vm4, %v1904_v8, %v6107_v9  ;;  %v6046_v57 = vunpack.i.l.bf16 %v7798_v19  ;;  %v6056_v9 = vunpack.i.l.bf16 %v7824_v1  ;;  %v1905_v39 = vsel %vm1187_vm1, %v7669_v36, %v6076_v58 }
 0x2d4   : > { %v6122_v42 = vunpack.i.h.bf16 %v6120_v16  ;;  %v6121_v49 = vunpack.i.l.bf16 %v6120_v16  ;;  %v6047_v16 = vunpack.i.h.bf16 %v7798_v19 }
 0x2d5   : > { %v1937_v51 = vsel %vm1926_vm5, %v1920_v7, %v6046_v57 }
 0x2d6   : > { %v1969_v27 = vsel %vm1960_vm7, %v1952_v41, %v6121_v49  ;;  %v1970_v6 = vsel %vm1960_vm7, %v1953_v45, %v6122_v42  ;;  %v1938_v44 = vsel %vm1926_vm5, %v1921_v11, %v6047_v16  ;;  %v6052_v42 = vunpack.i.h.bf16 %v7814_v24 }
 0x2d7   : > { %v1986_v20 = vsel %vm1977_vm8, %v1969_v27, %v6061_v46  ;;  %v1987_v25 = vsel %vm1977_vm8, %v1970_v6, %v6062_v50  ;;  %v7882_v3 = vpop.permute.xlu0 %6139  ;;  %v7884_v0 = vpop.permute.xlu1 %6129  ;;  %v6051_v49 = vunpack.i.l.bf16 %v7814_v24  ;;  %v6057_v6 = vunpack.i.h.bf16 %v7824_v1 }
 0x2d8   : > { %v2003_v52 = vsel %vm1994_vm9, %v1986_v20, %v6066_v53  ;;  %v2004_v13 = vsel %vm1994_vm9, %v1987_v25, %v6067_v30  ;;  %v6077_v30 = vunpack.i.h.bf16 %v7837_v62  ;;  %v6081_v53 = vunpack.i.l.bf16 %v7843_v35 }
 0x2d9   : > { %v2020_v2 = vsel %vm2011_vm10, %v2003_v52, %v6071_v61  ;;  %v2021_v17 = vsel %vm2011_vm10, %v2004_v13, %v6072_v48  ;;  %v1954_v5 = vsel %vm1943_vm6, %v1937_v51, %v6051_v49  ;;  %v1955_v27 = vsel %vm1943_vm6, %v1938_v44, %v6052_v42 }
 0x2da   : > { %v2032_v46 = vpack.c.bf16 %v2021_v17, %v2020_v2  ;;  %v6082_v24 = vunpack.i.h.bf16 %v7843_v35  ;;  %v5897_v62 = vunpack.i.h.bf16 %v7713_v10  ;;  %v5896_v20 = vunpack.i.l.bf16 %v7713_v10  ;;  %v2276_v10 = vld [vmem:[#allocation2 + $0x1] sm:$0xff] }
 0x2db   : > { %v7898_v50 = vpop.permute.xlu0 %6144  ;;  %v7900_v37 = vpop.permute.xlu1 %6134  ;;  %v1906_v25 = vsel %vm1187_vm1, %v7665_v34, %v6077_v30  ;;  %v1922_v48 = vsel %vm1909_vm4, %v1905_v39, %v6081_v53  ;;  %v1971_v13 = vsel %vm1960_vm7, %v1954_v5, %v6056_v9  ;;  %v1972_v1 = vsel %vm1960_vm7, %v1955_v27, %v6057_v6 }
 0x2dc   : > { %5763 = vmatprep.mubr.msk.bf16.mxu0 %vm2056_vm11, %v2032_v46  ;;  %v1923_v7 = vsel %vm1909_vm4, %v1906_v25, %v6082_v24  ;;  %v6127_v34 = vunpack.i.h.bf16 %v7870_v60  ;;  %v6126_v49 = vunpack.i.l.bf16 %v7870_v60  ;;  %v6142_v30 = vunpack.i.h.bf16 %v7882_v3 }
 0x2dd   : > { %v6141_v53 = vunpack.i.l.bf16 %v7882_v3  ;;  %v6132_v27 = vunpack.i.h.bf16 %v7884_v0  ;;  %v6131_v6 = vunpack.i.l.bf16 %v7884_v0  ;;  %v6147_v9 = vunpack.i.h.bf16 %v7898_v50 }
 0x2de   : > { %v6146_v39 = vunpack.i.l.bf16 %v7898_v50  ;;  %v6137_v24 = vunpack.i.h.bf16 %v7900_v37  ;;  %v6136_v60 = vunpack.i.l.bf16 %v7900_v37 }
 0x2df   : > { %v6160_v41 = vpop.permute.xlu0 %6159  ;;  %v6150_v45 = vpop.permute.xlu1 %6149 }
 0x2e0   : > { %v6152_v22 = vunpack.i.h.bf16 %v6150_v45  ;;  %v6151_v19 = vunpack.i.l.bf16 %v6150_v45  ;;  %v6162_v36 = vunpack.i.h.bf16 %v6160_v41  ;;  %v6161_v2 = vunpack.i.l.bf16 %v6160_v41 }
 0x2e2   : > { %v1988_v35 = vsel %vm1977_vm8, %v1971_v13, %v6151_v19  ;;  %v1989_v17 = vsel %vm1977_vm8, %v1972_v1, %v6152_v22 }
 0x2e3   : > { %v6180_v61 = vpop.permute.xlu0 %6179  ;;  %v6155_v52 = vpop.permute.xlu1 %6154 }
 0x2e4   : > { %v6157_v8 = vunpack.i.h.bf16 %v6155_v52  ;;  %v6156_v14 = vunpack.i.l.bf16 %v6155_v52  ;;  %v6182_v16 = vunpack.i.h.bf16 %v6180_v61  ;;  %v6181_v57 = vunpack.i.l.bf16 %v6180_v61 }
 0x2e6   : > { %v2005_v11 = vsel %vm1994_vm9, %v1988_v35, %v6156_v14  ;;  %v2006_v46 = vsel %vm1994_vm9, %v1989_v17, %v6157_v8  ;;  %v1939_v25 = vsel %vm1926_vm5, %v1922_v48, %v6181_v57  ;;  %v1940_v3 = vsel %vm1926_vm5, %v1923_v7, %v6182_v16 }
 0x2e7   : > { %v6185_v58 = vpop.permute.xlu0 %6184  ;;  %v6165_v51 = vpop.permute.xlu1 %6164  ;;  %v2022_v44 = vsel %vm2011_vm10, %v2005_v11, %v6161_v2  ;;  %v2023_v42 = vsel %vm2011_vm10, %v2006_v46, %v6162_v36 }
 0x2e8   : > { %v6187_v41 = vunpack.i.h.bf16 %v6185_v58  ;;  %v6186_v45 = vunpack.i.l.bf16 %v6185_v58  ;;  %v6167_v22 = vunpack.i.h.bf16 %v6165_v51  ;;  %v6166_v19 = vunpack.i.l.bf16 %v6165_v51 }
 0x2e9   : > { %v2033_v5 = vpack.c.bf16 %v2023_v42, %v2022_v44 }
 0x2ea   : > { %v1956_v14 = vsel %vm1943_vm6, %v1939_v25, %v6186_v45  ;;  %v1957_v50 = vsel %vm1943_vm6, %v1940_v3, %v6187_v41  ;;  %v1908_v36 = vsel %vm1187_vm1, %v7699_v54, %v6167_v22  ;;  %v1907_v37 = vsel %vm1187_vm1, %v7703_v55, %v6166_v19 }
 0x2eb   : > { %5764 = vmatmul.mubr.msk.bf16.gmra.mrb[24].mxu0 %vm2056_vm11, %v2033_v5  ;;  %v6190_v61 = vpop.permute.xlu0 %6189  ;;  %v6170_v52 = vpop.permute.xlu1 %6169 }
 0x2ec   : > { %v6192_v13 = vunpack.i.h.bf16 %v6190_v61  ;;  %v6191_v1 = vunpack.i.l.bf16 %v6190_v61  ;;  %v6172_v8 = vunpack.i.h.bf16 %v6170_v52  ;;  %v6171_v0 = vunpack.i.l.bf16 %v6170_v52  ;;  %v2292_v52 = vld [vmem:[#allocation2 + $0x2] sm:$0xff] }
 0x2ee   : > { %v1973_v48 = vsel %vm1960_vm7, %v1956_v14, %v6191_v1  ;;  %v1974_v2 = vsel %vm1960_vm7, %v1957_v50, %v6192_v13  ;;  %v1924_v35 = vsel %vm1909_vm4, %v1907_v37, %v6171_v0  ;;  %v1925_v17 = vsel %vm1909_vm4, %v1908_v36, %v6172_v8  ;;  %v2293_v13 = vld [vmem:[#allocation2 + $0xa] sm:$0xff]  ;;  %v2370_v1 = vld [vmem:[#allocation2 + $0xd8] sm:$0xff]  ;;  %v2371_v8 = vld [vmem:[#allocation2 + $0xe0] sm:$0xff] }
 0x2ef   : > { %v1990_v7 = vsel %vm1977_vm8, %v1973_v48, %v6141_v53  ;;  %v1991_v11 = vsel %vm1977_vm8, %v1974_v2, %v6142_v30  ;;  %v1941_v46 = vsel %vm1926_vm5, %v1924_v35, %v6126_v49  ;;  %v1942_v16 = vsel %vm1926_vm5, %v1925_v17, %v6127_v34  ;;  %v6195_v54 = vpop.permute.xlu0 %6194  ;;  %v6175_v57 = vpop.permute.xlu1 %6174  ;;  %v7986_v50 = vld [vmem:[%s9420_s6] ss:$0 sm:$0xff] }
 0x2f0   : > { %v1958_v55 = vsel %vm1943_vm6, %v1941_v46, %v6131_v6  ;;  %v1959_v58 = vsel %vm1943_vm6, %v1942_v16, %v6132_v27  ;;  %v6197_v51 = vunpack.i.h.bf16 %v6195_v54  ;;  %v6196_v44 = vunpack.i.l.bf16 %v6195_v54  ;;  %v7991_v37 = vld [vmem:[%s9421_s7] ss:$0 sm:$0xff] }
 0x2f1   : > { %v2007_v42 = vsel %vm1994_vm9, %v1990_v7, %v6146_v39  ;;  %v2008_v41 = vsel %vm1994_vm9, %v1991_v11, %v6147_v9  ;;  %v6177_v45 = vunpack.i.h.bf16 %v6175_v57  ;;  %v6176_v53 = vunpack.i.l.bf16 %v6175_v57 }
 0x2f2   : > { %v2024_v30 = vsel %vm2011_vm10, %v2007_v42, %v6196_v44  ;;  %v2025_v49 = vsel %vm2011_vm10, %v2008_v41, %v6197_v51  ;;  %v1975_v34 = vsel %vm1960_vm7, %v1958_v55, %v6136_v60  ;;  %v1976_v22 = vsel %vm1960_vm7, %v1959_v58, %v6137_v24 }
 0x2f3   : > { %v1992_v19 = vsel %vm1977_vm8, %v1975_v34, %v5896_v20  ;;  %v1993_v5 = vsel %vm1977_vm8, %v1976_v22, %v5897_v62  ;;  %v6200_v27 = vpop.permute.xlu1 %6199  ;;  %v2034_v6 = vpack.c.bf16 %v2025_v49, %v2024_v30  ;;  %v2277_v20 = vld [vmem:[#allocation2 + $0x9] sm:$0xff]  ;;  %v6208_v0 = vpack.i.bf16 %v2293_v13, %v2292_v52 }
 0x2f4   : > { %v6202_v9 = vunpack.i.h.bf16 %v6200_v27  ;;  %v6201_v39 = vunpack.i.l.bf16 %v6200_v27  ;;  %v2009_v25 = vsel %vm1994_vm9, %v1992_v19, %v6176_v53  ;;  %v2010_v3 = vsel %vm1994_vm9, %v1993_v5, %v6177_v45 }
 0x2f5   : > { %5767 = vmatprep.mubr.msk.bf16.mxu0 %vm2056_vm11, %v2034_v6  ;;  %v6203_v62 = vpack.i.bf16 %v2277_v20, %v2276_v10  ;;  %v6213_v14 = vpack.i.bf16 %v2371_v8, %v2370_v1 }
 0x2f6   : > { %v2026_v24 = vsel %vm2011_vm10, %v2009_v25, %v6201_v39  ;;  %v2027_v60 = vsel %vm2011_vm10, %v2010_v3, %v6202_v9 }
 0x2f7   : > { %v2035_v61 = vpack.c.bf16 %v2027_v60, %v2026_v24  ;;  %6204 = vrot.lane.b32.xlu0 %v6203_v62, %s9460_s23  ;;  %6214 = vrot.lane.b32.xlu1 %v6213_v14, %s9458_s3 }
 0x2f9   : > { %5768 = vmatmul.mubr.msk.bf16.gmra.mrb[28].mxu0 %vm2056_vm11, %v2035_v61 }
 0x2fb   : > { %6209 = vrot.lane.b32.xlu0 %v6208_v0, %s9478_s24 }
 0x381   : > { %v5757_v36 = vpop.f32.mrb[16].mxu0 }
 0x382   : > { %v2191_v48 = vmul.f32 %v5757_v36, %v7986_v50  ;;  %v2119_v2 = vpop.f32.mrb[17].mxu0 }
 0x383   : > { %v2189_v35 = vmul.f32 %v7986_v50, %v2119_v2  ;;  %v5758_v17 = vpop.f32.mrb[18].mxu0 }
 0x384   : > { %v2214_v7 = vadd.f32 %v7991_v37, %v2191_v48  ;;  %v2192_v11 = vmul.f32 %v5758_v17, %v7986_v50  ;;  %v2122_v46 = vpop.f32.mrb[19].mxu0 }
 0x385   : > { %v2212_v16 = vadd.f32 %v7991_v37, %v2189_v35  ;;  %v2190_v54 = vmul.f32 %v7986_v50, %v2122_v46 }
 0x386   : > { %v2230_v57 = vmax.f32 %v2214_v7, 0.0  ;;  %v2215_v55 = vadd.f32 %v7991_v37, %v2192_v11  ;;  %v7182_v7 = vld [vmem:[%s9422_s8] sm:$0xff]  }
 0x387   : > { %v2228_v58 = vmax.f32 %v2212_v16, 0.0  ;;  %v2213_v51 = vadd.f32 %v7991_v37, %v2190_v54  ;;  %5771 = vmatprep.subr.bf16.mxu1 %v7182_v7 }
 0x388   : > { %2246 = vst.msk [vmem:[#allocation2 + $0x31] sm:$0xff] %vm1187_vm1, %v2230_v57  ;;  %v2231_v44 = vmax.f32 %v2215_v55, 0.0  ;;  %5772 = vmatpush3.bf16.msra.mxu1 %v7182_v7 }
 0x389   : > { %2244 = vst.msk [vmem:[#allocation2 + $0x19] sm:$0xff] %vm1187_vm1, %v2228_v58  ;;  %v2229_v42 = vmax.f32 %v2213_v51, 0.0  ;;  %v7183_v51 = vld [vmem:[%s9422_s8 + $0x8] sm:$0xff]  }
 0x38a   : > { %2247 = vst.msk [vmem:[#allocation2 + $0x39] sm:$0xff] %vm1187_vm1, %v2231_v44  ;;  %5773 = vmatprep.subr.bf16.mxu1 %v7183_v51 }
 0x38b   : > { %2245 = vst.msk [vmem:[#allocation2 + $0x21] sm:$0xff] %vm1187_vm1, %v2229_v42 }
 0x38c   : > { %5774 = vmatpush3.bf16.msra.mxu1 %v7183_v51 }
 0x38f   : > { %v8005_v41 = vld [vmem:[#allocation2 + $0x30] sm:$0xff] }
 0x390   : > { %v2372_v49 = vld [vmem:[#allocation2 + $0x31] sm:$0xff]  ;;  %v2278_v39 = vld [vmem:[#allocation2 + $0x19] sm:$0xff] }
 0x391   : > { %v8007_v45 = vld [vmem:[#allocation2 + $0x38] sm:$0xff] }
 0x392   : > { %v6233_v53 = vpack.i.bf16 %v8007_v45, %v8005_v41  ;;  %v2373_v30 = vld [vmem:[#allocation2 + $0x39] sm:$0xff]  ;;  %v2279_v6 = vld [vmem:[#allocation2 + $0x21] sm:$0xff] }
 0x393   : > { %v6238_v34 = vpack.i.bf16 %v2373_v30, %v2372_v49  ;;  %v2388_v22 = vld [vmem:[#allocation2 + $0x32] sm:$0xff]  ;;  %v2389_v19 = vld [vmem:[#allocation2 + $0x3a] sm:$0xff]  ;;  %v6258_v24 = vpack.i.bf16 %v2279_v6, %v2278_v39  ;;  %v2295_v20 = vld [vmem:[#allocation2 + $0x22] sm:$0xff] }
 0x394   : > { %6234 = vrot.lane.b32.xlu0 %v6233_v53, %s9458_s3  ;;  %6219 = vrot.lane.b32.xlu1 %v6233_v53, %s9479_s26  ;;  %v6243_v5 = vpack.i.bf16 %v2389_v19, %v2388_v22  ;;  %v8017_v27 = vld [vmem:[#allocation2 + $0x20] sm:$0xff]  ;;  %v8021_v9 = vld [vmem:[#allocation2 + $0x18] sm:$0xff]  ;;  %v7184_v49 = vld [vmem:[%s9422_s8 + $0x10] ss:$0 sps:$4 sm:$0x33]  }
 0x395   : > { %v6268_v3 = vpack.i.bf16 %v8017_v27, %v8021_v9  ;;  %v2294_v10 = vld [vmem:[#allocation2 + $0x1a] sm:$0xff]  ;;  %5858 = vmatprep.subr.msk.bf16.mxu1 %vm2081_vm3, %v7184_v49 }
 0x396   : > { %v6263_v36 = vpack.i.bf16 %v2295_v20, %v2294_v10 }
 0x398   : > { %6239 = vrot.lane.b32.xlu0 %v6238_v34, %s9465_s25  ;;  %6224 = vrot.lane.b32.xlu1 %v6238_v34, %s9463_s28 }
 0x39c   : > { %6244 = vrot.lane.b32.xlu0 %v6243_v5, %s9480_s20  ;;  %6229 = vrot.lane.b32.xlu1 %v6243_v5, %s9481_s21 }
 0x3a0   : > { %6254 = vrot.lane.b32.xlu0 %v6243_v5, %s9478_s24  ;;  %6249 = vrot.lane.b32.xlu1 %v6238_v34, %s9460_s23  ;;  %v3097_v5 = vsel %vm2081_vm3, %v7184_v49, 0 }
 0x3a1   : > { %v5761_v25 = vpop.f32.mrb[20].mxu0  ;;  %5776 = vmatpush3.bf16.msra.mxu1 %v3097_v5 }
 0x3a2   : > { %v2195_v60 = vmul.f32 %v5761_v25, %v7986_v50  ;;  %v2135_v61 = vpop.f32.mrb[21].mxu0 }
 0x3a3   : > { %v2193_v62 = vmul.f32 %v7986_v50, %v2135_v61  ;;  %v5762_v52 = vpop.f32.mrb[22].mxu0 }
 0x3a4   : > { %6269 = vrot.lane.b32.xlu0 %v6268_v3, %s9479_s26  ;;  %6259 = vrot.lane.b32.xlu1 %v6258_v24, %s9460_s23  ;;  %v2218_v13 = vadd.f32 %v7991_v37, %v2195_v60  ;;  %v2196_v1 = vmul.f32 %v5762_v52, %v7986_v50  ;;  %v2138_v8 = vpop.f32.mrb[23].mxu0  ;;  %s9482_s23 = smov 4  }
 0x3a5   : > { %v2216_v0 = vadd.f32 %v7991_v37, %v2193_v62  ;;  %v2194_v14 = vmul.f32 %v7986_v50, %v2138_v8 }
 0x3a6   : > { %v2234_v48 = vmax.f32 %v2218_v13, 0.0  ;;  %v2219_v2 = vadd.f32 %v7991_v37, %v2196_v1 }
 0x3a7   : > { %v2232_v35 = vmax.f32 %v2216_v0, 0.0  ;;  %v2217_v17 = vadd.f32 %v7991_v37, %v2194_v14 }
 0x3a8   : > { %6274 = vrot.lane.b32.xlu0 %v6258_v24, %s9463_s28  ;;  %6264 = vrot.lane.b32.xlu1 %v6263_v36, %s9478_s24  ;;  %2250 = vst.msk [vmem:[#allocation2 + $0x61] sm:$0xff] %vm1187_vm1, %v2234_v48  ;;  %v2235_v11 = vmax.f32 %v2219_v2, 0.0 }
 0x3a9   : > { %2248 = vst.msk [vmem:[#allocation2 + $0x49] sm:$0xff] %vm1187_vm1, %v2232_v35  ;;  %v2233_v46 = vmax.f32 %v2217_v17, 0.0 }
 0x3aa   : > { %2251 = vst.msk [vmem:[#allocation2 + $0x69] sm:$0xff] %vm1187_vm1, %v2235_v11 }
 0x3ab   : > { %2249 = vst.msk [vmem:[#allocation2 + $0x51] sm:$0xff] %vm1187_vm1, %v2233_v46 }
 0x3ac   : > { %6279 = vrot.lane.b32.xlu0 %v6263_v36, %s9481_s21 }
 0x3af   : > { %v8045_v16 = vld [vmem:[#allocation2 + $0x60] sm:$0xff] }
 0x3b0   : > { %v2376_v58 = vld [vmem:[#allocation2 + $0x61] sm:$0xff]  ;;  %v2374_v17 = vld [vmem:[#allocation2 + $0x49] sm:$0xff] }
 0x3b1   : > { %v8047_v54 = vld [vmem:[#allocation2 + $0x68] sm:$0xff] }
 0x3b2   : > { %v6298_v57 = vpack.i.bf16 %v8047_v54, %v8045_v16  ;;  %v2377_v55 = vld [vmem:[#allocation2 + $0x69] sm:$0xff]  ;;  %v2391_v3 = vld [vmem:[#allocation2 + $0x52] sm:$0xff] }
 0x3b3   : > { %v6303_v44 = vpack.i.bf16 %v2377_v55, %v2376_v58  ;;  %v2392_v42 = vld [vmem:[#allocation2 + $0x62] sm:$0xff]  ;;  %v2393_v53 = vld [vmem:[#allocation2 + $0x6a] sm:$0xff] }
 0x3b4   : > { %6299 = vrot.lane.b32.xlu0 %v6298_v57, %s9458_s3  ;;  %6284 = vrot.lane.b32.xlu1 %v6298_v57, %s9479_s26  ;;  %v6308_v30 = vpack.i.bf16 %v2393_v53, %v2392_v42  ;;  %v2390_v25 = vld [vmem:[#allocation2 + $0x4a] sm:$0xff]  ;;  %s9483_s3 = smov 24  }
 0x3b5   : > { %v8067_v24 = vld [vmem:[#allocation2 + $0x50] sm:$0xff]  ;;  %v8075_v52 = vld [vmem:[#allocation2 + $0x48] sm:$0xff]  ;;  %v6333_v8 = vpack.i.bf16 %v2391_v3, %v2390_v25 }
 0x3b6   : > { %v6323_v0 = vpack.i.bf16 %v8067_v24, %v8075_v52  ;;  %v2375_v48 = vld [vmem:[#allocation2 + $0x51] sm:$0xff] }
 0x3b7   : > { %v6328_v7 = vpack.i.bf16 %v2375_v48, %v2374_v17 }
 0x3b8   : > { %6304 = vrot.lane.b32.xlu0 %v6303_v44, %s9465_s25  ;;  %6289 = vrot.lane.b32.xlu1 %v6303_v44, %s9463_s28 }
 0x3bc   : > { %6309 = vrot.lane.b32.xlu0 %v6308_v30, %s9480_s20  ;;  %6294 = vrot.lane.b32.xlu1 %v6308_v30, %s9481_s21 }
 0x3be   : > { %v5765_v34 = vpop.f32.mrb[24].mxu0 }
 0x3bf   : > { %v2199_v22 = vmul.f32 %v5765_v34, %v7986_v50  ;;  %v2151_v19 = vpop.f32.mrb[25].mxu0 }
 0x3c0   : > { %v2197_v6 = vmul.f32 %v7986_v50, %v2151_v19  ;;  %v5766_v39 = vpop.f32.mrb[26].mxu0  ;;  %6319 = vrot.lane.b32.xlu0 %v6308_v30, %s9478_s24  ;;  %6314 = vrot.lane.b32.xlu1 %v6303_v44, %s9482_s23 }
 0x3c1   : > { %v2222_v60 = vadd.f32 %v7991_v37, %v2199_v22  ;;  %v2200_v61 = vmul.f32 %v5766_v39, %v7986_v50  ;;  %v2154_v10 = vpop.f32.mrb[27].mxu0 }
 0x3c2   : > { %v2220_v20 = vadd.f32 %v7991_v37, %v2197_v6  ;;  %v2198_v62 = vmul.f32 %v7986_v50, %v2154_v10 }
 0x3c3   : > { %v2238_v13 = vmax.f32 %v2222_v60, 0.0  ;;  %v2223_v1 = vadd.f32 %v7991_v37, %v2200_v61 }
 0x3c4   : > { %v2236_v14 = vmax.f32 %v2220_v20, 0.0  ;;  %v2221_v36 = vadd.f32 %v7991_v37, %v2198_v62  ;;  %6334 = vrot.lane.b32.xlu0 %v6333_v8, %s9480_s20  ;;  %6324 = vrot.lane.b32.xlu1 %v6323_v0, %s9483_s3 }
 0x3c5   : > { %2254 = vst.msk [vmem:[#allocation2 + $0x91] sm:$0xff] %vm1187_vm1, %v2238_v13  ;;  %v2239_v2 = vmax.f32 %v2223_v1, 0.0 }
 0x3c6   : > { %2252 = vst.msk [vmem:[#allocation2 + $0x79] sm:$0xff] %vm1187_vm1, %v2236_v14  ;;  %v2237_v35 = vmax.f32 %v2221_v36, 0.0 }
 0x3c7   : > { %2255 = vst.msk [vmem:[#allocation2 + $0x99] sm:$0xff] %vm1187_vm1, %v2239_v2 }
 0x3c8   : > { %2253 = vst.msk [vmem:[#allocation2 + $0x81] sm:$0xff] %vm1187_vm1, %v2237_v35  ;;  %6329 = vrot.lane.b32.xlu1 %v6328_v7, %s9465_s25  ;;  %6349 = vrot.lane.b32.xlu0 %v6323_v0, %s9479_s26 }
 0x3cc   : > { %v5769_v11 = vpop.f32.mrb[28].mxu0  ;;  %6354 = vrot.lane.b32.xlu0 %v6328_v7, %s9463_s28  ;;  %6339 = vrot.lane.b32.xlu1 %v6328_v7, %s9482_s23  ;;  %v8103_v6 = vld [vmem:[#allocation2 + $0x90] sm:$0xff] }
 0x3cd   : > { %v2203_v46 = vmul.f32 %v5769_v11, %v7986_v50  ;;  %v2167_v57 = vpop.f32.mrb[29].mxu0  ;;  %v2378_v48 = vld [vmem:[#allocation2 + $0x79] sm:$0xff] }
 0x3ce   : > { %v2201_v55 = vmul.f32 %v7986_v50, %v2167_v57  ;;  %v5770_v58 = vpop.f32.mrb[30].mxu0  ;;  %v8097_v49 = vld [vmem:[#allocation2 + $0x98] sm:$0xff] }
 0x3cf   : > { %v2226_v51 = vadd.f32 %v7991_v37, %v2203_v46  ;;  %v2204_v44 = vmul.f32 %v5770_v58, %v7986_v50  ;;  %v2170_v42 = vpop.f32.mrb[31].mxu0  ;;  %v2381_v3 = vld [vmem:[#allocation2 + $0x99] sm:$0xff]  ;;  %v2395_v13 = vld [vmem:[#allocation2 + $0x82] sm:$0xff] }
 0x3d0   : > { %v2224_v53 = vadd.f32 %v7991_v37, %v2201_v55  ;;  %v2202_v30 = vmul.f32 %v7986_v50, %v2170_v42  ;;  %6359 = vrot.lane.b32.xlu0 %v6333_v8, %s9481_s21  ;;  %6344 = vrot.lane.b32.xlu1 %v6333_v8, %s9478_s24  ;;  %v6378_v50 = vpack.i.bf16 %v8097_v49, %v8103_v6  ;;  %v2396_v61 = vld [vmem:[#allocation2 + $0x92] sm:$0xff]  ;;  %v2397_v10 = vld [vmem:[#allocation2 + $0x9a] sm:$0xff]  ;;  %v6205_v42 = vpop.permute.xlu0 %6204 }
 0x3d1   : > { %v2242_v34 = vmax.f32 %v2226_v51, 0.0  ;;  %v2227_v22 = vadd.f32 %v7991_v37, %v2204_v44  ;;  %v6388_v20 = vpack.i.bf16 %v2397_v10, %v2396_v61  ;;  %v2394_v62 = vld [vmem:[#allocation2 + $0x7a] sm:$0xff] }
 0x3d2   : > { %v2240_v19 = vmax.f32 %v2224_v53, 0.0  ;;  %v2225_v5 = vadd.f32 %v7991_v37, %v2202_v30  ;;  %v2380_v37 = vld [vmem:[#allocation2 + $0x91] sm:$0xff]  ;;  %v8117_v1 = vld [vmem:[#allocation2 + $0x80] sm:$0xff]  ;;  %v6413_v0 = vpack.i.bf16 %v2395_v13, %v2394_v62 }
 0x3d3   : > { %2258 = vst.msk [vmem:[#allocation2 + $0xc1] sm:$0xff] %vm1187_vm1, %v2242_v34  ;;  %v2243_v39 = vmax.f32 %v2227_v22, 0.0  ;;  %v6383_v60 = vpack.i.bf16 %v2381_v3, %v2380_v37  ;;  %v8121_v8 = vld [vmem:[#allocation2 + $0x78] sm:$0xff]  ;;  %v2379_v36 = vld [vmem:[#allocation2 + $0x81] sm:$0xff] }
 0x3d4   : > { %2256 = vst.msk [vmem:[#allocation2 + $0xa9] sm:$0xff] %vm1187_vm1, %v2240_v19  ;;  %v2241_v25 = vmax.f32 %v2225_v5, 0.0  ;;  %6379 = vrot.lane.b32.xlu0 %v6378_v50, %s9483_s3  ;;  %6364 = vrot.lane.b32.xlu1 %v6378_v50, %s9479_s26  ;;  %v6403_v14 = vpack.i.bf16 %v8117_v1, %v8121_v8  ;;  %v6408_v2 = vpack.i.bf16 %v2379_v36, %v2378_v48  ;;  %v6210_v5 = vpop.permute.xlu0 %6209  ;;  %v2386_v10 = vld [vmem:[#allocation2 + $0xd9] sm:$0xff]  ;;  %v2403_v36 = vld [vmem:[#allocation2 + $0xe2] sm:$0xff] }
 0x3d5   : > { %2259 = vst.msk [vmem:[#allocation2 + $0xc9] sm:$0xff] %vm1187_vm1, %v2243_v39  ;;  %v8145_v39 = vpop.permute.xlu1 %6214 }
 0x3d6   : > { %2257 = vst.msk [vmem:[#allocation2 + $0xb1] sm:$0xff] %vm1187_vm1, %v2241_v25 }
 0x3d8   : > { %6384 = vrot.lane.b32.xlu0 %v6383_v60, %s9465_s25  ;;  %6369 = vrot.lane.b32.xlu1 %v6383_v60, %s9463_s28 }
 0x3da   : > { %v2368_v17 = vld [vmem:[#allocation2 + $0xc0] sm:$0xff] }
 0x3db   : > { %v2384_v46 = vld [vmem:[#allocation2 + $0xc1] sm:$0xff]  ;;  %v2382_v25 = vld [vmem:[#allocation2 + $0xa9] sm:$0xff] }
 0x3dc   : > { %6389 = vrot.lane.b32.xlu0 %v6388_v20, %s9480_s20  ;;  %6374 = vrot.lane.b32.xlu1 %v6388_v20, %s9481_s21  ;;  %v2369_v35 = vld [vmem:[#allocation2 + $0xc8] sm:$0xff] }
 0x3dd   : > { %v6458_v7 = vpack.i.bf16 %v2369_v35, %v2368_v17  ;;  %v2385_v11 = vld [vmem:[#allocation2 + $0xc9] sm:$0xff]  ;;  %v2399_v44 = vld [vmem:[#allocation2 + $0xb2] sm:$0xff] }
 0x3de   : > { %v6463_v57 = vpack.i.bf16 %v2385_v11, %v2384_v46  ;;  %v2354_v55 = vld [vmem:[#allocation2 + $0xc2] sm:$0xff]  ;;  %v2355_v58 = vld [vmem:[#allocation2 + $0xca] sm:$0xff]  ;;  %v6206_v11 = vunpack.i.l.bf16 %v6205_v42 }
 0x3df   : > { %v2398_v51 = vld [vmem:[#allocation2 + $0xaa] sm:$0xff]  ;;  %v6453_v53 = vpack.i.bf16 %v2355_v58, %v2354_v55  ;;  %v6212_v58 = vunpack.i.h.bf16 %v6210_v5 }
 0x3e0   : > { %6399 = vrot.lane.b32.xlu0 %v6388_v20, %s9478_s24  ;;  %6394 = vrot.lane.b32.xlu1 %v6383_v60, %s9482_s23  ;;  %v6478_v30 = vpack.i.bf16 %v2399_v44, %v2398_v51  ;;  %v8137_v34 = vld [vmem:[#allocation2 + $0xb0] sm:$0xff]  ;;  %v8141_v22 = vld [vmem:[#allocation2 + $0xa8] sm:$0xff]  ;;  %v6211_v51 = vunpack.i.l.bf16 %v6210_v5 }
 0x3e1   : > { %v6468_v19 = vpack.i.bf16 %v8137_v34, %v8141_v22  ;;  %v2383_v50 = vld [vmem:[#allocation2 + $0xb1] sm:$0xff]  ;;  %v2387_v20 = vld [vmem:[#allocation2 + $0xe1] sm:$0xff] }
 0x3e2   : > { %v6473_v3 = vpack.i.bf16 %v2383_v50, %v2382_v25  ;;  %v6493_v13 = vpack.i.bf16 %v2387_v20, %v2386_v10  ;;  %v2261_v55 = vld [vmem:[#allocation2 + $0x8] sm:$0xff] }
 0x3e4   : > { %6414 = vrot.lane.b32.xlu0 %v6413_v0, %s9480_s20  ;;  %6404 = vrot.lane.b32.xlu1 %v6403_v14, %s9483_s3 }
 0x3e8   : > { %6409 = vrot.lane.b32.xlu1 %v6408_v2, %s9465_s25  ;;  %6429 = vrot.lane.b32.xlu0 %v6403_v14, %s9479_s26  ;;  %v2402_v14 = vld [vmem:[#allocation2 + $0xda] sm:$0xff] }
 0x3ec   : > { %6434 = vrot.lane.b32.xlu0 %v6408_v2, %s9463_s28  ;;  %6419 = vrot.lane.b32.xlu1 %v6408_v2, %s9482_s23  ;;  %v6518_v2 = vpack.i.bf16 %v2403_v36, %v2402_v14 }
 0x3f0   : > { %6439 = vrot.lane.b32.xlu0 %v6413_v0, %s9481_s21  ;;  %6424 = vrot.lane.b32.xlu1 %v6413_v0, %s9478_s24 }
 0x3f4   : > { %6459 = vrot.lane.b32.xlu0 %v6458_v7, %s9483_s3  ;;  %6444 = vrot.lane.b32.xlu1 %v6458_v7, %s9479_s26  ;;  %v6207_v7 = vunpack.i.h.bf16 %v6205_v42 }
 0x3f8   : > { %6464 = vrot.lane.b32.xlu0 %v6463_v57, %s9465_s25  ;;  %6449 = vrot.lane.b32.xlu1 %v6463_v57, %s9463_s28  ;;  %v2260_v57 = vld [vmem:[#allocation2] sm:$0xff] }
 0x3fc   : > { %6454 = vrot.lane.b32.xlu1 %v6453_v53, %s9481_s21  ;;  %6479 = vrot.lane.b32.xlu0 %v6478_v30, %s9480_s20 }
 0x400   : > { %6469 = vrot.lane.b32.xlu1 %v6468_v19, %s9483_s3  ;;  %6499 = vrot.lane.b32.xlu0 %v6468_v19, %s9479_s26 }
 0x404   : > { %6474 = vrot.lane.b32.xlu1 %v6473_v3, %s9465_s25  ;;  %6504 = vrot.lane.b32.xlu0 %v6473_v3, %s9463_s28  ;;  %s9485_s28 = smov 16  }
 0x406   : > { %v6235_v37 = vpop.permute.xlu0 %6234  ;;  %v8151_v60 = vpop.permute.xlu1 %6219 }
 0x407   : > { %v6237_v33 = vunpack.i.h.bf16 %v6235_v37 }
 0x408   : > { %6509 = vrot.lane.b32.xlu0 %v6478_v30, %s9481_s21  ;;  %6484 = vrot.lane.b32.xlu1 %v6473_v3, %s9482_s23 }
 0x40a   : > { %v6240_v61 = vpop.permute.xlu0 %6239  ;;  %v8155_v62 = vpop.permute.xlu1 %6224 }
 0x40c   : > { %6514 = vrot.lane.b32.xlu0 %v6453_v53, %s9480_s20  ;;  %6489 = vrot.lane.b32.xlu1 %v6478_v30, %s9478_s24  ;;  %v2917_v53 = vsel %vm1187_vm1, %v2261_v55, %v6207_v7  ;;  %v2916_v30 = vsel %vm1187_vm1, %v2260_v57, %v6206_v11  ;;  %v6236_v7 = vunpack.i.l.bf16 %v6235_v37  ;;  %v6242_v57 = vunpack.i.h.bf16 %v6240_v61 }
 0x40d   : > { %v2932_v20 = vsel %vm1909_vm4, %v2916_v30, %v6211_v51  ;;  %v2933_v42 = vsel %vm1909_vm4, %v2917_v53, %v6212_v58  ;;  %v6241_v55 = vunpack.i.l.bf16 %v6240_v61 }
 0x40e   : > { %v6245_v0 = vpop.permute.xlu0 %6244  ;;  %v8159_v48 = vpop.permute.xlu1 %6229 }
 0x40f   : > { %v6247_v58 = vunpack.i.h.bf16 %v6245_v0  ;;  %v6246_v53 = vunpack.i.l.bf16 %v6245_v0 }
 0x410   : > { %6494 = vrot.lane.b32.xlu1 %v6493_v13, %s9465_s25  ;;  %s9484_s25 = smov 28  }
 0x412   : > { %v8162_v35 = vpop.permute.xlu0 %6254  ;;  %v8165_v46 = vpop.permute.xlu1 %6249 }
 0x414   : > { %6519 = vrot.lane.b32.xlu1 %v6518_v2, %s9480_s20 }
 0x416   : > { %v6270_v17 = vpop.permute.xlu0 %6269  ;;  %v6260_v10 = vpop.permute.xlu1 %6259 }
 0x417   : > { %v6272_v19 = vunpack.i.h.bf16 %v6270_v17  ;;  %v6271_v50 = vunpack.i.l.bf16 %v6270_v17 }
 0x419   : > { %v2949_v14 = vsel %vm1926_vm5, %v2933_v42, %v6272_v19  ;;  %v2948_v36 = vsel %vm1926_vm5, %v2932_v20, %v6271_v50 }
 0x41a   : > { %v6275_v44 = vpop.permute.xlu0 %6274  ;;  %v6265_v50 = vpop.permute.xlu1 %6264 }
 0x41b   : > { %v6277_v25 = vunpack.i.h.bf16 %v6275_v44  ;;  %v6276_v3 = vunpack.i.l.bf16 %v6275_v44 }
 0x41d   : > { %v2964_v11 = vsel %vm1943_vm6, %v2948_v36, %v6276_v3  ;;  %v2965_v17 = vsel %vm1943_vm6, %v2949_v14, %v6277_v25  ;;  %v6261_v36 = vunpack.i.l.bf16 %v6260_v10 }
 0x41e   : > { %v6280_v13 = vpop.permute.xlu0 %6279 }
 0x41f   : > { %v6282_v5 = vunpack.i.h.bf16 %v6280_v13  ;;  %v6281_v2 = vunpack.i.l.bf16 %v6280_v13 }
 0x421   : > { %v2980_v44 = vsel %vm1960_vm7, %v2964_v11, %v6281_v2  ;;  %v2981_v51 = vsel %vm1960_vm7, %v2965_v17, %v6282_v5  ;;  %v6267_v5 = vunpack.i.h.bf16 %v6265_v50  ;;  %v6266_v2 = vunpack.i.l.bf16 %v6265_v50 }
 0x422   : > { %v2996_v30 = vsel %vm1977_vm8, %v2980_v44, %v6236_v7  ;;  %v2997_v19 = vsel %vm1977_vm8, %v2981_v51, %v6237_v33  ;;  %v6262_v33 = vunpack.i.h.bf16 %v6260_v10  ;;  %v2918_v17 = vsel %vm1187_vm1, %v8021_v9, %v6261_v36 }
 0x423   : > { %v3012_v20 = vsel %vm1994_vm9, %v2996_v30, %v6241_v55  ;;  %v3013_v37 = vsel %vm1994_vm9, %v2997_v19, %v6242_v57  ;;  %v2934_v55 = vsel %vm1909_vm4, %v2918_v17, %v6266_v2  ;;  %v6222_v10 = vunpack.i.h.bf16 %v8151_v60 }
 0x424   : > { %v3028_v3 = vsel %vm2011_vm10, %v3012_v20, %v6246_v53  ;;  %v3029_v25 = vsel %vm2011_vm10, %v3013_v37, %v6247_v58  ;;  %v2919_v57 = vsel %vm1187_vm1, %v8017_v27, %v6262_v33  ;;  %v6221_v53 = vunpack.i.l.bf16 %v8151_v60 }
 0x425   : > { %v3044_v61 = vpack.c.bf16 %v3029_v25, %v3028_v3  ;;  %v2935_v44 = vsel %vm1909_vm4, %v2919_v57, %v6267_v5  ;;  %v6227_v9 = vunpack.i.h.bf16 %v8155_v62  ;;  %v6226_v27 = vunpack.i.l.bf16 %v8155_v62 }
 0x426   : > { %v8183_v42 = vpop.permute.xlu0 %6299  ;;  %v8185_v13 = vpop.permute.xlu1 %6284  ;;  %v2950_v30 = vsel %vm1926_vm5, %v2934_v55, %v6221_v53  ;;  %v2951_v19 = vsel %vm1926_vm5, %v2935_v44, %v6222_v10  ;;  %v6232_v33 = vunpack.i.h.bf16 %v8159_v48  ;;  %v6231_v60 = vunpack.i.l.bf16 %v8159_v48 }
 0x427   : > { %5777 = vmatprep.mubr.msk.bf16.mxu1 %vm2056_vm11, %v3044_v61  ;;  %v2966_v37 = vsel %vm1943_vm6, %v2950_v30, %v6226_v27  ;;  %v2967_v3 = vsel %vm1943_vm6, %v2951_v19, %v6227_v9  ;;  %v6252_v36 = vunpack.i.h.bf16 %v8165_v46  ;;  %v6251_v5 = vunpack.i.l.bf16 %v8165_v46 }
 0x428   : > { %v2982_v62 = vsel %vm1960_vm7, %v2966_v37, %v6231_v60  ;;  %v2983_v57 = vsel %vm1960_vm7, %v2967_v3, %v6232_v33  ;;  %v6257_v48 = vunpack.i.h.bf16 %v8162_v35  ;;  %v6256_v27 = vunpack.i.l.bf16 %v8162_v35 }
 0x42a   : > { %v8188_v0 = vpop.permute.xlu0 %6304  ;;  %v8190_v14 = vpop.permute.xlu1 %6289 }
 0x42e   : > { %v8192_v7 = vpop.permute.xlu0 %6309  ;;  %v8194_v11 = vpop.permute.xlu1 %6294 }
 0x432   : > { %v8202_v51 = vpop.permute.xlu0 %6319  ;;  %v8204_v58 = vpop.permute.xlu1 %6314 }
 0x436   : > { %v6335_v50 = vpop.permute.xlu0 %6334  ;;  %v6325_v20 = vpop.permute.xlu1 %6324 }
 0x437   : > { %v6327_v25 = vunpack.i.h.bf16 %v6325_v20  ;;  %v6326_v61 = vunpack.i.l.bf16 %v6325_v20  ;;  %v6337_v10 = vunpack.i.h.bf16 %v6335_v50  ;;  %v6336_v53 = vunpack.i.l.bf16 %v6335_v50 }
 0x438   : > { %v2920_v20 = vsel %vm1187_vm1, %v8005_v41, %v6251_v5 }
 0x439   : > { %v2999_v30 = vsel %vm1977_vm8, %v2983_v57, %v6327_v25  ;;  %v2998_v19 = vsel %vm1977_vm8, %v2982_v62, %v6326_v61  ;;  %v2921_v25 = vsel %vm1187_vm1, %v8007_v45, %v6252_v36  ;;  %v2936_v35 = vsel %vm1909_vm4, %v2920_v20, %v6256_v27 }
 0x43a   : > { %v6330_v2 = vpop.permute.xlu1 %6329  ;;  %v6350_v17 = vpop.permute.xlu0 %6349  ;;  %v2937_v41 = vsel %vm1909_vm4, %v2921_v25, %v6257_v48  ;;  %v6302_v45 = vunpack.i.h.bf16 %v8183_v42  ;;  %v6301_v36 = vunpack.i.l.bf16 %v8183_v42  ;;  %v6306_v27 = vunpack.i.l.bf16 %v8188_v0 }
 0x43b   : > { %v6332_v55 = vunpack.i.h.bf16 %v6330_v2  ;;  %v6331_v44 = vunpack.i.l.bf16 %v6330_v2  ;;  %v6352_v60 = vunpack.i.h.bf16 %v6350_v17  ;;  %v6351_v2 = vunpack.i.l.bf16 %v6350_v17 }
 0x43c   : > { %v6312_v42 = vunpack.i.h.bf16 %v8192_v7  ;;  %v6311_v25 = vunpack.i.l.bf16 %v8192_v7 }
 0x43d   : > { %v3014_v9 = vsel %vm1994_vm9, %v2998_v19, %v6331_v44  ;;  %v3015_v46 = vsel %vm1994_vm9, %v2999_v30, %v6332_v55  ;;  %v2953_v44 = vsel %vm1926_vm5, %v2937_v41, %v6352_v60 }
 0x43e   : > { %v3030_v37 = vsel %vm2011_vm10, %v3014_v9, %v6336_v53  ;;  %v3031_v3 = vsel %vm2011_vm10, %v3015_v46, %v6337_v10  ;;  %v6355_v50 = vpop.permute.xlu0 %6354  ;;  %v6340_v33 = vpop.permute.xlu1 %6339  ;;  %v2952_v10 = vsel %vm1926_vm5, %v2936_v35, %v6351_v2  ;;  %v6307_v46 = vunpack.i.h.bf16 %v8188_v0 }
 0x43f   : > { %v3045_v61 = vpack.c.bf16 %v3031_v3, %v3030_v37  ;;  %v6357_v62 = vunpack.i.h.bf16 %v6355_v50  ;;  %v6356_v57 = vunpack.i.l.bf16 %v6355_v50  ;;  %v6342_v41 = vunpack.i.h.bf16 %v6340_v33 }
 0x441   : > { %5778 = vmatmul.mubr.msk.bf16.vlgmr.msra.gmra.mrb[16].mxu1 %vm2056_vm11, %v3045_v61  ;;  %v2968_v17 = vsel %vm1943_vm6, %v2952_v10, %v6356_v57  ;;  %v2969_v19 = vsel %vm1943_vm6, %v2953_v44, %v6357_v62 }
 0x442   : > { %v6360_v5 = vpop.permute.xlu0 %6359  ;;  %v6345_v55 = vpop.permute.xlu1 %6344 }
 0x443   : > { %v6362_v53 = vunpack.i.h.bf16 %v6360_v5  ;;  %v6361_v30 = vunpack.i.l.bf16 %v6360_v5  ;;  %v6341_v5 = vunpack.i.l.bf16 %v6340_v33  ;;  %v6347_v44 = vunpack.i.h.bf16 %v6345_v55 }
 0x444   : > { %v6346_v10 = vunpack.i.l.bf16 %v6345_v55  ;;  %v6287_v33 = vunpack.i.h.bf16 %v8185_v13  ;;  %v6286_v55 = vunpack.i.l.bf16 %v8185_v13  ;;  %v6296_v13 = vunpack.i.l.bf16 %v8194_v11 }
 0x445   : > { %v2984_v9 = vsel %vm1960_vm7, %v2968_v17, %v6361_v30  ;;  %v2985_v48 = vsel %vm1960_vm7, %v2969_v19, %v6362_v53  ;;  %v2922_v30 = vsel %vm1187_vm1, %v8075_v52, %v6341_v5  ;;  %v6292_v52 = vunpack.i.h.bf16 %v8190_v14 }
 0x446   : > { %v3000_v20 = vsel %vm1977_vm8, %v2984_v9, %v6301_v36  ;;  %v3001_v37 = vsel %vm1977_vm8, %v2985_v48, %v6302_v45  ;;  %v8247_v3 = vpop.permute.xlu0 %6379  ;;  %v8249_v50 = vpop.permute.xlu1 %6364  ;;  %v2923_v45 = vsel %vm1187_vm1, %v8067_v24, %v6342_v41  ;;  %v2938_v36 = vsel %vm1909_vm4, %v2922_v30, %v6346_v10 }
 0x447   : > { %v3016_v61 = vsel %vm1994_vm9, %v3000_v20, %v6306_v27  ;;  %v3017_v60 = vsel %vm1994_vm9, %v3001_v37, %v6307_v46  ;;  %v2939_v17 = vsel %vm1909_vm4, %v2923_v45, %v6347_v44  ;;  %v2954_v48 = vsel %vm1926_vm5, %v2938_v36, %v6286_v55 }
 0x448   : > { %v3032_v2 = vsel %vm2011_vm10, %v3016_v61, %v6311_v25  ;;  %v3033_v0 = vsel %vm2011_vm10, %v3017_v60, %v6312_v42  ;;  %v2955_v46 = vsel %vm1926_vm5, %v2939_v17, %v6287_v33  ;;  %v6291_v24 = vunpack.i.l.bf16 %v8190_v14 }
 0x449   : > { %v3046_v35 = vpack.c.bf16 %v3033_v0, %v3032_v2  ;;  %v2971_v42 = vsel %vm1943_vm6, %v2955_v46, %v6292_v52  ;;  %v6297_v60 = vunpack.i.h.bf16 %v8194_v11  ;;  %v6317_v2 = vunpack.i.h.bf16 %v8204_v58 }
 0x44a   : > { %v8257_v62 = vpop.permute.xlu0 %6384  ;;  %v8259_v57 = vpop.permute.xlu1 %6369  ;;  %v2970_v37 = vsel %vm1943_vm6, %v2954_v48, %v6291_v24  ;;  %v6316_v0 = vunpack.i.l.bf16 %v8204_v58  ;;  %v6322_v58 = vunpack.i.h.bf16 %v8202_v51  ;;  %v6321_v55 = vunpack.i.l.bf16 %v8202_v51 }
 0x44b   : > { %5781 = vmatprep.mubr.msk.bf16.mxu1 %vm2056_vm11, %v3046_v35  ;;  %v2986_v14 = vsel %vm1960_vm7, %v2970_v37, %v6296_v13  ;;  %v2987_v5 = vsel %vm1960_vm7, %v2971_v42, %v6297_v60 }
 0x44e   : > { %v8262_v7 = vpop.permute.xlu0 %6389  ;;  %v8264_v53 = vpop.permute.xlu1 %6374 }
 0x452   : > { %v8272_v19 = vpop.permute.xlu0 %6399  ;;  %v8274_v9 = vpop.permute.xlu1 %6394 }
 0x456   : > { %v6415_v27 = vpop.permute.xlu0 %6414  ;;  %v6405_v20 = vpop.permute.xlu1 %6404 }
 0x457   : > { %v6407_v25 = vunpack.i.h.bf16 %v6405_v20  ;;  %v6406_v61 = vunpack.i.l.bf16 %v6405_v20  ;;  %v6417_v30 = vunpack.i.h.bf16 %v6415_v27  ;;  %v6416_v45 = vunpack.i.l.bf16 %v6415_v27 }
 0x458   : > { %v2924_v27 = vsel %vm1187_vm1, %v8045_v16, %v6316_v0  ;;  %v2925_v20 = vsel %vm1187_vm1, %v8047_v54, %v6317_v2  ;;  %v6382_v54 = vunpack.i.h.bf16 %v8247_v3  ;;  %v6381_v2 = vunpack.i.l.bf16 %v8247_v3 }
 0x459   : > { %v3003_v36 = vsel %vm1977_vm8, %v2987_v5, %v6407_v25  ;;  %v3002_v17 = vsel %vm1977_vm8, %v2986_v14, %v6406_v61  ;;  %v2940_v13 = vsel %vm1909_vm4, %v2924_v27, %v6321_v55  ;;  %v2941_v51 = vsel %vm1909_vm4, %v2925_v20, %v6322_v58 }
 0x45a   : > { %v6410_v35 = vpop.permute.xlu1 %6409  ;;  %v6430_v41 = vpop.permute.xlu0 %6429  ;;  %v6392_v3 = vunpack.i.h.bf16 %v8262_v7 }
 0x45b   : > { %v6412_v44 = vunpack.i.h.bf16 %v6410_v35  ;;  %v6411_v10 = vunpack.i.l.bf16 %v6410_v35  ;;  %v6432_v37 = vunpack.i.h.bf16 %v6430_v41  ;;  %v6431_v42 = vunpack.i.l.bf16 %v6430_v41 }
 0x45d   : > { %v3018_v11 = vsel %vm1994_vm9, %v3002_v17, %v6411_v10  ;;  %v3019_v33 = vsel %vm1994_vm9, %v3003_v36, %v6412_v44  ;;  %v2957_v5 = vsel %vm1926_vm5, %v2941_v51, %v6432_v37  ;;  %v2956_v16 = vsel %vm1926_vm5, %v2940_v13, %v6431_v42 }
 0x45e   : > { %v6435_v48 = vpop.permute.xlu0 %6434  ;;  %v6420_v46 = vpop.permute.xlu1 %6419  ;;  %v3034_v52 = vsel %vm2011_vm10, %v3018_v11, %v6416_v45  ;;  %v3035_v24 = vsel %vm2011_vm10, %v3019_v33, %v6417_v30  ;;  %v6387_v36 = vunpack.i.h.bf16 %v8257_v62  ;;  %v6386_v17 = vunpack.i.l.bf16 %v8257_v62 }
 0x45f   : > { %v6437_v25 = vunpack.i.h.bf16 %v6435_v48  ;;  %v6436_v61 = vunpack.i.l.bf16 %v6435_v48  ;;  %v3047_v60 = vpack.c.bf16 %v3035_v24, %v3034_v52  ;;  %v6391_v48 = vunpack.i.l.bf16 %v8262_v7 }
 0x460   : > { %v6422_v52 = vunpack.i.h.bf16 %v6420_v46  ;;  %v6421_v24 = vunpack.i.l.bf16 %v6420_v46 }
 0x461   : > { %5782 = vmatmul.mubr.msk.bf16.gmra.mrb[20].mxu1 %vm2056_vm11, %v3047_v60  ;;  %v2972_v41 = vsel %vm1943_vm6, %v2956_v16, %v6436_v61  ;;  %v2973_v10 = vsel %vm1943_vm6, %v2957_v5, %v6437_v25  ;;  %v6366_v5 = vunpack.i.l.bf16 %v8249_v50  ;;  %v6396_v16 = vunpack.i.l.bf16 %v8274_v9 }
 0x462   : > { %v6440_v35 = vpop.permute.xlu0 %6439  ;;  %v6425_v14 = vpop.permute.xlu1 %6424  ;;  %v2926_v7 = vsel %vm1187_vm1, %v8121_v8, %v6421_v24  ;;  %v2927_v46 = vsel %vm1187_vm1, %v8117_v1, %v6422_v52  ;;  %v6372_v1 = vunpack.i.h.bf16 %v8259_v57  ;;  %v6402_v52 = vunpack.i.h.bf16 %v8272_v19 }
 0x463   : > { %v6442_v0 = vunpack.i.h.bf16 %v6440_v35  ;;  %v6441_v44 = vunpack.i.l.bf16 %v6440_v35  ;;  %v6427_v37 = vunpack.i.h.bf16 %v6425_v14  ;;  %v6426_v62 = vunpack.i.l.bf16 %v6425_v14 }
 0x464   : > { %v6367_v14 = vunpack.i.h.bf16 %v8249_v50  ;;  %v2928_v50 = vsel %vm1187_vm1, %v8103_v6, %v6396_v16 }
 0x465   : > { %v2988_v30 = vsel %vm1960_vm7, %v2972_v41, %v6441_v44  ;;  %v2989_v45 = vsel %vm1960_vm7, %v2973_v10, %v6442_v0  ;;  %v2942_v51 = vsel %vm1909_vm4, %v2926_v7, %v6426_v62  ;;  %v2943_v35 = vsel %vm1909_vm4, %v2927_v46, %v6427_v37 }
 0x466   : > { %v3004_v11 = vsel %vm1977_vm8, %v2988_v30, %v6381_v2  ;;  %v3005_v33 = vsel %vm1977_vm8, %v2989_v45, %v6382_v54  ;;  %v8317_v58 = vpop.permute.xlu0 %6459  ;;  %v8319_v55 = vpop.permute.xlu1 %6444  ;;  %v2958_v8 = vsel %vm1926_vm5, %v2942_v51, %v6366_v5  ;;  %v2959_v54 = vsel %vm1926_vm5, %v2943_v35, %v6367_v14 }
 0x467   : > { %v3020_v27 = vsel %vm1994_vm9, %v3004_v11, %v6386_v17  ;;  %v3021_v20 = vsel %vm1994_vm9, %v3005_v33, %v6387_v36  ;;  %v6371_v2 = vunpack.i.l.bf16 %v8259_v57  ;;  %v6401_v41 = vunpack.i.l.bf16 %v8272_v19 }
 0x468   : > { %v3036_v42 = vsel %vm2011_vm10, %v3020_v27, %v6391_v48  ;;  %v3037_v25 = vsel %vm2011_vm10, %v3021_v20, %v6392_v3  ;;  %v6397_v10 = vunpack.i.h.bf16 %v8274_v9  ;;  %v2975_v17 = vsel %vm1943_vm6, %v2959_v54, %v6372_v1 }
 0x469   : > { %v3048_v13 = vpack.c.bf16 %v3037_v25, %v3036_v42  ;;  %v2974_v36 = vsel %vm1943_vm6, %v2958_v8, %v6371_v2  ;;  %v6377_v11 = vunpack.i.h.bf16 %v8264_v53  ;;  %v6376_v33 = vunpack.i.l.bf16 %v8264_v53 }
 0x46a   : > { %v8327_v61 = vpop.permute.xlu0 %6464  ;;  %v8329_v60 = vpop.permute.xlu1 %6449  ;;  %v6217_v57 = vunpack.i.h.bf16 %v8145_v39  ;;  %v2929_v9 = vsel %vm1187_vm1, %v8097_v49, %v6397_v10  ;;  %v2944_v6 = vsel %vm1909_vm4, %v2928_v50, %v6401_v41  ;;  %v6462_v35 = vunpack.i.h.bf16 %v8317_v58 }
 0x46b   : > { %5785 = vmatprep.mubr.msk.bf16.mxu1 %vm2056_vm11, %v3048_v13  ;;  %v2990_v20 = vsel %vm1960_vm7, %v2974_v36, %v6376_v33  ;;  %v2991_v37 = vsel %vm1960_vm7, %v2975_v17, %v6377_v11  ;;  %v2945_v14 = vsel %vm1909_vm4, %v2929_v9, %v6402_v52  ;;  %v6467_v8 = vunpack.i.h.bf16 %v8327_v61 }
 0x46c   : > { %v6466_v36 = vunpack.i.l.bf16 %v8327_v61  ;;  %v6216_v9 = vunpack.i.l.bf16 %v8145_v39  ;;  %v3306_v39 = vld [vmem:[#allocation2 + $0x2] sm:$0xff] }
 0x46e   : > { %v8341_v0 = vpop.permute.xlu1 %6454  ;;  %v6480_v44 = vpop.permute.xlu0 %6479 }
 0x46f   : > { %v6482_v24 = vunpack.i.h.bf16 %v6480_v44  ;;  %v6481_v27 = vunpack.i.l.bf16 %v6480_v44  ;;  %v6461_v44 = vunpack.i.l.bf16 %v8317_v58 }
 0x472   : > { %v6470_v30 = vpop.permute.xlu1 %6469  ;;  %v6500_v45 = vpop.permute.xlu0 %6499 }
 0x473   : > { %v6472_v3 = vunpack.i.h.bf16 %v6470_v30  ;;  %v6471_v48 = vunpack.i.l.bf16 %v6470_v30  ;;  %v6502_v53 = vunpack.i.h.bf16 %v6500_v45  ;;  %v6501_v25 = vunpack.i.l.bf16 %v6500_v45 }
 0x475   : > { %v3007_v46 = vsel %vm1977_vm8, %v2991_v37, %v6472_v3  ;;  %v3006_v19 = vsel %vm1977_vm8, %v2990_v20, %v6471_v48  ;;  %v2961_v10 = vsel %vm1926_vm5, %v2945_v14, %v6502_v53  ;;  %v2960_v50 = vsel %vm1926_vm5, %v2944_v6, %v6501_v25 }
 0x476   : > { %v6475_v62 = vpop.permute.xlu1 %6474  ;;  %v6505_v42 = vpop.permute.xlu0 %6504  ;;  %v6446_v25 = vunpack.i.l.bf16 %v8319_v55  ;;  %v6451_v14 = vunpack.i.l.bf16 %v8329_v60 }
 0x477   : > { %v6477_v13 = vunpack.i.h.bf16 %v6475_v62  ;;  %v6476_v7 = vunpack.i.l.bf16 %v6475_v62  ;;  %v6507_v51 = vunpack.i.h.bf16 %v6505_v42  ;;  %v6506_v49 = vunpack.i.l.bf16 %v6505_v42 }
 0x479   : > { %v3022_v5 = vsel %vm1994_vm9, %v3006_v19, %v6476_v7  ;;  %v3023_v16 = vsel %vm1994_vm9, %v3007_v46, %v6477_v13  ;;  %v2976_v17 = vsel %vm1943_vm6, %v2960_v50, %v6506_v49  ;;  %v2977_v58 = vsel %vm1943_vm6, %v2961_v10, %v6507_v51 }
 0x47a   : > { %v6510_v54 = vpop.permute.xlu0 %6509  ;;  %v6485_v1 = vpop.permute.xlu1 %6484  ;;  %v3038_v2 = vsel %vm2011_vm10, %v3022_v5, %v6481_v27  ;;  %v3039_v41 = vsel %vm2011_vm10, %v3023_v16, %v6482_v24  ;;  %v6447_v24 = vunpack.i.h.bf16 %v8319_v55  ;;  %v6452_v13 = vunpack.i.h.bf16 %v8329_v60 }
 0x47b   : > { %v6512_v30 = vunpack.i.h.bf16 %v6510_v54  ;;  %v6511_v45 = vunpack.i.l.bf16 %v6510_v54  ;;  %v3049_v11 = vpack.c.bf16 %v3039_v41, %v3038_v2  ;;  %v6487_v48 = vunpack.i.h.bf16 %v6485_v1 }
 0x47c   : > { %v6486_v52 = vunpack.i.l.bf16 %v6485_v1  ;;  %v6456_v54 = vunpack.i.l.bf16 %v8341_v0 }
 0x47d   : > { %v2992_v33 = vsel %vm1960_vm7, %v2976_v17, %v6511_v45  ;;  %v2993_v3 = vsel %vm1960_vm7, %v2977_v58, %v6512_v30  ;;  %5786 = vmatmul.mubr.msk.bf16.gmra.mrb[24].mxu1 %vm2056_vm11, %v3049_v11  ;;  %v2931_v51 = vsel %vm1187_vm1, %v8137_v34, %v6487_v48 }
 0x47e   : > { %v3008_v6 = vsel %vm1977_vm8, %v2992_v33, %v6461_v44  ;;  %v3009_v27 = vsel %vm1977_vm8, %v2993_v3, %v6462_v35  ;;  %v6515_v61 = vpop.permute.xlu0 %6514  ;;  %v6490_v20 = vpop.permute.xlu1 %6489  ;;  %v2930_v19 = vsel %vm1187_vm1, %v8141_v22, %v6486_v52  ;;  %v3290_v52 = vld [vmem:[#allocation2 + $0x1] sm:$0xff] }
 0x47f   : > { %v6517_v37 = vunpack.i.h.bf16 %v6515_v61  ;;  %v6516_v62 = vunpack.i.l.bf16 %v6515_v61  ;;  %v3024_v42 = vsel %vm1994_vm9, %v3008_v6, %v6466_v36  ;;  %v3025_v53 = vsel %vm1994_vm9, %v3009_v27, %v6467_v8  ;;  %v3307_v6 = vld [vmem:[#allocation2 + $0xa] sm:$0xff]  ;;  %v3385_v27 = vld [vmem:[#allocation2 + $0xe0] sm:$0xff] }
 0x480   : > { %v6492_v7 = vunpack.i.h.bf16 %v6490_v20  ;;  %v6491_v46 = vunpack.i.l.bf16 %v6490_v20  ;;  %v6457_v8 = vunpack.i.h.bf16 %v8341_v0  ;;  %v6528_v61 = vpack.i.bf16 %v3307_v6, %v3306_v39 }
 0x481   : > { %v3040_v49 = vsel %vm2011_vm10, %v3024_v42, %v6516_v62  ;;  %v3041_v35 = vsel %vm2011_vm10, %v3025_v53, %v6517_v37  ;;  %v8421_v37 = vld [vmem:[%s9423_s9] ss:$0 sm:$0xff] }
 0x482   : > { %v2946_v5 = vsel %vm1909_vm4, %v2930_v19, %v6491_v46  ;;  %v2947_v55 = vsel %vm1909_vm4, %v2931_v51, %v6492_v7  ;;  %v6495_v16 = vpop.permute.xlu1 %6494  ;;  %v3050_v44 = vpack.c.bf16 %v3041_v35, %v3040_v49  ;;  %v8426_v42 = vld [vmem:[%s9424_s10] ss:$0 sm:$0xff] }
 0x483   : > { %v2962_v22 = vsel %vm1926_vm5, %v2946_v5, %v6446_v25  ;;  %v2963_v34 = vsel %vm1926_vm5, %v2947_v55, %v6447_v24  ;;  %v6497_v41 = vunpack.i.h.bf16 %v6495_v16  ;;  %v6496_v60 = vunpack.i.l.bf16 %v6495_v16 }
 0x484   : > { %v2978_v1 = vsel %vm1943_vm6, %v2962_v22, %v6451_v14  ;;  %v2979_v2 = vsel %vm1943_vm6, %v2963_v34, %v6452_v13  ;;  %5789 = vmatprep.mubr.msk.bf16.mxu1 %vm2056_vm11, %v3050_v44 }
 0x485   : > { %v2994_v10 = vsel %vm1960_vm7, %v2978_v1, %v6456_v54  ;;  %v2995_v50 = vsel %vm1960_vm7, %v2979_v2, %v6457_v8 }
 0x486   : > { %v3010_v30 = vsel %vm1977_vm8, %v2994_v10, %v6216_v9  ;;  %v3011_v0 = vsel %vm1977_vm8, %v2995_v50, %v6217_v57  ;;  %v6520_v45 = vpop.permute.xlu1 %6519  ;;  %v3291_v9 = vld [vmem:[#allocation2 + $0x9] sm:$0xff]  ;;  %v3384_v57 = vld [vmem:[#allocation2 + $0xd8] sm:$0xff] }
 0x487   : > { %v6522_v36 = vunpack.i.h.bf16 %v6520_v45  ;;  %v6521_v17 = vunpack.i.l.bf16 %v6520_v45  ;;  %v3026_v58 = vsel %vm1994_vm9, %v3010_v30, %v6496_v60  ;;  %v3027_v11 = vsel %vm1994_vm9, %v3011_v0, %v6497_v41 }
 0x488   : > { %v6523_v24 = vpack.i.bf16 %v3291_v9, %v3290_v52  ;;  %v6533_v20 = vpack.i.bf16 %v3385_v27, %v3384_v57 }
 0x489   : > { %v3042_v33 = vsel %vm2011_vm10, %v3026_v58, %v6521_v17  ;;  %v3043_v3 = vsel %vm2011_vm10, %v3027_v11, %v6522_v36 }
 0x48a   : > { %v3051_v48 = vpack.c.bf16 %v3043_v3, %v3042_v33  ;;  %6524 = vrot.lane.b32.xlu0 %v6523_v24, %s9482_s23  ;;  %6534 = vrot.lane.b32.xlu1 %v6533_v20, %s9483_s3 }
 0x48c   : > { %5790 = vmatmul.mubr.msk.bf16.gmra.mrb[28].mxu1 %vm2056_vm11, %v3051_v48 }
 0x48e   : > { %6529 = vrot.lane.b32.xlu0 %v6528_v61, %s9478_s24 }
 0x514   : > { %v5779_v62 = vpop.f32.mrb[16].mxu1 }
 0x515   : > { %v3205_v53 = vmul.f32 %v5779_v62, %v8421_v37  ;;  %v3133_v25 = vpop.f32.mrb[17].mxu1 }
 0x516   : > { %v3203_v13 = vmul.f32 %v8421_v37, %v3133_v25  ;;  %v5780_v7 = vpop.f32.mrb[18].mxu1 }
 0x517   : > { %v3228_v46 = vadd.f32 %v8426_v42, %v3205_v53  ;;  %v3206_v19 = vmul.f32 %v5780_v7, %v8421_v37  ;;  %v3136_v51 = vpop.f32.mrb[19].mxu1  ;;  %v7185_v7 = vld [vmem:[%s9425_s11] sm:$0xff]  }
 0x518   : > { %v3226_v49 = vadd.f32 %v8426_v42, %v3203_v13  ;;  %v3204_v35 = vmul.f32 %v8421_v37, %v3136_v51  ;;  %5793 = vmatprep.subr.bf16.mxu0 %v7185_v7 }
 0x519   : > { %v3244_v14 = vmax.f32 %v3228_v46, 0.0  ;;  %v3229_v5 = vadd.f32 %v8426_v42, %v3206_v19  ;;  %5794 = vmatpush3.bf16.msra.mxu0 %v7185_v7 }
 0x51a   : > { %v3242_v55 = vmax.f32 %v3226_v49, 0.0  ;;  %v3227_v16 = vadd.f32 %v8426_v42, %v3204_v35 }
 0x51b   : > { %3260 = vst.msk [vmem:[#allocation2 + $0x31] sm:$0xff] %vm1187_vm1, %v3244_v14  ;;  %v3245_v44 = vmax.f32 %v3229_v5, 0.0 }
 0x51c   : > { %3258 = vst.msk [vmem:[#allocation2 + $0x19] sm:$0xff] %vm1187_vm1, %v3242_v55  ;;  %v3243_v8 = vmax.f32 %v3227_v16, 0.0  ;;  %v7186_v55 = vld [vmem:[%s9425_s11 + $0x8] sm:$0xff]  }
 0x51d   : > { %3261 = vst.msk [vmem:[#allocation2 + $0x39] sm:$0xff] %vm1187_vm1, %v3245_v44  ;;  %5795 = vmatprep.subr.bf16.mxu0 %v7186_v55 }
 0x51e   : > { %3259 = vst.msk [vmem:[#allocation2 + $0x21] sm:$0xff] %vm1187_vm1, %v3243_v8  ;;  %5796 = vmatpush3.bf16.msra.mxu0 %v7186_v55 }
 0x522   : > { %v8440_v54 = vld [vmem:[#allocation2 + $0x30] sm:$0xff] }
 0x523   : > { %v3386_v2 = vld [vmem:[#allocation2 + $0x31] sm:$0xff]  ;;  %v3292_v36 = vld [vmem:[#allocation2 + $0x19] sm:$0xff] }
 0x524   : > { %v8442_v22 = vld [vmem:[#allocation2 + $0x38] sm:$0xff] }
 0x525   : > { %v6553_v34 = vpack.i.bf16 %v8442_v22, %v8440_v54  ;;  %v3387_v1 = vld [vmem:[#allocation2 + $0x39] sm:$0xff]  ;;  %v3293_v0 = vld [vmem:[#allocation2 + $0x21] sm:$0xff] }
 0x526   : > { %v6558_v41 = vpack.i.bf16 %v3387_v1, %v3386_v2  ;;  %v3402_v60 = vld [vmem:[#allocation2 + $0x32] sm:$0xff]  ;;  %v3403_v10 = vld [vmem:[#allocation2 + $0x3a] sm:$0xff]  ;;  %v6578_v11 = vpack.i.bf16 %v3293_v0, %v3292_v36  ;;  %v3309_v52 = vld [vmem:[#allocation2 + $0x22] sm:$0xff] }
 0x527   : > { %6554 = vrot.lane.b32.xlu0 %v6553_v34, %s9483_s3  ;;  %6539 = vrot.lane.b32.xlu1 %v6553_v34, %s9479_s26  ;;  %v6563_v50 = vpack.i.bf16 %v3403_v10, %v3402_v60  ;;  %v8452_v30 = vld [vmem:[#allocation2 + $0x20] sm:$0xff]  ;;  %v8456_v45 = vld [vmem:[#allocation2 + $0x18] sm:$0xff]  ;;  %v7187_v1 = vld [vmem:[%s9425_s11 + $0x10] ss:$0 sps:$4 sm:$0x33]  }
 0x528   : > { %v6588_v58 = vpack.i.bf16 %v8452_v30, %v8456_v45  ;;  %v3308_v48 = vld [vmem:[#allocation2 + $0x1a] sm:$0xff]  ;;  %5859 = vmatprep.subr.msk.bf16.mxu0 %vm2081_vm3, %v7187_v1  ;;  %v4111_v10 = vsel %vm2081_vm3, %v7187_v1, 0 }
 0x529   : > { %v6583_v20 = vpack.i.bf16 %v3309_v52, %v3308_v48  ;;  %5798 = vmatpush3.bf16.msra.mxu0 %v4111_v10 }
 0x52b   : > { %6559 = vrot.lane.b32.xlu0 %v6558_v41, %s9484_s25  ;;  %6544 = vrot.lane.b32.xlu1 %v6558_v41, %s9485_s28 }
 0x52f   : > { %6564 = vrot.lane.b32.xlu0 %v6563_v50, %s9480_s20  ;;  %6549 = vrot.lane.b32.xlu1 %v6563_v50, %s9481_s21 }
 0x533   : > { %6574 = vrot.lane.b32.xlu0 %v6563_v50, %s9478_s24  ;;  %6569 = vrot.lane.b32.xlu1 %v6558_v41, %s9482_s23 }
 0x534   : > { %v5783_v17 = vpop.f32.mrb[20].mxu1 }
 0x535   : > { %v3209_v33 = vmul.f32 %v5783_v17, %v8421_v37  ;;  %v3149_v3 = vpop.f32.mrb[21].mxu1 }
 0x536   : > { %v3207_v9 = vmul.f32 %v8421_v37, %v3149_v3  ;;  %v5784_v24 = vpop.f32.mrb[22].mxu1 }
 0x537   : > { %6589 = vrot.lane.b32.xlu0 %v6588_v58, %s9479_s26  ;;  %6579 = vrot.lane.b32.xlu1 %v6578_v11, %s9482_s23  ;;  %v3232_v39 = vadd.f32 %v8426_v42, %v3209_v33  ;;  %v3210_v6 = vmul.f32 %v5784_v24, %v8421_v37  ;;  %v3152_v57 = vpop.f32.mrb[23].mxu1 }
 0x538   : > { %v3230_v27 = vadd.f32 %v8426_v42, %v3207_v9  ;;  %v3208_v61 = vmul.f32 %v8421_v37, %v3152_v57 }
 0x539   : > { %v3248_v62 = vmax.f32 %v3232_v39, 0.0  ;;  %v3233_v53 = vadd.f32 %v8426_v42, %v3210_v6 }
 0x53a   : > { %v3246_v25 = vmax.f32 %v3230_v27, 0.0  ;;  %v3231_v13 = vadd.f32 %v8426_v42, %v3208_v61 }
 0x53b   : > { %6594 = vrot.lane.b32.xlu0 %v6578_v11, %s9485_s28  ;;  %6584 = vrot.lane.b32.xlu1 %v6583_v20, %s9478_s24  ;;  %3264 = vst.msk [vmem:[#allocation2 + $0x61] sm:$0xff] %vm1187_vm1, %v3248_v62  ;;  %v3249_v46 = vmax.f32 %v3233_v53, 0.0 }
 0x53c   : > { %3262 = vst.msk [vmem:[#allocation2 + $0x49] sm:$0xff] %vm1187_vm1, %v3246_v25  ;;  %v3247_v19 = vmax.f32 %v3231_v13, 0.0 }
 0x53d   : > { %3265 = vst.msk [vmem:[#allocation2 + $0x69] sm:$0xff] %vm1187_vm1, %v3249_v46 }
 0x53e   : > { %3263 = vst.msk [vmem:[#allocation2 + $0x51] sm:$0xff] %vm1187_vm1, %v3247_v19 }
 0x53f   : > { %6599 = vrot.lane.b32.xlu0 %v6583_v20, %s9481_s21 }
 0x542   : > { %v8480_v51 = vld [vmem:[#allocation2 + $0x60] sm:$0xff] }
 0x543   : > { %v3390_v5 = vld [vmem:[#allocation2 + $0x61] sm:$0xff]  ;;  %v3388_v25 = vld [vmem:[#allocation2 + $0x49] sm:$0xff] }
 0x544   : > { %v8482_v49 = vld [vmem:[#allocation2 + $0x68] sm:$0xff] }
 0x545   : > { %v6618_v35 = vpack.i.bf16 %v8482_v49, %v8480_v51  ;;  %v3391_v14 = vld [vmem:[#allocation2 + $0x69] sm:$0xff]  ;;  %v3405_v17 = vld [vmem:[#allocation2 + $0x52] sm:$0xff] }
 0x546   : > { %v6623_v16 = vpack.i.bf16 %v3391_v14, %v3390_v5  ;;  %v3406_v44 = vld [vmem:[#allocation2 + $0x62] sm:$0xff]  ;;  %v3407_v8 = vld [vmem:[#allocation2 + $0x6a] sm:$0xff] }
 0x547   : > { %6619 = vrot.lane.b32.xlu0 %v6618_v35, %s9483_s3  ;;  %6604 = vrot.lane.b32.xlu1 %v6618_v35, %s9479_s26  ;;  %v6628_v34 = vpack.i.bf16 %v3407_v8, %v3406_v44  ;;  %v3404_v36 = vld [vmem:[#allocation2 + $0x4a] sm:$0xff] }
 0x548   : > { %v8502_v58 = vld [vmem:[#allocation2 + $0x50] sm:$0xff]  ;;  %v8510_v9 = vld [vmem:[#allocation2 + $0x48] sm:$0xff]  ;;  %v6653_v6 = vpack.i.bf16 %v3405_v17, %v3404_v36 }
 0x549   : > { %v6643_v57 = vpack.i.bf16 %v8502_v58, %v8510_v9  ;;  %v3389_v20 = vld [vmem:[#allocation2 + $0x51] sm:$0xff] }
 0x54a   : > { %v6648_v13 = vpack.i.bf16 %v3389_v20, %v3388_v25 }
 0x54b   : > { %6624 = vrot.lane.b32.xlu0 %v6623_v16, %s9484_s25  ;;  %6609 = vrot.lane.b32.xlu1 %v6623_v16, %s9485_s28 }
 0x54f   : > { %6629 = vrot.lane.b32.xlu0 %v6628_v34, %s9480_s20  ;;  %6614 = vrot.lane.b32.xlu1 %v6628_v34, %s9481_s21 }
 0x550   : > { %v5787_v2 = vpop.f32.mrb[24].mxu1 }
 0x551   : > { %v3213_v41 = vmul.f32 %v5787_v2, %v8421_v37  ;;  %v3165_v60 = vpop.f32.mrb[25].mxu1 }
 0x552   : > { %v3211_v50 = vmul.f32 %v8421_v37, %v3165_v60  ;;  %v5788_v0 = vpop.f32.mrb[26].mxu1 }
 0x553   : > { %v3236_v11 = vadd.f32 %v8426_v42, %v3213_v41  ;;  %v3214_v33 = vmul.f32 %v5788_v0, %v8421_v37  ;;  %v3168_v3 = vpop.f32.mrb[27].mxu1  ;;  %6639 = vrot.lane.b32.xlu0 %v6628_v34, %s9478_s24  ;;  %6634 = vrot.lane.b32.xlu1 %v6623_v16, %s9482_s23 }
 0x554   : > { %v3234_v48 = vadd.f32 %v8426_v42, %v3211_v50  ;;  %v3212_v52 = vmul.f32 %v8421_v37, %v3168_v3 }
 0x555   : > { %v3252_v24 = vmax.f32 %v3236_v11, 0.0  ;;  %v3237_v39 = vadd.f32 %v8426_v42, %v3214_v33 }
 0x556   : > { %v3250_v27 = vmax.f32 %v3234_v48, 0.0  ;;  %v3235_v61 = vadd.f32 %v8426_v42, %v3212_v52 }
 0x557   : > { %3268 = vst.msk [vmem:[#allocation2 + $0x91] sm:$0xff] %vm1187_vm1, %v3252_v24  ;;  %v3253_v62 = vmax.f32 %v3237_v39, 0.0  ;;  %6654 = vrot.lane.b32.xlu0 %v6653_v6, %s9480_s20  ;;  %6644 = vrot.lane.b32.xlu1 %v6643_v57, %s9483_s3 }
 0x558   : > { %3266 = vst.msk [vmem:[#allocation2 + $0x79] sm:$0xff] %vm1187_vm1, %v3250_v27  ;;  %v3251_v53 = vmax.f32 %v3235_v61, 0.0 }
 0x559   : > { %3269 = vst.msk [vmem:[#allocation2 + $0x99] sm:$0xff] %vm1187_vm1, %v3253_v62 }
 0x55a   : > { %3267 = vst.msk [vmem:[#allocation2 + $0x81] sm:$0xff] %vm1187_vm1, %v3251_v53 }
 0x55b   : > { %6669 = vrot.lane.b32.xlu0 %v6643_v57, %s9479_s26  ;;  %6649 = vrot.lane.b32.xlu1 %v6648_v13, %s9484_s25 }
 0x55e   : > { %v8538_v10 = vld [vmem:[#allocation2 + $0x90] sm:$0xff] }
 0x55f   : > { %v5791_v7 = vpop.f32.mrb[28].mxu1  ;;  %6674 = vrot.lane.b32.xlu0 %v6648_v13, %s9485_s28  ;;  %6659 = vrot.lane.b32.xlu1 %v6648_v13, %s9482_s23  ;;  %v8556_v39 = vld [vmem:[#allocation2 + $0x78] sm:$0xff] }
 0x560   : > { %v3217_v46 = vmul.f32 %v5791_v7, %v8421_v37  ;;  %v3181_v19 = vpop.f32.mrb[29].mxu1  ;;  %v8532_v34 = vld [vmem:[#allocation2 + $0x98] sm:$0xff] }
 0x561   : > { %v3215_v35 = vmul.f32 %v8421_v37, %v3181_v19  ;;  %v5792_v14 = vpop.f32.mrb[30].mxu1  ;;  %v3395_v36 = vld [vmem:[#allocation2 + $0x99] sm:$0xff]  ;;  %v3409_v52 = vld [vmem:[#allocation2 + $0x82] sm:$0xff] }
 0x562   : > { %v3240_v5 = vadd.f32 %v8426_v42, %v3217_v46  ;;  %v3218_v55 = vmul.f32 %v5792_v14, %v8421_v37  ;;  %v3184_v16 = vpop.f32.mrb[31].mxu1  ;;  %v3410_v11 = vld [vmem:[#allocation2 + $0x92] sm:$0xff]  ;;  %v3411_v33 = vld [vmem:[#allocation2 + $0x9a] sm:$0xff] }
 0x563   : > { %v3238_v44 = vadd.f32 %v8426_v42, %v3215_v35  ;;  %v3216_v8 = vmul.f32 %v8421_v37, %v3184_v16  ;;  %6679 = vrot.lane.b32.xlu0 %v6653_v6, %s9481_s21  ;;  %6664 = vrot.lane.b32.xlu1 %v6653_v6, %s9478_s24  ;;  %v6698_v37 = vpack.i.bf16 %v8532_v34, %v8538_v10  ;;  %v3408_v48 = vld [vmem:[#allocation2 + $0x7a] sm:$0xff] }
 0x564   : > { %v3256_v1 = vmax.f32 %v3240_v5, 0.0  ;;  %v3241_v2 = vadd.f32 %v8426_v42, %v3218_v55  ;;  %v6708_v3 = vpack.i.bf16 %v3411_v33, %v3410_v11  ;;  %v8552_v24 = vld [vmem:[#allocation2 + $0x80] sm:$0xff]  ;;  %v6733_v6 = vpack.i.bf16 %v3409_v52, %v3408_v48  ;;  %v6525_v55 = vpop.permute.xlu0 %6524 }
 0x565   : > { %v3254_v41 = vmax.f32 %v3238_v44, 0.0  ;;  %v3239_v60 = vadd.f32 %v8426_v42, %v3216_v8  ;;  %v3394_v42 = vld [vmem:[#allocation2 + $0x91] sm:$0xff]  ;;  %v6723_v57 = vpack.i.bf16 %v8552_v24, %v8556_v39  ;;  %v3393_v27 = vld [vmem:[#allocation2 + $0x81] sm:$0xff]  ;;  %v3392_v61 = vld [vmem:[#allocation2 + $0x79] sm:$0xff] }
 0x566   : > { %3272 = vst.msk [vmem:[#allocation2 + $0xc1] sm:$0xff] %vm1187_vm1, %v3256_v1  ;;  %v3257_v50 = vmax.f32 %v3241_v2, 0.0  ;;  %v6703_v17 = vpack.i.bf16 %v3395_v36, %v3394_v42  ;;  %v6728_v20 = vpack.i.bf16 %v3393_v27, %v3392_v61  ;;  %v3400_v11 = vld [vmem:[#allocation2 + $0xd9] sm:$0xff]  ;;  %v3401_v33 = vld [vmem:[#allocation2 + $0xe1] sm:$0xff] }
 0x567   : > { %3270 = vst.msk [vmem:[#allocation2 + $0xa9] sm:$0xff] %vm1187_vm1, %v3254_v41  ;;  %v3255_v0 = vmax.f32 %v3239_v60, 0.0  ;;  %6699 = vrot.lane.b32.xlu0 %v6698_v37, %s9483_s3  ;;  %6684 = vrot.lane.b32.xlu1 %v6698_v37, %s9479_s26  ;;  %v8580_v60 = vpop.permute.xlu1 %6534  ;;  %v6813_v48 = vpack.i.bf16 %v3401_v33, %v3400_v11 }
 0x568   : > { %3273 = vst.msk [vmem:[#allocation2 + $0xc9] sm:$0xff] %vm1187_vm1, %v3257_v50  ;;  %v6530_v41 = vpop.permute.xlu0 %6529 }
 0x569   : > { %3271 = vst.msk [vmem:[#allocation2 + $0xb1] sm:$0xff] %vm1187_vm1, %v3255_v0 }
 0x56b   : > { %6704 = vrot.lane.b32.xlu0 %v6703_v17, %s9484_s25  ;;  %6689 = vrot.lane.b32.xlu1 %v6703_v17, %s9485_s28 }
 0x56d   : > { %v3382_v53 = vld [vmem:[#allocation2 + $0xc0] sm:$0xff] }
 0x56e   : > { %v3398_v7 = vld [vmem:[#allocation2 + $0xc1] sm:$0xff]  ;;  %v3396_v37 = vld [vmem:[#allocation2 + $0xa9] sm:$0xff] }
 0x56f   : > { %6709 = vrot.lane.b32.xlu0 %v6708_v3, %s9480_s20  ;;  %6694 = vrot.lane.b32.xlu1 %v6708_v3, %s9481_s21  ;;  %v3383_v62 = vld [vmem:[#allocation2 + $0xc8] sm:$0xff] }
 0x570   : > { %v6778_v25 = vpack.i.bf16 %v3383_v62, %v3382_v53  ;;  %v3399_v13 = vld [vmem:[#allocation2 + $0xc9] sm:$0xff]  ;;  %v3413_v5 = vld [vmem:[#allocation2 + $0xb2] sm:$0xff]  ;;  %v6527_v53 = vunpack.i.h.bf16 %v6525_v55 }
 0x571   : > { %v6783_v46 = vpack.i.bf16 %v3399_v13, %v3398_v7  ;;  %v3368_v19 = vld [vmem:[#allocation2 + $0xc2] sm:$0xff]  ;;  %v3369_v35 = vld [vmem:[#allocation2 + $0xca] sm:$0xff] }
 0x572   : > { %v3412_v14 = vld [vmem:[#allocation2 + $0xaa] sm:$0xff]  ;;  %v6773_v16 = vpack.i.bf16 %v3369_v35, %v3368_v19  ;;  %v3274_v7 = vld [vmem:[#allocation2] sm:$0xff]  ;;  %v6532_v19 = vunpack.i.h.bf16 %v6530_v41  ;;  %v6531_v35 = vunpack.i.l.bf16 %v6530_v41 }
 0x573   : > { %6719 = vrot.lane.b32.xlu0 %v6708_v3, %s9478_s24  ;;  %6714 = vrot.lane.b32.xlu1 %v6703_v17, %s9482_s23  ;;  %v6798_v44 = vpack.i.bf16 %v3413_v5, %v3412_v14  ;;  %v8572_v8 = vld [vmem:[#allocation2 + $0xb0] sm:$0xff]  ;;  %v8576_v1 = vld [vmem:[#allocation2 + $0xa8] sm:$0xff] }
 0x574   : > { %v6788_v2 = vpack.i.bf16 %v8572_v8, %v8576_v1  ;;  %v3397_v50 = vld [vmem:[#allocation2 + $0xb1] sm:$0xff] }
 0x575   : > { %v6793_v0 = vpack.i.bf16 %v3397_v50, %v3396_v37 }
 0x577   : > { %6734 = vrot.lane.b32.xlu0 %v6733_v6, %s9480_s20  ;;  %6724 = vrot.lane.b32.xlu1 %v6723_v57, %s9483_s3 }
 0x57b   : > { %6749 = vrot.lane.b32.xlu0 %v6723_v57, %s9479_s26  ;;  %6729 = vrot.lane.b32.xlu1 %v6728_v20, %s9484_s25  ;;  %v3417_v57 = vld [vmem:[#allocation2 + $0xe2] sm:$0xff] }
 0x57f   : > { %6754 = vrot.lane.b32.xlu0 %v6728_v20, %s9485_s28  ;;  %6739 = vrot.lane.b32.xlu1 %v6728_v20, %s9482_s23 }
 0x583   : > { %6759 = vrot.lane.b32.xlu0 %v6733_v6, %s9481_s21  ;;  %6744 = vrot.lane.b32.xlu1 %v6733_v6, %s9478_s24  ;;  %v3416_v6 = vld [vmem:[#allocation2 + $0xda] sm:$0xff] }
 0x584   : > { %v6838_v61 = vpack.i.bf16 %v3417_v57, %v3416_v6 }
 0x587   : > { %6779 = vrot.lane.b32.xlu0 %v6778_v25, %s9483_s3  ;;  %6764 = vrot.lane.b32.xlu1 %v6778_v25, %s9479_s26  ;;  %v6526_v25 = vunpack.i.l.bf16 %v6525_v55 }
 0x58b   : > { %6784 = vrot.lane.b32.xlu0 %v6783_v46, %s9484_s25  ;;  %6769 = vrot.lane.b32.xlu1 %v6783_v46, %s9485_s28  ;;  %v3275_v46 = vld [vmem:[#allocation2 + $0x8] sm:$0xff] }
 0x58c   : > { %v3931_v5 = vsel %vm1187_vm1, %v3275_v46, %v6527_v53 }
 0x58d   : > { %v3947_v55 = vsel %vm1909_vm4, %v3931_v5, %v6532_v19 }
 0x58f   : > { %6774 = vrot.lane.b32.xlu1 %v6773_v16, %s9481_s21  ;;  %6799 = vrot.lane.b32.xlu0 %v6798_v44, %s9480_s20 }
 0x593   : > { %6789 = vrot.lane.b32.xlu1 %v6788_v2, %s9483_s3  ;;  %6819 = vrot.lane.b32.xlu0 %v6788_v2, %s9479_s26 }
 0x597   : > { %6794 = vrot.lane.b32.xlu1 %v6793_v0, %s9484_s25  ;;  %6824 = vrot.lane.b32.xlu0 %v6793_v0, %s9485_s28 }
 0x599   : > { %v6555_v36 = vpop.permute.xlu0 %6554  ;;  %v8586_v42 = vpop.permute.xlu1 %6539 }
 0x59a   : > { %v6556_v53 = vunpack.i.l.bf16 %v6555_v36 }
 0x59b   : > { %6829 = vrot.lane.b32.xlu0 %v6798_v44, %s9481_s21  ;;  %6804 = vrot.lane.b32.xlu1 %v6793_v0, %s9482_s23 }
 0x59d   : > { %v6560_v17 = vpop.permute.xlu0 %6559  ;;  %v8590_v3 = vpop.permute.xlu1 %6544 }
 0x59e   : > { %v6561_v46 = vunpack.i.l.bf16 %v6560_v17 }
 0x59f   : > { %6834 = vrot.lane.b32.xlu0 %v6773_v16, %s9480_s20  ;;  %6809 = vrot.lane.b32.xlu1 %v6798_v44, %s9478_s24  ;;  %v3930_v16 = vsel %vm1187_vm1, %v3274_v7, %v6526_v25  ;;  %v6562_v7 = vunpack.i.h.bf16 %v6560_v17 }
 0x5a0   : > { %v3946_v11 = vsel %vm1909_vm4, %v3930_v16, %v6531_v35 }
 0x5a1   : > { %v6565_v52 = vpop.permute.xlu0 %6564  ;;  %v8594_v27 = vpop.permute.xlu1 %6549 }
 0x5a2   : > { %v6567_v19 = vunpack.i.h.bf16 %v6565_v52  ;;  %v6566_v5 = vunpack.i.l.bf16 %v6565_v52 }
 0x5a3   : > { %6814 = vrot.lane.b32.xlu1 %v6813_v48, %s9484_s25 }
 0x5a5   : > { %v8597_v20 = vpop.permute.xlu0 %6574  ;;  %v8600_v13 = vpop.permute.xlu1 %6569 }
 0x5a7   : > { %6839 = vrot.lane.b32.xlu1 %v6838_v61, %s9480_s20  ;;  %v6557_v61 = vunpack.i.h.bf16 %v6555_v36 }
 0x5a9   : > { %v6590_v62 = vpop.permute.xlu0 %6589  ;;  %v6580_v0 = vpop.permute.xlu1 %6579 }
 0x5aa   : > { %v6592_v44 = vunpack.i.h.bf16 %v6590_v62  ;;  %v6591_v2 = vunpack.i.l.bf16 %v6590_v62 }
 0x5ac   : > { %v3962_v48 = vsel %vm1926_vm5, %v3946_v11, %v6591_v2  ;;  %v3963_v6 = vsel %vm1926_vm5, %v3947_v55, %v6592_v44 }
 0x5ad   : > { %v6595_v14 = vpop.permute.xlu0 %6594  ;;  %v6585_v2 = vpop.permute.xlu1 %6584 }
 0x5ae   : > { %v6597_v50 = vunpack.i.h.bf16 %v6595_v14  ;;  %v6596_v37 = vunpack.i.l.bf16 %v6595_v14 }
 0x5b0   : > { %v3978_v25 = vsel %vm1943_vm6, %v3962_v48, %v6596_v37  ;;  %v3979_v62 = vsel %vm1943_vm6, %v3963_v6, %v6597_v50  ;;  %v6582_v6 = vunpack.i.h.bf16 %v6580_v0 }
 0x5b1   : > { %v6600_v33 = vpop.permute.xlu0 %6599 }
 0x5b2   : > { %v6602_v41 = vunpack.i.h.bf16 %v6600_v33  ;;  %v6601_v57 = vunpack.i.l.bf16 %v6600_v33 }
 0x5b4   : > { %v3994_v14 = vsel %vm1960_vm7, %v3978_v25, %v6601_v57  ;;  %v3995_v35 = vsel %vm1960_vm7, %v3979_v62, %v6602_v41  ;;  %v6581_v41 = vunpack.i.l.bf16 %v6580_v0  ;;  %v6587_v57 = vunpack.i.h.bf16 %v6585_v2 }
 0x5b5   : > { %v4010_v16 = vsel %vm1977_vm8, %v3994_v14, %v6556_v53  ;;  %v4011_v44 = vsel %vm1977_vm8, %v3995_v35, %v6557_v61  ;;  %v6586_v61 = vunpack.i.l.bf16 %v6585_v2  ;;  %v3933_v62 = vsel %vm1187_vm1, %v8452_v30, %v6582_v6 }
 0x5b6   : > { %v4026_v11 = vsel %vm1994_vm9, %v4010_v16, %v6561_v46  ;;  %v4027_v36 = vsel %vm1994_vm9, %v4011_v44, %v6562_v7  ;;  %v3932_v7 = vsel %vm1187_vm1, %v8456_v45, %v6581_v41  ;;  %v3949_v14 = vsel %vm1909_vm4, %v3933_v62, %v6587_v57 }
 0x5b7   : > { %v4042_v37 = vsel %vm2011_vm10, %v4026_v11, %v6566_v5  ;;  %v4043_v50 = vsel %vm2011_vm10, %v4027_v36, %v6567_v19  ;;  %v3948_v46 = vsel %vm1909_vm4, %v3932_v7, %v6586_v61  ;;  %v6542_v0 = vunpack.i.h.bf16 %v8586_v42 }
 0x5b8   : > { %v4058_v17 = vpack.c.bf16 %v4043_v50, %v4042_v37  ;;  %v6541_v5 = vunpack.i.l.bf16 %v8586_v42  ;;  %v6547_v30 = vunpack.i.h.bf16 %v8590_v3  ;;  %v6546_v45 = vunpack.i.l.bf16 %v8590_v3 }
 0x5b9   : > { %v8618_v55 = vpop.permute.xlu0 %6619  ;;  %v8620_v33 = vpop.permute.xlu1 %6604  ;;  %v3965_v44 = vsel %vm1926_vm5, %v3949_v14, %v6542_v0  ;;  %v6552_v6 = vunpack.i.h.bf16 %v8594_v27  ;;  %v6551_v42 = vunpack.i.l.bf16 %v8594_v27  ;;  %v6572_v41 = vunpack.i.h.bf16 %v8600_v13 }
 0x5ba   : > { %5799 = vmatprep.mubr.msk.bf16.mxu0 %vm2056_vm11, %v4058_v17  ;;  %v3964_v16 = vsel %vm1926_vm5, %v3948_v46, %v6541_v5  ;;  %v3981_v17 = vsel %vm1943_vm6, %v3965_v44, %v6547_v30  ;;  %v6571_v57 = vunpack.i.l.bf16 %v8600_v13  ;;  %v6577_v27 = vunpack.i.h.bf16 %v8597_v20 }
 0x5bb   : > { %v3980_v50 = vsel %vm1943_vm6, %v3964_v16, %v6546_v45  ;;  %v3997_v7 = vsel %vm1960_vm7, %v3981_v17, %v6552_v6  ;;  %v6576_v45 = vunpack.i.l.bf16 %v8597_v20 }
 0x5bc   : > { %v3996_v3 = vsel %vm1960_vm7, %v3980_v50, %v6551_v42 }
 0x5bd   : > { %v8623_v52 = vpop.permute.xlu0 %6624  ;;  %v8625_v48 = vpop.permute.xlu1 %6609 }
 0x5c1   : > { %v8627_v53 = vpop.permute.xlu0 %6629  ;;  %v8629_v25 = vpop.permute.xlu1 %6614 }
 0x5c5   : > { %v8637_v35 = vpop.permute.xlu0 %6639  ;;  %v8639_v19 = vpop.permute.xlu1 %6634 }
 0x5c9   : > { %v6655_v2 = vpop.permute.xlu0 %6654  ;;  %v6645_v11 = vpop.permute.xlu1 %6644 }
 0x5ca   : > { %v6647_v36 = vunpack.i.h.bf16 %v6645_v11  ;;  %v6646_v37 = vunpack.i.l.bf16 %v6645_v11  ;;  %v6657_v0 = vunpack.i.h.bf16 %v6655_v2  ;;  %v6656_v5 = vunpack.i.l.bf16 %v6655_v2 }
 0x5cb   : > { %v3935_v11 = vsel %vm1187_vm1, %v8442_v22, %v6572_v41 }
 0x5cc   : > { %v4012_v16 = vsel %vm1977_vm8, %v3996_v3, %v6646_v37  ;;  %v4013_v44 = vsel %vm1977_vm8, %v3997_v7, %v6647_v36  ;;  %v3934_v36 = vsel %vm1187_vm1, %v8440_v54, %v6571_v57  ;;  %v3951_v22 = vsel %vm1909_vm4, %v3935_v11, %v6577_v27 }
 0x5cd   : > { %v6670_v61 = vpop.permute.xlu0 %6669  ;;  %v6650_v62 = vpop.permute.xlu1 %6649  ;;  %v3950_v20 = vsel %vm1909_vm4, %v3934_v36, %v6576_v45  ;;  %v6622_v54 = vunpack.i.h.bf16 %v8618_v55  ;;  %v6621_v57 = vunpack.i.l.bf16 %v8618_v55  ;;  %v6626_v45 = vunpack.i.l.bf16 %v8623_v52 }
 0x5ce   : > { %v6652_v46 = vunpack.i.h.bf16 %v6650_v62  ;;  %v6651_v14 = vunpack.i.l.bf16 %v6650_v62  ;;  %v6672_v37 = vunpack.i.h.bf16 %v6670_v61  ;;  %v6671_v42 = vunpack.i.l.bf16 %v6670_v61 }
 0x5cf   : > { %v6632_v55 = vunpack.i.h.bf16 %v8627_v53  ;;  %v6631_v36 = vunpack.i.l.bf16 %v8627_v53 }
 0x5d0   : > { %v4028_v30 = vsel %vm1994_vm9, %v4012_v16, %v6651_v14  ;;  %v4029_v13 = vsel %vm1994_vm9, %v4013_v44, %v6652_v46  ;;  %v3966_v14 = vsel %vm1926_vm5, %v3950_v20, %v6671_v42 }
 0x5d1   : > { %v4044_v50 = vsel %vm2011_vm10, %v4028_v30, %v6656_v5  ;;  %v4045_v17 = vsel %vm2011_vm10, %v4029_v13, %v6657_v0  ;;  %v6675_v2 = vpop.permute.xlu0 %6674  ;;  %v6660_v6 = vpop.permute.xlu1 %6659  ;;  %v3967_v0 = vsel %vm1926_vm5, %v3951_v22, %v6672_v37  ;;  %v6627_v13 = vunpack.i.h.bf16 %v8623_v52 }
 0x5d2   : > { %v4059_v62 = vpack.c.bf16 %v4045_v17, %v4044_v50  ;;  %v6677_v3 = vunpack.i.h.bf16 %v6675_v2  ;;  %v6676_v7 = vunpack.i.l.bf16 %v6675_v2  ;;  %v6662_v22 = vunpack.i.h.bf16 %v6660_v6 }
 0x5d4   : > { %5800 = vmatmul.mubr.msk.bf16.vlgmr.msra.gmra.mrb[32].mxu0 %vm2056_vm11, %v4059_v62  ;;  %v3982_v61 = vsel %vm1943_vm6, %v3966_v14, %v6676_v7  ;;  %v3983_v44 = vsel %vm1943_vm6, %v3967_v0, %v6677_v3 }
 0x5d5   : > { %v6680_v41 = vpop.permute.xlu0 %6679  ;;  %v6665_v46 = vpop.permute.xlu1 %6664 }
 0x5d6   : > { %v6682_v5 = vunpack.i.h.bf16 %v6680_v41  ;;  %v6681_v16 = vunpack.i.l.bf16 %v6680_v41  ;;  %v6661_v41 = vunpack.i.l.bf16 %v6660_v6  ;;  %v6667_v14 = vunpack.i.h.bf16 %v6665_v46 }
 0x5d7   : > { %v6666_v0 = vunpack.i.l.bf16 %v6665_v46  ;;  %v6607_v6 = vunpack.i.h.bf16 %v8620_v33  ;;  %v6606_v46 = vunpack.i.l.bf16 %v8620_v33  ;;  %v6616_v33 = vunpack.i.l.bf16 %v8629_v25 }
 0x5d8   : > { %v3998_v30 = vsel %vm1960_vm7, %v3982_v61, %v6681_v16  ;;  %v3999_v27 = vsel %vm1960_vm7, %v3983_v44, %v6682_v5  ;;  %v3937_v16 = vsel %vm1187_vm1, %v8502_v58, %v6662_v22  ;;  %v6612_v58 = vunpack.i.h.bf16 %v8625_v48 }
 0x5d9   : > { %v4014_v11 = vsel %vm1977_vm8, %v3998_v30, %v6621_v57  ;;  %v4015_v50 = vsel %vm1977_vm8, %v3999_v27, %v6622_v54  ;;  %v8682_v17 = vpop.permute.xlu0 %6699  ;;  %v8684_v2 = vpop.permute.xlu1 %6684  ;;  %v3936_v54 = vsel %vm1187_vm1, %v8510_v9, %v6661_v41  ;;  %v3953_v61 = vsel %vm1909_vm4, %v3937_v16, %v6667_v14 }
 0x5da   : > { %v4030_v37 = vsel %vm1994_vm9, %v4014_v11, %v6626_v45  ;;  %v4031_v42 = vsel %vm1994_vm9, %v4015_v50, %v6627_v13  ;;  %v3952_v57 = vsel %vm1909_vm4, %v3936_v54, %v6666_v0  ;;  %v3969_v13 = vsel %vm1926_vm5, %v3953_v61, %v6607_v6 }
 0x5db   : > { %v4046_v62 = vsel %vm2011_vm10, %v4030_v37, %v6631_v36  ;;  %v4047_v52 = vsel %vm2011_vm10, %v4031_v42, %v6632_v55  ;;  %v3968_v27 = vsel %vm1926_vm5, %v3952_v57, %v6606_v46  ;;  %v6611_v9 = vunpack.i.l.bf16 %v8625_v48 }
 0x5dc   : > { %v4060_v20 = vpack.c.bf16 %v4047_v52, %v4046_v62  ;;  %v3985_v37 = vsel %vm1943_vm6, %v3969_v13, %v6612_v58  ;;  %v6617_v42 = vunpack.i.h.bf16 %v8629_v25  ;;  %v6637_v62 = vunpack.i.h.bf16 %v8639_v19 }
 0x5dd   : > { %v8692_v3 = vpop.permute.xlu0 %6704  ;;  %v8694_v7 = vpop.permute.xlu1 %6689  ;;  %v3984_v36 = vsel %vm1943_vm6, %v3968_v27, %v6611_v9  ;;  %v6636_v52 = vunpack.i.l.bf16 %v8639_v19  ;;  %v6642_v19 = vunpack.i.h.bf16 %v8637_v35  ;;  %v6641_v46 = vunpack.i.l.bf16 %v8637_v35 }
 0x5de   : > { %5803 = vmatprep.mubr.msk.bf16.mxu0 %vm2056_vm11, %v4060_v20  ;;  %v4000_v48 = vsel %vm1960_vm7, %v3984_v36, %v6616_v33  ;;  %v4001_v41 = vsel %vm1960_vm7, %v3985_v37, %v6617_v42 }
 0x5e1   : > { %v8697_v53 = vpop.permute.xlu0 %6709  ;;  %v8699_v5 = vpop.permute.xlu1 %6694 }
 0x5e5   : > { %v8707_v44 = vpop.permute.xlu0 %6719  ;;  %v8709_v30 = vpop.permute.xlu1 %6714 }
 0x5e9   : > { %v6735_v45 = vpop.permute.xlu0 %6734  ;;  %v6725_v11 = vpop.permute.xlu1 %6724 }
 0x5ea   : > { %v6727_v50 = vunpack.i.h.bf16 %v6725_v11  ;;  %v6726_v55 = vunpack.i.l.bf16 %v6725_v11  ;;  %v6737_v16 = vunpack.i.h.bf16 %v6735_v45  ;;  %v6736_v54 = vunpack.i.l.bf16 %v6735_v45 }
 0x5eb   : > { %v3939_v45 = vsel %vm1187_vm1, %v8482_v49, %v6637_v62  ;;  %v3938_v11 = vsel %vm1187_vm1, %v8480_v51, %v6636_v52  ;;  %v6702_v51 = vunpack.i.h.bf16 %v8682_v17  ;;  %v6701_v52 = vunpack.i.l.bf16 %v8682_v17 }
 0x5ec   : > { %v4016_v57 = vsel %vm1977_vm8, %v4000_v48, %v6726_v55  ;;  %v4017_v61 = vsel %vm1977_vm8, %v4001_v41, %v6727_v50  ;;  %v3954_v33 = vsel %vm1909_vm4, %v3938_v11, %v6641_v46  ;;  %v3955_v35 = vsel %vm1909_vm4, %v3939_v45, %v6642_v19 }
 0x5ed   : > { %v6750_v20 = vpop.permute.xlu0 %6749  ;;  %v6730_v22 = vpop.permute.xlu1 %6729  ;;  %v6712_v17 = vunpack.i.h.bf16 %v8697_v53 }
 0x5ee   : > { %v6732_v14 = vunpack.i.h.bf16 %v6730_v22  ;;  %v6731_v0 = vunpack.i.l.bf16 %v6730_v22  ;;  %v6752_v50 = vunpack.i.h.bf16 %v6750_v20  ;;  %v6751_v55 = vunpack.i.l.bf16 %v6750_v20 }
 0x5f0   : > { %v4032_v25 = vsel %vm1994_vm9, %v4016_v57, %v6731_v0  ;;  %v4033_v6 = vsel %vm1994_vm9, %v4017_v61, %v6732_v14  ;;  %v3970_v41 = vsel %vm1926_vm5, %v3954_v33, %v6751_v55  ;;  %v3971_v49 = vsel %vm1926_vm5, %v3955_v35, %v6752_v50 }
 0x5f1   : > { %v6755_v27 = vpop.permute.xlu0 %6754  ;;  %v6740_v13 = vpop.permute.xlu1 %6739  ;;  %v4048_v58 = vsel %vm2011_vm10, %v4032_v25, %v6736_v54  ;;  %v4049_v9 = vsel %vm2011_vm10, %v4033_v6, %v6737_v16  ;;  %v6707_v57 = vunpack.i.h.bf16 %v8692_v3  ;;  %v6706_v61 = vunpack.i.l.bf16 %v8692_v3 }
 0x5f2   : > { %v6757_v36 = vunpack.i.h.bf16 %v6755_v27  ;;  %v6756_v37 = vunpack.i.l.bf16 %v6755_v27  ;;  %v4061_v42 = vpack.c.bf16 %v4049_v9, %v4048_v58  ;;  %v6711_v27 = vunpack.i.l.bf16 %v8697_v53 }
 0x5f3   : > { %v6742_v58 = vunpack.i.h.bf16 %v6740_v13  ;;  %v6741_v9 = vunpack.i.l.bf16 %v6740_v13 }
 0x5f4   : > { %5804 = vmatmul.mubr.msk.bf16.gmra.mrb[36].mxu0 %vm2056_vm11, %v4061_v42  ;;  %v3986_v20 = vsel %vm1943_vm6, %v3970_v41, %v6756_v37  ;;  %v3987_v0 = vsel %vm1943_vm6, %v3971_v49, %v6757_v36  ;;  %v6686_v41 = vunpack.i.l.bf16 %v8684_v2  ;;  %v6716_v49 = vunpack.i.l.bf16 %v8709_v30 }
 0x5f5   : > { %v6760_v22 = vpop.permute.xlu0 %6759  ;;  %v6745_v48 = vpop.permute.xlu1 %6744  ;;  %v3941_v53 = vsel %vm1187_vm1, %v8552_v24, %v6742_v58  ;;  %v3940_v13 = vsel %vm1187_vm1, %v8556_v39, %v6741_v9  ;;  %v6692_v39 = vunpack.i.h.bf16 %v8694_v7  ;;  %v6722_v58 = vunpack.i.h.bf16 %v8707_v44 }
 0x5f6   : > { %v6762_v62 = vunpack.i.h.bf16 %v6760_v22  ;;  %v6761_v14 = vunpack.i.l.bf16 %v6760_v22  ;;  %v6747_v50 = vunpack.i.h.bf16 %v6745_v48  ;;  %v6746_v3 = vunpack.i.l.bf16 %v6745_v48 }
 0x5f7   : > { %v6687_v48 = vunpack.i.h.bf16 %v8684_v2  ;;  %v3942_v2 = vsel %vm1187_vm1, %v8538_v10, %v6716_v49 }
 0x5f8   : > { %v4002_v16 = vsel %vm1960_vm7, %v3986_v20, %v6761_v14  ;;  %v4003_v54 = vsel %vm1960_vm7, %v3987_v0, %v6762_v62  ;;  %v3956_v35 = vsel %vm1909_vm4, %v3940_v13, %v6746_v3  ;;  %v3957_v22 = vsel %vm1909_vm4, %v3941_v53, %v6747_v50 }
 0x5f9   : > { %v4018_v25 = vsel %vm1977_vm8, %v4002_v16, %v6701_v52  ;;  %v4019_v6 = vsel %vm1977_vm8, %v4003_v54, %v6702_v51  ;;  %v8752_v19 = vpop.permute.xlu0 %6779  ;;  %v8754_v46 = vpop.permute.xlu1 %6764  ;;  %v3972_v24 = vsel %vm1926_vm5, %v3956_v35, %v6686_v41  ;;  %v3973_v51 = vsel %vm1926_vm5, %v3957_v22, %v6687_v48 }
 0x5fa   : > { %v4034_v45 = vsel %vm1994_vm9, %v4018_v25, %v6706_v61  ;;  %v4035_v11 = vsel %vm1994_vm9, %v4019_v6, %v6707_v57  ;;  %v6691_v52 = vunpack.i.l.bf16 %v8694_v7  ;;  %v6721_v20 = vunpack.i.l.bf16 %v8707_v44 }
 0x5fb   : > { %v4050_v55 = vsel %vm2011_vm10, %v4034_v45, %v6711_v27  ;;  %v4051_v36 = vsel %vm2011_vm10, %v4035_v11, %v6712_v17  ;;  %v6717_v0 = vunpack.i.h.bf16 %v8709_v30  ;;  %v3989_v61 = vsel %vm1943_vm6, %v3973_v51, %v6692_v39 }
 0x5fc   : > { %v4062_v33 = vpack.c.bf16 %v4051_v36, %v4050_v55  ;;  %v3988_v57 = vsel %vm1943_vm6, %v3972_v24, %v6691_v52  ;;  %v6697_v25 = vunpack.i.h.bf16 %v8699_v5  ;;  %v6696_v6 = vunpack.i.l.bf16 %v8699_v5 }
 0x5fd   : > { %v8762_v37 = vpop.permute.xlu0 %6784  ;;  %v8764_v42 = vpop.permute.xlu1 %6769  ;;  %v6537_v7 = vunpack.i.h.bf16 %v8580_v60  ;;  %v3943_v30 = vsel %vm1187_vm1, %v8532_v34, %v6717_v0  ;;  %v3958_v10 = vsel %vm1909_vm4, %v3942_v2, %v6721_v20  ;;  %v6782_v22 = vunpack.i.h.bf16 %v8752_v19 }
 0x5fe   : > { %5807 = vmatprep.mubr.msk.bf16.mxu0 %vm2056_vm11, %v4062_v33  ;;  %v4004_v11 = vsel %vm1960_vm7, %v3988_v57, %v6696_v6  ;;  %v4005_v50 = vsel %vm1960_vm7, %v3989_v61, %v6697_v25  ;;  %v3959_v48 = vsel %vm1909_vm4, %v3943_v30, %v6722_v58  ;;  %v6787_v24 = vunpack.i.h.bf16 %v8762_v37 }
 0x5ff   : > { %v6786_v57 = vunpack.i.l.bf16 %v8762_v37  ;;  %v6536_v30 = vunpack.i.l.bf16 %v8580_v60  ;;  %v4336_v60 = vld [vmem:[#allocation2 + $0x2] sm:$0xff] }
 0x601   : > { %v8776_v62 = vpop.permute.xlu1 %6774  ;;  %v6800_v14 = vpop.permute.xlu0 %6799 }
 0x602   : > { %v6802_v9 = vunpack.i.h.bf16 %v6800_v14  ;;  %v6801_v45 = vunpack.i.l.bf16 %v6800_v14  ;;  %v6781_v14 = vunpack.i.l.bf16 %v8752_v19 }
 0x605   : > { %v6790_v16 = vpop.permute.xlu1 %6789  ;;  %v6820_v54 = vpop.permute.xlu0 %6819 }
 0x606   : > { %v6792_v17 = vunpack.i.h.bf16 %v6790_v16  ;;  %v6791_v27 = vunpack.i.l.bf16 %v6790_v16  ;;  %v6822_v5 = vunpack.i.h.bf16 %v6820_v54  ;;  %v6821_v36 = vunpack.i.l.bf16 %v6820_v54 }
 0x608   : > { %v4021_v13 = vsel %vm1977_vm8, %v4005_v50, %v6792_v17  ;;  %v4020_v44 = vsel %vm1977_vm8, %v4004_v11, %v6791_v27  ;;  %v3975_v0 = vsel %vm1926_vm5, %v3959_v48, %v6822_v5  ;;  %v3974_v2 = vsel %vm1926_vm5, %v3958_v10, %v6821_v36 }
 0x609   : > { %v6795_v3 = vpop.permute.xlu1 %6794  ;;  %v6825_v55 = vpop.permute.xlu0 %6824  ;;  %v6766_v36 = vunpack.i.l.bf16 %v8754_v46  ;;  %v6771_v48 = vunpack.i.l.bf16 %v8764_v42 }
 0x60a   : > { %v6797_v33 = vunpack.i.h.bf16 %v6795_v3  ;;  %v6796_v53 = vunpack.i.l.bf16 %v6795_v3  ;;  %v6827_v35 = vunpack.i.h.bf16 %v6825_v55  ;;  %v6826_v34 = vunpack.i.l.bf16 %v6825_v55 }
 0x60c   : > { %v4036_v41 = vsel %vm1994_vm9, %v4020_v44, %v6796_v53  ;;  %v4037_v49 = vsel %vm1994_vm9, %v4021_v13, %v6797_v33  ;;  %v3990_v61 = vsel %vm1943_vm6, %v3974_v2, %v6826_v34  ;;  %v3991_v19 = vsel %vm1943_vm6, %v3975_v0, %v6827_v35 }
 0x60d   : > { %v6830_v51 = vpop.permute.xlu0 %6829  ;;  %v6805_v39 = vpop.permute.xlu1 %6804  ;;  %v4052_v52 = vsel %vm2011_vm10, %v4036_v41, %v6801_v45  ;;  %v4053_v20 = vsel %vm2011_vm10, %v4037_v49, %v6802_v9  ;;  %v6767_v9 = vunpack.i.h.bf16 %v8754_v46  ;;  %v6772_v33 = vunpack.i.h.bf16 %v8764_v42 }
 0x60e   : > { %v6832_v16 = vunpack.i.h.bf16 %v6830_v51  ;;  %v6831_v54 = vunpack.i.l.bf16 %v6830_v51  ;;  %v4063_v25 = vpack.c.bf16 %v4053_v20, %v4052_v52  ;;  %v6807_v27 = vunpack.i.h.bf16 %v6805_v39 }
 0x60f   : > { %v6806_v58 = vunpack.i.l.bf16 %v6805_v39  ;;  %v6776_v51 = vunpack.i.l.bf16 %v8776_v62 }
 0x610   : > { %v4006_v6 = vsel %vm1960_vm7, %v3990_v61, %v6831_v54  ;;  %v4007_v17 = vsel %vm1960_vm7, %v3991_v19, %v6832_v16  ;;  %5808 = vmatmul.mubr.msk.bf16.gmra.mrb[40].mxu0 %vm2056_vm11, %v4063_v25  ;;  %v3945_v35 = vsel %vm1187_vm1, %v8572_v8, %v6807_v27 }
 0x611   : > { %v4022_v10 = vsel %vm1977_vm8, %v4006_v6, %v6781_v14  ;;  %v4023_v45 = vsel %vm1977_vm8, %v4007_v17, %v6782_v22  ;;  %v6835_v37 = vpop.permute.xlu0 %6834  ;;  %v6810_v11 = vpop.permute.xlu1 %6809  ;;  %v3944_v44 = vsel %vm1187_vm1, %v8576_v1, %v6806_v58  ;;  %v4320_v58 = vld [vmem:[#allocation2 + $0x1] sm:$0xff] }
 0x612   : > { %v6837_v50 = vunpack.i.h.bf16 %v6835_v37  ;;  %v6836_v3 = vunpack.i.l.bf16 %v6835_v37  ;;  %v4038_v55 = vsel %vm1994_vm9, %v4022_v10, %v6786_v57  ;;  %v4039_v5 = vsel %vm1994_vm9, %v4023_v45, %v6787_v24  ;;  %v4337_v10 = vld [vmem:[#allocation2 + $0xa] sm:$0xff]  ;;  %v4415_v45 = vld [vmem:[#allocation2 + $0xe0] sm:$0xff] }
 0x613   : > { %v6812_v53 = vunpack.i.h.bf16 %v6810_v11  ;;  %v6811_v13 = vunpack.i.l.bf16 %v6810_v11  ;;  %v6777_v24 = vunpack.i.h.bf16 %v8776_v62  ;;  %v6848_v37 = vpack.i.bf16 %v4337_v10, %v4336_v60 }
 0x614   : > { %v4054_v34 = vsel %vm2011_vm10, %v4038_v55, %v6836_v3  ;;  %v4055_v22 = vsel %vm2011_vm10, %v4039_v5, %v6837_v50  ;;  %v8856_v50 = vld [vmem:[%s9426_s12] ss:$0 sm:$0xff] }
 0x615   : > { %v4064_v41 = vpack.c.bf16 %v4055_v22, %v4054_v34  ;;  %v3960_v49 = vsel %vm1909_vm4, %v3944_v44, %v6811_v13  ;;  %v3961_v46 = vsel %vm1909_vm4, %v3945_v35, %v6812_v53  ;;  %v6815_v14 = vpop.permute.xlu1 %6814  ;;  %v8861_v55 = vld [vmem:[%s9427_s13] ss:$0 sm:$0xff] }
 0x616   : > { %v3976_v1 = vsel %vm1926_vm5, %v3960_v49, %v6766_v36  ;;  %v3977_v8 = vsel %vm1926_vm5, %v3961_v46, %v6767_v9  ;;  %v6817_v20 = vunpack.i.h.bf16 %v6815_v14  ;;  %v6816_v42 = vunpack.i.l.bf16 %v6815_v14 }
 0x617   : > { %v3992_v39 = vsel %vm1943_vm6, %v3976_v1, %v6771_v48  ;;  %v3993_v52 = vsel %vm1943_vm6, %v3977_v8, %v6772_v33  ;;  %5811 = vmatprep.mubr.msk.bf16.mxu0 %vm2056_vm11, %v4064_v41  ;;  %v9486_v8 = vmax.f32 %v7513_v29, 0.0 }
 0x618   : > { %v4008_v0 = vsel %vm1960_vm7, %v3992_v39, %v6776_v51  ;;  %v4009_v2 = vsel %vm1960_vm7, %v3993_v52, %v6777_v24  ;;  %v9487_v52 = vmax.f32 %v7516_v32, 0.0 }
 0x619   : > { %v4024_v16 = vsel %vm1977_vm8, %v4008_v0, %v6536_v30  ;;  %v4025_v62 = vsel %vm1977_vm8, %v4009_v2, %v6537_v7  ;;  %v6840_v54 = vpop.permute.xlu1 %6839  ;;  %v4321_v30 = vld [vmem:[#allocation2 + $0x9] sm:$0xff]  ;;  %v4414_v7 = vld [vmem:[#allocation2 + $0xd8] sm:$0xff] }
 0x61a   : > { %v6842_v57 = vunpack.i.h.bf16 %v6840_v54  ;;  %v6841_v61 = vunpack.i.l.bf16 %v6840_v54  ;;  %v4040_v19 = vsel %vm1994_vm9, %v4024_v16, %v6816_v42  ;;  %v4041_v25 = vsel %vm1994_vm9, %v4025_v62, %v6817_v20 }
 0x61b   : > { %v6843_v9 = vpack.i.bf16 %v4321_v30, %v4320_v58  ;;  %v6853_v11 = vpack.i.bf16 %v4415_v45, %v4414_v7 }
 0x61c   : > { %v4056_v6 = vsel %vm2011_vm10, %v4040_v19, %v6841_v61  ;;  %v4057_v17 = vsel %vm2011_vm10, %v4041_v25, %v6842_v57 }
 0x61d   : > { %v4065_v27 = vpack.c.bf16 %v4057_v17, %v4056_v6  ;;  %6844 = vrot.lane.b32.xlu0 %v6843_v9, %s9482_s23  ;;  %6854 = vrot.lane.b32.xlu1 %v6853_v11, %s9483_s3 }
 0x61f   : > { %5812 = vmatmul.mubr.msk.bf16.gmra.mrb[44].mxu0 %vm2056_vm11, %v4065_v27 }
 0x621   : > { %6849 = vrot.lane.b32.xlu0 %v6848_v37, %s9478_s24 }
 0x6a7   : > { %v5801_v3 = vpop.f32.mrb[32].mxu0 }
 0x6a8   : > { %v4219_v5 = vmul.f32 %v5801_v3, %v8856_v50  ;;  %v4147_v36 = vpop.f32.mrb[33].mxu0 }
 0x6a9   : > { %v4217_v33 = vmul.f32 %v8856_v50, %v4147_v36  ;;  %v5802_v53 = vpop.f32.mrb[34].mxu0 }
 0x6aa   : > { %v4242_v13 = vadd.f32 %v8861_v55, %v4219_v5  ;;  %v4220_v44 = vmul.f32 %v5802_v53, %v8856_v50  ;;  %v4150_v35 = vpop.f32.mrb[35].mxu0  ;;  %v9488_v53 = vmax.f32 %v7532_v38, 0.0 }
 0x6ab   : > { %v4240_v34 = vadd.f32 %v8861_v55, %v4217_v33  ;;  %v4218_v22 = vmul.f32 %v8856_v50, %v4150_v35  ;;  %v9489_v35 = vmax.f32 %v7534_v40, 0.0 }
 0x6ac   : > { %v4258_v48 = vmax.f32 %v4242_v13, 0.0  ;;  %v4243_v41 = vadd.f32 %v8861_v55, %v4220_v44 }
 0x6ad   : > { %v4256_v49 = vmax.f32 %v4240_v34, 0.0  ;;  %v4241_v46 = vadd.f32 %v8861_v55, %v4218_v22 }
 0x6ae   : > { %v4274_v14 = vadd.f32 %v4258_v48, %v1173_v28  ;;  %v4259_v24 = vmax.f32 %v4243_v41, 0.0  ;;  %v9490_v48 = vmax.f32 %v7537_v43, 0.0 }
 0x6af   : > { %v4272_v51 = vadd.f32 %v4256_v49, %v1171_v31  ;;  %v4257_v1 = vmax.f32 %v4241_v46, 0.0  ;;  %v9491_v49 = vmax.f32 %v7540_v47, 0.0  ;;  %v7188_v47 = vld [vmem:[%s9428_s14] sm:$0xff]  }
 0x6b0   : > { %4290 = vst.msk [vmem:[#allocation2 + $0x31] sm:$0xff] %vm1187_vm1, %v4274_v14  ;;  %v4275_v39 = vadd.f32 %v4259_v24, %v9486_v8  ;;  %5815 = vmatprep.subr.bf16.mxu1 %v7188_v47 }
 0x6b1   : > { %4288 = vst.msk [vmem:[#allocation2 + $0x19] sm:$0xff] %vm1187_vm1, %v4272_v51  ;;  %v4273_v20 = vadd.f32 %v4257_v1, %v9487_v52  ;;  %5816 = vmatpush3.bf16.msra.mxu1 %v7188_v47 }
 0x6b2   : > { %4291 = vst.msk [vmem:[#allocation2 + $0x39] sm:$0xff] %vm1187_vm1, %v4275_v39  ;;  %v7189_v39 = vld [vmem:[%s9428_s14 + $0x8] sm:$0xff]  }
 0x6b3   : > { %4289 = vst.msk [vmem:[#allocation2 + $0x21] sm:$0xff] %vm1187_vm1, %v4273_v20  ;;  %5817 = vmatprep.subr.bf16.mxu1 %v7189_v39 }
 0x6b5   : > { %5818 = vmatpush3.bf16.msra.mxu1 %v7189_v39  ;;  %v9496_v39 = vmax.f32 %v7590_v12, 0.0 }
 0x6b7   : > { %v8883_v23 = vld [vmem:[#allocation2 + $0x30] sm:$0xff] }
 0x6b8   : > { %v4416_v29 = vld [vmem:[#allocation2 + $0x31] sm:$0xff]  ;;  %v4322_v25 = vld [vmem:[#allocation2 + $0x19] sm:$0xff] }
 0x6b9   : > { %v8885_v28 = vld [vmem:[#allocation2 + $0x38] sm:$0xff] }
 0x6ba   : > { %v6873_v26 = vpack.i.bf16 %v8885_v28, %v8883_v23  ;;  %v4417_v31 = vld [vmem:[#allocation2 + $0x39] sm:$0xff]  ;;  %v4323_v62 = vld [vmem:[#allocation2 + $0x21] sm:$0xff] }
 0x6bb   : > { %v6878_v42 = vpack.i.bf16 %v4417_v31, %v4416_v29  ;;  %v4432_v32 = vld [vmem:[#allocation2 + $0x32] sm:$0xff]  ;;  %v4433_v0 = vld [vmem:[#allocation2 + $0x3a] sm:$0xff]  ;;  %v6898_v58 = vpack.i.bf16 %v4323_v62, %v4322_v25  ;;  %v4339_v7 = vld [vmem:[#allocation2 + $0x22] sm:$0xff] }
 0x6bc   : > { %6874 = vrot.lane.b32.xlu0 %v6873_v26, %s9483_s3  ;;  %6859 = vrot.lane.b32.xlu1 %v6873_v26, %s9479_s26  ;;  %v6883_v2 = vpack.i.bf16 %v4433_v0, %v4432_v32  ;;  %v8895_v16 = vld [vmem:[#allocation2 + $0x20] sm:$0xff]  ;;  %v8900_v19 = vld [vmem:[#allocation2 + $0x18] sm:$0xff]  ;;  %v7190_v29 = vld [vmem:[%s9428_s14 + $0x10] ss:$0 sps:$4 sm:$0x33]  }
 0x6bd   : > { %v6908_v27 = vpack.i.bf16 %v8895_v16, %v8900_v19  ;;  %v4338_v10 = vld [vmem:[#allocation2 + $0x1a] sm:$0xff]  ;;  %5860 = vmatprep.subr.msk.bf16.mxu1 %vm2081_vm3, %v7190_v29 }
 0x6be   : > { %v6903_v33 = vpack.i.bf16 %v4339_v7, %v4338_v10  ;;  %v9492_v10 = vmax.f32 %v7562_v56, 0.0  ;;  %v9495_v56 = vmax.f32 %v7572_v4, 0.0 }
 0x6c0   : > { %6879 = vrot.lane.b32.xlu0 %v6878_v42, %s9484_s25  ;;  %6864 = vrot.lane.b32.xlu1 %v6878_v42, %s9485_s28 }
 0x6c4   : > { %6884 = vrot.lane.b32.xlu0 %v6883_v2, %s9480_s20  ;;  %6869 = vrot.lane.b32.xlu1 %v6883_v2, %s9481_s21 }
 0x6c7   : > { %v5805_v54 = vpop.f32.mrb[36].mxu0 }
 0x6c8   : > { %6894 = vrot.lane.b32.xlu0 %v6883_v2, %s9478_s24  ;;  %6889 = vrot.lane.b32.xlu1 %v6878_v42, %s9482_s23  ;;  %v4223_v57 = vmul.f32 %v5805_v54, %v8856_v50  ;;  %v4163_v61 = vpop.f32.mrb[37].mxu0  ;;  %v5141_v54 = vsel %vm2081_vm3, %v7190_v29, 0 }
 0x6c9   : > { %v4221_v6 = vmul.f32 %v8856_v50, %v4163_v61  ;;  %v5806_v17 = vpop.f32.mrb[38].mxu0  ;;  %5820 = vmatpush3.bf16.msra.mxu1 %v5141_v54 }
 0x6ca   : > { %v4246_v30 = vadd.f32 %v8861_v55, %v4223_v57  ;;  %v4224_v9 = vmul.f32 %v5806_v17, %v8856_v50  ;;  %v4166_v60 = vpop.f32.mrb[39].mxu0 }
 0x6cb   : > { %v4244_v45 = vadd.f32 %v8861_v55, %v4221_v6  ;;  %v4222_v37 = vmul.f32 %v8856_v50, %v4166_v60 }
 0x6cc   : > { %6909 = vrot.lane.b32.xlu0 %v6908_v27, %s9479_s26  ;;  %6899 = vrot.lane.b32.xlu1 %v6898_v58, %s9482_s23  ;;  %v4262_v11 = vmax.f32 %v4246_v30, 0.0  ;;  %v4247_v3 = vadd.f32 %v8861_v55, %v4224_v9 }
 0x6cd   : > { %v4260_v5 = vmax.f32 %v4244_v45, 0.0  ;;  %v4245_v36 = vadd.f32 %v8861_v55, %v4222_v37 }
 0x6ce   : > { %v4278_v13 = vadd.f32 %v4262_v11, %v9488_v53  ;;  %v4263_v44 = vmax.f32 %v4247_v3, 0.0  ;;  %v9493_v3 = vmax.f32 %v7566_v59, 0.0  ;;  %v9494_v53 = vmax.f32 %v7569_v63, 0.0 }
 0x6cf   : > { %v4276_v34 = vadd.f32 %v4260_v5, %v9489_v35  ;;  %v4261_v22 = vmax.f32 %v4245_v36, 0.0 }
 0x6d0   : > { %6914 = vrot.lane.b32.xlu0 %v6898_v58, %s9485_s28  ;;  %6904 = vrot.lane.b32.xlu1 %v6903_v33, %s9478_s24  ;;  %4294 = vst.msk [vmem:[#allocation2 + $0x61] sm:$0xff] %vm1187_vm1, %v4278_v13  ;;  %v4279_v41 = vadd.f32 %v4263_v44, %v9490_v48 }
 0x6d1   : > { %4292 = vst.msk [vmem:[#allocation2 + $0x49] sm:$0xff] %vm1187_vm1, %v4276_v34  ;;  %v4277_v38 = vadd.f32 %v4261_v22, %v9491_v49 }
 0x6d2   : > { %4295 = vst.msk [vmem:[#allocation2 + $0x69] sm:$0xff] %vm1187_vm1, %v4279_v41 }
 0x6d3   : > { %4293 = vst.msk [vmem:[#allocation2 + $0x51] sm:$0xff] %vm1187_vm1, %v4277_v38 }
 0x6d4   : > { %6919 = vrot.lane.b32.xlu0 %v6903_v33, %s9481_s21 }
 0x6d7   : > { %v8928_v40 = vld [vmem:[#allocation2 + $0x60] sm:$0xff] }
 0x6d8   : > { %v4420_v24 = vld [vmem:[#allocation2 + $0x61] sm:$0xff]  ;;  %v4418_v35 = vld [vmem:[#allocation2 + $0x49] sm:$0xff] }
 0x6d9   : > { %v8930_v46 = vld [vmem:[#allocation2 + $0x68] sm:$0xff] }
 0x6da   : > { %v6938_v14 = vpack.i.bf16 %v8930_v46, %v8928_v40  ;;  %v4421_v43 = vld [vmem:[#allocation2 + $0x69] sm:$0xff]  ;;  %v4435_v6 = vld [vmem:[#allocation2 + $0x52] sm:$0xff] }
 0x6db   : > { %v6943_v51 = vpack.i.bf16 %v4421_v43, %v4420_v24  ;;  %v4436_v1 = vld [vmem:[#allocation2 + $0x62] sm:$0xff]  ;;  %v4437_v8 = vld [vmem:[#allocation2 + $0x6a] sm:$0xff] }
 0x6dc   : > { %6939 = vrot.lane.b32.xlu0 %v6938_v14, %s9483_s3  ;;  %6924 = vrot.lane.b32.xlu1 %v6938_v14, %s9479_s26  ;;  %v6948_v52 = vpack.i.bf16 %v4437_v8, %v4436_v1  ;;  %v4434_v25 = vld [vmem:[#allocation2 + $0x4a] sm:$0xff] }
 0x6dd   : > { %v8957_v17 = vld [vmem:[#allocation2 + $0x50] sm:$0xff]  ;;  %v8963_v60 = vld [vmem:[#allocation2 + $0x48] sm:$0xff]  ;;  %v6973_v37 = vpack.i.bf16 %v4435_v6, %v4434_v25 }
 0x6de   : > { %v6963_v11 = vpack.i.bf16 %v8957_v17, %v8963_v60  ;;  %v4419_v33 = vld [vmem:[#allocation2 + $0x51] sm:$0xff] }
 0x6df   : > { %v6968_v59 = vpack.i.bf16 %v4419_v33, %v4418_v35 }
 0x6e0   : > { %6944 = vrot.lane.b32.xlu0 %v6943_v51, %s9484_s25  ;;  %6929 = vrot.lane.b32.xlu1 %v6943_v51, %s9485_s28 }
 0x6e3   : > { %v5809_v20 = vpop.f32.mrb[40].mxu0 }
 0x6e4   : > { %v4227_v26 = vmul.f32 %v5809_v20, %v8856_v50  ;;  %v4179_v31 = vpop.f32.mrb[41].mxu0  ;;  %6949 = vrot.lane.b32.xlu0 %v6948_v52, %s9480_s20  ;;  %6934 = vrot.lane.b32.xlu1 %v6948_v52, %s9481_s21 }
 0x6e5   : > { %v4225_v42 = vmul.f32 %v8856_v50, %v4179_v31  ;;  %v5810_v32 = vpop.f32.mrb[42].mxu0 }
 0x6e6   : > { %v4250_v0 = vadd.f32 %v8861_v55, %v4227_v26  ;;  %v4228_v2 = vmul.f32 %v5810_v32, %v8856_v50  ;;  %v4182_v62 = vpop.f32.mrb[43].mxu0  ;;  %v9497_v26 = vmax.f32 %v7594_v15, 0.0  ;;  %v9499_v32 = vmax.f32 %v7600_v21, 0.0 }
 0x6e7   : > { %v4248_v57 = vadd.f32 %v8861_v55, %v4225_v42  ;;  %v4226_v61 = vmul.f32 %v8856_v50, %v4182_v62 }
 0x6e8   : > { %v4266_v27 = vmax.f32 %v4250_v0, 0.0  ;;  %v4251_v58 = vadd.f32 %v8861_v55, %v4228_v2  ;;  %6959 = vrot.lane.b32.xlu0 %v6948_v52, %s9478_s24  ;;  %6954 = vrot.lane.b32.xlu1 %v6943_v51, %s9482_s23 }
 0x6e9   : > { %v4264_v30 = vmax.f32 %v4248_v57, 0.0  ;;  %v4249_v9 = vadd.f32 %v8861_v55, %v4226_v61 }
 0x6ea   : > { %v4282_v7 = vadd.f32 %v4266_v27, %v9492_v10  ;;  %v4267_v45 = vmax.f32 %v4251_v58, 0.0 }
 0x6eb   : > { %v4280_v5 = vadd.f32 %v4264_v30, %v9493_v3  ;;  %v4265_v36 = vmax.f32 %v4249_v9, 0.0 }
 0x6ec   : > { %4298 = vst.msk [vmem:[#allocation2 + $0x91] sm:$0xff] %vm1187_vm1, %v4282_v7  ;;  %v4283_v13 = vadd.f32 %v4267_v45, %v9494_v53  ;;  %6974 = vrot.lane.b32.xlu0 %v6973_v37, %s9480_s20  ;;  %6964 = vrot.lane.b32.xlu1 %v6963_v11, %s9483_s3 }
 0x6ed   : > { %4296 = vst.msk [vmem:[#allocation2 + $0x79] sm:$0xff] %vm1187_vm1, %v4280_v5  ;;  %v4281_v44 = vadd.f32 %v4265_v36, %v9495_v56  ;;  %v6845_v56 = vpop.permute.xlu0 %6844 }
 0x6ee   : > { %4299 = vst.msk [vmem:[#allocation2 + $0x99] sm:$0xff] %vm1187_vm1, %v4283_v13 }
 0x6ef   : > { %4297 = vst.msk [vmem:[#allocation2 + $0x81] sm:$0xff] %vm1187_vm1, %v4281_v44 }
 0x6f0   : > { %6989 = vrot.lane.b32.xlu0 %v6963_v11, %s9479_s26  ;;  %6969 = vrot.lane.b32.xlu1 %v6968_v59, %s9484_s25 }
 0x6f2   : > { %v5813_v63 = vpop.f32.mrb[44].mxu0 }
 0x6f3   : > { %v4231_v34 = vmul.f32 %v5813_v63, %v8856_v50  ;;  %v4195_v22 = vpop.f32.mrb[45].mxu0  ;;  %v9001_v29 = vld [vmem:[#allocation2 + $0x90] sm:$0xff] }
 0x6f4   : > { %v4229_v48 = vmul.f32 %v8856_v50, %v4195_v22  ;;  %v5814_v41 = vpop.f32.mrb[46].mxu0  ;;  %6994 = vrot.lane.b32.xlu0 %v6968_v59, %s9485_s28  ;;  %6979 = vrot.lane.b32.xlu1 %v6968_v59, %s9482_s23  ;;  %v4424_v15 = vld [vmem:[#allocation2 + $0x91] sm:$0xff]  ;;  %v4422_v9 = vld [vmem:[#allocation2 + $0x79] sm:$0xff]  ;;  %v6850_v22 = vpop.permute.xlu0 %6849 }
 0x6f5   : > { %v4254_v4 = vadd.f32 %v8861_v55, %v4231_v34  ;;  %v4232_v49 = vmul.f32 %v5814_v41, %v8856_v50  ;;  %v4198_v38 = vpop.f32.mrb[47].mxu0  ;;  %v8993_v8 = vld [vmem:[#allocation2 + $0x98] sm:$0xff] }
 0x6f6   : > { %v4252_v14 = vadd.f32 %v8861_v55, %v4229_v48  ;;  %v4230_v43 = vmul.f32 %v8856_v50, %v4198_v38  ;;  %v7018_v12 = vpack.i.bf16 %v8993_v8, %v9001_v29  ;;  %v4425_v2 = vld [vmem:[#allocation2 + $0x99] sm:$0xff]  ;;  %v4439_v61 = vld [vmem:[#allocation2 + $0x82] sm:$0xff]  ;;  %v9047_v48 = vpop.permute.xlu1 %6854 }
 0x6f7   : > { %v4270_v47 = vmax.f32 %v4254_v4, 0.0  ;;  %v4255_v24 = vadd.f32 %v8861_v55, %v4232_v49  ;;  %v4440_v62 = vld [vmem:[#allocation2 + $0x92] sm:$0xff]  ;;  %v4441_v54 = vld [vmem:[#allocation2 + $0x9a] sm:$0xff] }
 0x6f8   : > { %v4268_v51 = vmax.f32 %v4252_v14, 0.0  ;;  %v4253_v1 = vadd.f32 %v8861_v55, %v4230_v43  ;;  %6999 = vrot.lane.b32.xlu0 %v6973_v37, %s9481_s21  ;;  %6984 = vrot.lane.b32.xlu1 %v6973_v37, %s9478_s24  ;;  %v9498_v55 = vmax.f32 %v7597_v18, 0.0  ;;  %v7023_v18 = vpack.i.bf16 %v4425_v2, %v4424_v15  ;;  %v4438_v21 = vld [vmem:[#allocation2 + $0x7a] sm:$0xff]  ;;  %v4305_v2 = vld [vmem:[#allocation2 + $0x8] sm:$0xff] }
 0x6f9   : > { %v4286_v52 = vadd.f32 %v4270_v47, %v9496_v39  ;;  %v4271_v20 = vmax.f32 %v4255_v24, 0.0  ;;  %v7028_v57 = vpack.i.bf16 %v4441_v54, %v4440_v62  ;;  %v9019_v25 = vld [vmem:[#allocation2 + $0x80] sm:$0xff]  ;;  %v9023_v6 = vld [vmem:[#allocation2 + $0x78] sm:$0xff]  ;;  %v7053_v27 = vpack.i.bf16 %v4439_v61, %v4438_v21 }
 0x6fa   : > { %v4284_v31 = vadd.f32 %v4268_v51, %v9497_v26  ;;  %v4269_v50 = vmax.f32 %v4253_v1, 0.0  ;;  %v7043_v58 = vpack.i.bf16 %v9019_v25, %v9023_v6  ;;  %v4423_v30 = vld [vmem:[#allocation2 + $0x81] sm:$0xff]  ;;  %v4430_v47 = vld [vmem:[#allocation2 + $0xd9] sm:$0xff]  ;;  %v6852_v15 = vunpack.i.h.bf16 %v6850_v22 }
 0x6fb   : > { %4302 = vst.msk [vmem:[#allocation2 + $0xc1] sm:$0xff] %vm1187_vm1, %v4286_v52  ;;  %v4287_v42 = vadd.f32 %v4271_v20, %v9498_v55  ;;  %v7048_v10 = vpack.i.bf16 %v4423_v30, %v4422_v9  ;;  %v4431_v24 = vld [vmem:[#allocation2 + $0xe1] sm:$0xff] }
 0x6fc   : > { %4300 = vst.msk [vmem:[#allocation2 + $0xa9] sm:$0xff] %vm1187_vm1, %v4284_v31  ;;  %v4285_v0 = vadd.f32 %v4269_v50, %v9499_v32  ;;  %7019 = vrot.lane.b32.xlu0 %v7018_v12, %s9483_s3  ;;  %7004 = vrot.lane.b32.xlu1 %v7018_v12, %s9479_s26  ;;  %v7133_v1 = vpack.i.bf16 %v4431_v24, %v4430_v47  ;;  %v4446_v52 = vld [vmem:[#allocation2 + $0xda] sm:$0xff]  ;;  %v4447_v20 = vld [vmem:[#allocation2 + $0xe2] sm:$0xff]  ;;  %v6846_v12 = vunpack.i.l.bf16 %v6845_v56 }
 0x6fd   : > { %4303 = vst.msk [vmem:[#allocation2 + $0xc9] sm:$0xff] %vm1187_vm1, %v4287_v42  ;;  %v7158_v31 = vpack.i.bf16 %v4447_v20, %v4446_v52  ;;  %v6847_v42 = vunpack.i.h.bf16 %v6845_v56 }
 0x6fe   : > { %4301 = vst.msk [vmem:[#allocation2 + $0xb1] sm:$0xff] %vm1187_vm1, %v4285_v0  ;;  %v4304_v0 = vld [vmem:[#allocation2] sm:$0xff] }
 0x6ff   : > { %v4961_v54 = vsel %vm1187_vm1, %v4305_v2, %v6847_v42 }
 0x700   : > { %7024 = vrot.lane.b32.xlu0 %v7023_v18, %s9484_s25  ;;  %7009 = vrot.lane.b32.xlu1 %v7023_v18, %s9485_s28 }
 0x702   : > { %v4412_v45 = vld [vmem:[#allocation2 + $0xc0] sm:$0xff] }
 0x703   : > { %v4428_v3 = vld [vmem:[#allocation2 + $0xc1] sm:$0xff]  ;;  %v4426_v4 = vld [vmem:[#allocation2 + $0xa9] sm:$0xff] }
 0x704   : > { %7029 = vrot.lane.b32.xlu0 %v7028_v57, %s9480_s20  ;;  %7014 = vrot.lane.b32.xlu1 %v7028_v57, %s9481_s21  ;;  %v4413_v7 = vld [vmem:[#allocation2 + $0xc8] sm:$0xff] }
 0x705   : > { %v7098_v37 = vpack.i.bf16 %v4413_v7, %v4412_v45  ;;  %v4429_v11 = vld [vmem:[#allocation2 + $0xc9] sm:$0xff]  ;;  %v4443_v13 = vld [vmem:[#allocation2 + $0xb2] sm:$0xff] }
 0x706   : > { %v7103_v5 = vpack.i.bf16 %v4429_v11, %v4428_v3  ;;  %v4398_v36 = vld [vmem:[#allocation2 + $0xc2] sm:$0xff]  ;;  %v4399_v33 = vld [vmem:[#allocation2 + $0xca] sm:$0xff] }
 0x707   : > { %v4442_v53 = vld [vmem:[#allocation2 + $0xaa] sm:$0xff]  ;;  %v7093_v44 = vpack.i.bf16 %v4399_v33, %v4398_v36 }
 0x708   : > { %7039 = vrot.lane.b32.xlu0 %v7028_v57, %s9478_s24  ;;  %7034 = vrot.lane.b32.xlu1 %v7023_v18, %s9482_s23  ;;  %v7118_v35 = vpack.i.bf16 %v4443_v13, %v4442_v53  ;;  %v9039_v59 = vld [vmem:[#allocation2 + $0xb0] sm:$0xff]  ;;  %v9043_v63 = vld [vmem:[#allocation2 + $0xa8] sm:$0xff]  ;;  %v6851_v18 = vunpack.i.l.bf16 %v6850_v22  ;;  %v4960_v57 = vsel %vm1187_vm1, %v4304_v0, %v6846_v12 }
 0x709   : > { %v7108_v34 = vpack.i.bf16 %v9039_v59, %v9043_v63  ;;  %v4427_v41 = vld [vmem:[#allocation2 + $0xb1] sm:$0xff] }
 0x70a   : > { %v7113_v49 = vpack.i.bf16 %v4427_v41, %v4426_v4  ;;  %v4976_v9 = vsel %vm1909_vm4, %v4960_v57, %v6851_v18 }
 0x70c   : > { %7054 = vrot.lane.b32.xlu0 %v7053_v27, %s9480_s20  ;;  %7044 = vrot.lane.b32.xlu1 %v7043_v58, %s9483_s3 }
 0x710   : > { %7069 = vrot.lane.b32.xlu0 %v7043_v58, %s9479_s26  ;;  %7049 = vrot.lane.b32.xlu1 %v7048_v10, %s9484_s25 }
 0x714   : > { %7074 = vrot.lane.b32.xlu0 %v7048_v10, %s9485_s28  ;;  %7059 = vrot.lane.b32.xlu1 %v7048_v10, %s9482_s23  ;;  %v4977_v10 = vsel %vm1909_vm4, %v4961_v54, %v6852_v15 }
 0x718   : > { %7079 = vrot.lane.b32.xlu0 %v7053_v27, %s9481_s21  ;;  %7064 = vrot.lane.b32.xlu1 %v7053_v27, %s9478_s24 }
 0x71c   : > { %7099 = vrot.lane.b32.xlu0 %v7098_v37, %s9483_s3  ;;  %7084 = vrot.lane.b32.xlu1 %v7098_v37, %s9479_s26 }
 0x720   : > { %7104 = vrot.lane.b32.xlu0 %v7103_v5, %s9484_s25  ;;  %7089 = vrot.lane.b32.xlu1 %v7103_v5, %s9485_s28 }
 0x724   : > { %7094 = vrot.lane.b32.xlu1 %v7093_v44, %s9481_s21  ;;  %7119 = vrot.lane.b32.xlu0 %v7118_v35, %s9480_s20 }
 0x728   : > { %7109 = vrot.lane.b32.xlu1 %v7108_v34, %s9483_s3  ;;  %7139 = vrot.lane.b32.xlu0 %v7108_v34, %s9479_s26 }
 0x72c   : > { %7114 = vrot.lane.b32.xlu1 %v7113_v49, %s9484_s25  ;;  %7144 = vrot.lane.b32.xlu0 %v7113_v49, %s9485_s28 }
 0x72e   : > { %v6875_v38 = vpop.permute.xlu0 %6874  ;;  %v9053_v14 = vpop.permute.xlu1 %6859 }
 0x72f   : > { %v6877_v5 = vunpack.i.h.bf16 %v6875_v38  ;;  %v6876_v36 = vunpack.i.l.bf16 %v6875_v38 }
 0x730   : > { %7149 = vrot.lane.b32.xlu0 %v7118_v35, %s9481_s21  ;;  %7124 = vrot.lane.b32.xlu1 %v7113_v49, %s9482_s23 }
 0x732   : > { %v6880_v43 = vpop.permute.xlu0 %6879  ;;  %v9057_v51 = vpop.permute.xlu1 %6864 }
 0x733   : > { %v6882_v13 = vunpack.i.h.bf16 %v6880_v43  ;;  %v6881_v56 = vunpack.i.l.bf16 %v6880_v43 }
 0x734   : > { %7154 = vrot.lane.b32.xlu0 %v7093_v44, %s9480_s20  ;;  %7129 = vrot.lane.b32.xlu1 %v7118_v35, %s9478_s24 }
 0x736   : > { %v6885_v39 = vpop.permute.xlu0 %6884  ;;  %v9061_v26 = vpop.permute.xlu1 %6869 }
 0x737   : > { %v6887_v34 = vunpack.i.h.bf16 %v6885_v39  ;;  %v6886_v22 = vunpack.i.l.bf16 %v6885_v39 }
 0x738   : > { %7134 = vrot.lane.b32.xlu1 %v7133_v1, %s9484_s25  ;;  %s5611_s25 = sshll.u32 %s9501_s30, 7 }
 0x739   : > { %s9377_s1 = scalar_lea.vmem %s9433_s19, %s5611_s25 }
 0x73a   : > { %v9064_v50 = vpop.permute.xlu0 %6894  ;;  %v9067_v32 = vpop.permute.xlu1 %6889 }
 0x73c   : > { %7159 = vrot.lane.b32.xlu1 %v7158_v31, %s9480_s20 }
 0x73e   : > { %v6910_v55 = vpop.permute.xlu0 %6909  ;;  %v6900_v30 = vpop.permute.xlu1 %6899 }
 0x73f   : > { %v6912_v21 = vunpack.i.h.bf16 %v6910_v55  ;;  %v6911_v61 = vunpack.i.l.bf16 %v6910_v55  ;;  %v6902_v55 = vunpack.i.h.bf16 %v6900_v30  ;;  %v6901_v42 = vunpack.i.l.bf16 %v6900_v30 }
 0x741   : > { %v4992_v45 = vsel %vm1926_vm5, %v4976_v9, %v6911_v61  ;;  %v4993_v37 = vsel %vm1926_vm5, %v4977_v10, %v6912_v21  ;;  %v4963_v18 = vsel %vm1187_vm1, %v8895_v16, %v6902_v55  ;;  %v6867_v16 = vunpack.i.h.bf16 %v9057_v51 }
 0x742   : > { %v6915_v62 = vpop.permute.xlu0 %6914  ;;  %v6905_v49 = vpop.permute.xlu1 %6904 }
 0x743   : > { %v6917_v27 = vunpack.i.h.bf16 %v6915_v62  ;;  %v6916_v58 = vunpack.i.l.bf16 %v6915_v62  ;;  %v6907_v12 = vunpack.i.h.bf16 %v6905_v49  ;;  %v6906_v0 = vunpack.i.l.bf16 %v6905_v49 }
 0x744   : > { %v4962_v62 = vsel %vm1187_vm1, %v8900_v19, %v6901_v42  ;;  %v6866_v19 = vunpack.i.l.bf16 %v9057_v51 }
 0x745   : > { %v5008_v33 = vsel %vm1943_vm6, %v4992_v45, %v6916_v58  ;;  %v5009_v53 = vsel %vm1943_vm6, %v4993_v37, %v6917_v27  ;;  %v4978_v54 = vsel %vm1909_vm4, %v4962_v62, %v6906_v0  ;;  %v4979_v57 = vsel %vm1909_vm4, %v4963_v18, %v6907_v12 }
 0x746   : > { %v6920_v7 = vpop.permute.xlu0 %6919  ;;  %v6862_v27 = vunpack.i.h.bf16 %v9053_v14  ;;  %v6861_v58 = vunpack.i.l.bf16 %v9053_v14  ;;  %v6871_v14 = vunpack.i.l.bf16 %v9061_v26 }
 0x747   : > { %v6922_v11 = vunpack.i.h.bf16 %v6920_v7  ;;  %v6921_v3 = vunpack.i.l.bf16 %v6920_v7 }
 0x748   : > { %v4994_v30 = vsel %vm1926_vm5, %v4978_v54, %v6861_v58  ;;  %v4995_v9 = vsel %vm1926_vm5, %v4979_v57, %v6862_v27 }
 0x749   : > { %v5024_v44 = vsel %vm1960_vm7, %v5008_v33, %v6921_v3  ;;  %v5025_v35 = vsel %vm1960_vm7, %v5009_v53, %v6922_v11  ;;  %v5010_v11 = vsel %vm1943_vm6, %v4994_v30, %v6866_v19  ;;  %v5011_v3 = vsel %vm1943_vm6, %v4995_v9, %v6867_v16 }
 0x74a   : > { %v5040_v41 = vsel %vm1977_vm8, %v5024_v44, %v6876_v36  ;;  %v5041_v4 = vsel %vm1977_vm8, %v5025_v35, %v6877_v5  ;;  %v6872_v5 = vunpack.i.h.bf16 %v9061_v26  ;;  %v6892_v36 = vunpack.i.h.bf16 %v9067_v32 }
 0x74b   : > { %v5056_v47 = vsel %vm1994_vm9, %v5040_v41, %v6881_v56  ;;  %v5057_v38 = vsel %vm1994_vm9, %v5041_v4, %v6882_v13  ;;  %v6891_v33 = vunpack.i.l.bf16 %v9067_v32  ;;  %v5026_v51 = vsel %vm1960_vm7, %v5010_v11, %v6871_v14 }
 0x74c   : > { %v5072_v24 = vsel %vm2011_vm10, %v5056_v47, %v6886_v22  ;;  %v5073_v1 = vsel %vm2011_vm10, %v5057_v38, %v6887_v34  ;;  %v5027_v56 = vsel %vm1960_vm7, %v5011_v3, %v6872_v5  ;;  %v6897_v26 = vunpack.i.h.bf16 %v9064_v50 }
 0x74d   : > { %v5088_v43 = vpack.c.bf16 %v5073_v1, %v5072_v24  ;;  %v6896_v47 = vunpack.i.l.bf16 %v9064_v50  ;;  %v4965_v38 = vsel %vm1187_vm1, %v8885_v28, %v6892_v36  ;;  %v4964_v42 = vsel %vm1187_vm1, %v8883_v23, %v6891_v33 }
 0x74e   : > { %v9085_v52 = vpop.permute.xlu0 %6939  ;;  %v9087_v20 = vpop.permute.xlu1 %6924  ;;  %v4981_v28 = vsel %vm1909_vm4, %v4965_v38, %v6897_v26 }
 0x74f   : > { %5821 = vmatprep.mubr.msk.bf16.mxu1 %vm2056_vm11, %v5088_v43  ;;  %v4980_v50 = vsel %vm1909_vm4, %v4964_v42, %v6896_v47  ;;  %v6942_v23 = vunpack.i.h.bf16 %v9085_v52  ;;  %v6941_v19 = vunpack.i.l.bf16 %v9085_v52  ;;  %v6926_v42 = vunpack.i.l.bf16 %v9087_v20 }
 0x752   : > { %v9090_v39 = vpop.permute.xlu0 %6944  ;;  %v9092_v31 = vpop.permute.xlu1 %6929 }
 0x753   : > { %v6947_v11 = vunpack.i.h.bf16 %v9090_v39  ;;  %v6946_v3 = vunpack.i.l.bf16 %v9090_v39 }
 0x756   : > { %v9094_v2 = vpop.permute.xlu0 %6949  ;;  %v9096_v15 = vpop.permute.xlu1 %6934 }
 0x757   : > { %v6952_v52 = vunpack.i.h.bf16 %v9094_v2 }
 0x75a   : > { %v9104_v21 = vpop.permute.xlu0 %6959  ;;  %v9106_v61 = vpop.permute.xlu1 %6954 }
 0x75e   : > { %v6975_v10 = vpop.permute.xlu0 %6974  ;;  %v6965_v7 = vpop.permute.xlu1 %6964 }
 0x75f   : > { %v6967_v45 = vunpack.i.h.bf16 %v6965_v7  ;;  %v6966_v37 = vunpack.i.l.bf16 %v6965_v7  ;;  %v6977_v34 = vunpack.i.h.bf16 %v6975_v10  ;;  %v6976_v22 = vunpack.i.l.bf16 %v6975_v10 }
 0x761   : > { %v5042_v41 = vsel %vm1977_vm8, %v5026_v51, %v6966_v37  ;;  %v5043_v4 = vsel %vm1977_vm8, %v5027_v56, %v6967_v45 }
 0x762   : > { %v6990_v53 = vpop.permute.xlu0 %6989  ;;  %v6970_v13 = vpop.permute.xlu1 %6969 }
 0x763   : > { %v6972_v44 = vunpack.i.h.bf16 %v6970_v13  ;;  %v6971_v35 = vunpack.i.l.bf16 %v6970_v13  ;;  %v6992_v12 = vunpack.i.h.bf16 %v6990_v53  ;;  %v6991_v0 = vunpack.i.l.bf16 %v6990_v53 }
 0x764   : > { %v6951_v53 = vunpack.i.l.bf16 %v9094_v2 }
 0x765   : > { %v5058_v49 = vsel %vm1994_vm9, %v5042_v41, %v6971_v35  ;;  %v5059_v32 = vsel %vm1994_vm9, %v5043_v4, %v6972_v44  ;;  %v4996_v58 = vsel %vm1926_vm5, %v4980_v50, %v6991_v0  ;;  %v4997_v30 = vsel %vm1926_vm5, %v4981_v28, %v6992_v12 }
 0x766   : > { %v5074_v24 = vsel %vm2011_vm10, %v5058_v49, %v6976_v22  ;;  %v5075_v1 = vsel %vm2011_vm10, %v5059_v32, %v6977_v34  ;;  %v6995_v43 = vpop.permute.xlu0 %6994  ;;  %v6980_v55 = vpop.permute.xlu1 %6979 }
 0x767   : > { %v5089_v18 = vpack.c.bf16 %v5075_v1, %v5074_v24  ;;  %v6997_v62 = vunpack.i.h.bf16 %v6995_v43  ;;  %v6996_v54 = vunpack.i.l.bf16 %v6995_v43  ;;  %v6982_v22 = vunpack.i.h.bf16 %v6980_v55 }
 0x768   : > { %v6981_v41 = vunpack.i.l.bf16 %v6980_v55  ;;  %v6927_v55 = vunpack.i.h.bf16 %v9087_v20  ;;  %v6936_v20 = vunpack.i.l.bf16 %v9096_v15 }
 0x769   : > { %5822 = vmatmul.mubr.msk.bf16.vlgmr.msra.gmra.mrb[32].mxu1 %vm2056_vm11, %v5089_v18  ;;  %v5012_v10 = vsel %vm1943_vm6, %v4996_v58, %v6996_v54  ;;  %v5013_v7 = vsel %vm1943_vm6, %v4997_v30, %v6997_v62  ;;  %v4967_v32 = vsel %vm1187_vm1, %v8957_v17, %v6982_v22  ;;  %v6932_v17 = vunpack.i.h.bf16 %v9092_v31 }
 0x76a   : > { %v7000_v57 = vpop.permute.xlu0 %6999  ;;  %v6985_v27 = vpop.permute.xlu1 %6984  ;;  %v4966_v47 = vsel %vm1187_vm1, %v8963_v60, %v6981_v41  ;;  %v6931_v60 = vunpack.i.l.bf16 %v9092_v31  ;;  %v6957_v58 = vunpack.i.h.bf16 %v9106_v61  ;;  %v6956_v30 = vunpack.i.l.bf16 %v9106_v61 }
 0x76b   : > { %v7002_v9 = vunpack.i.h.bf16 %v7000_v57  ;;  %v7001_v16 = vunpack.i.l.bf16 %v7000_v57  ;;  %v6987_v4 = vunpack.i.h.bf16 %v6985_v27  ;;  %v6986_v26 = vunpack.i.l.bf16 %v6985_v27 }
 0x76c   : > { %v6937_v27 = vunpack.i.h.bf16 %v9096_v15  ;;  %v6962_v61 = vunpack.i.h.bf16 %v9104_v21 }
 0x76d   : > { %v5028_v45 = vsel %vm1960_vm7, %v5012_v10, %v7001_v16  ;;  %v5029_v37 = vsel %vm1960_vm7, %v5013_v7, %v7002_v9  ;;  %v4982_v38 = vsel %vm1909_vm4, %v4966_v47, %v6986_v26  ;;  %v4983_v24 = vsel %vm1909_vm4, %v4967_v32, %v6987_v4 }
 0x76e   : > { %v5044_v5 = vsel %vm1977_vm8, %v5028_v45, %v6941_v19  ;;  %v5045_v14 = vsel %vm1977_vm8, %v5029_v37, %v6942_v23  ;;  %v9149_v36 = vpop.permute.xlu0 %7019  ;;  %v9151_v33 = vpop.permute.xlu1 %7004  ;;  %v4998_v12 = vsel %vm1926_vm5, %v4982_v38, %v6926_v42  ;;  %v4999_v0 = vsel %vm1926_vm5, %v4983_v24, %v6927_v55 }
 0x76f   : > { %v5060_v13 = vsel %vm1994_vm9, %v5044_v5, %v6946_v3  ;;  %v5061_v51 = vsel %vm1994_vm9, %v5045_v14, %v6947_v11  ;;  %v5014_v28 = vsel %vm1943_vm6, %v4998_v12, %v6931_v60  ;;  %v5015_v57 = vsel %vm1943_vm6, %v4999_v0, %v6932_v17 }
 0x770   : > { %v5076_v56 = vsel %vm2011_vm10, %v5060_v13, %v6951_v53  ;;  %v5077_v39 = vsel %vm2011_vm10, %v5061_v51, %v6952_v52  ;;  %v5030_v31 = vsel %vm1960_vm7, %v5014_v28, %v6936_v20  ;;  %v5031_v23 = vsel %vm1960_vm7, %v5015_v57, %v6937_v27 }
 0x771   : > { %v5090_v34 = vpack.c.bf16 %v5077_v39, %v5076_v56  ;;  %v6961_v5 = vunpack.i.l.bf16 %v9104_v21  ;;  %v4969_v51 = vsel %vm1187_vm1, %v8930_v46, %v6957_v58  ;;  %v4968_v56 = vsel %vm1187_vm1, %v8928_v40, %v6956_v30 }
 0x772   : > { %v9159_v44 = vpop.permute.xlu0 %7024  ;;  %v9161_v35 = vpop.permute.xlu1 %7009  ;;  %v4985_v21 = vsel %vm1909_vm4, %v4969_v51, %v6962_v61  ;;  %v7022_v40 = vunpack.i.h.bf16 %v9149_v36  ;;  %v7021_v42 = vunpack.i.l.bf16 %v9149_v36 }
 0x773   : > { %5825 = vmatprep.mubr.msk.bf16.mxu1 %vm2056_vm11, %v5090_v34  ;;  %v4984_v26 = vsel %vm1909_vm4, %v4968_v56, %v6961_v5 }
 0x776   : > { %v9164_v2 = vpop.permute.xlu0 %7029  ;;  %v9166_v49 = vpop.permute.xlu1 %7014 }
 0x777   : > { %v7032_v36 = vunpack.i.h.bf16 %v9164_v2  ;;  %v7031_v27 = vunpack.i.l.bf16 %v9164_v2 }
 0x77a   : > { %v9174_v1 = vpop.permute.xlu0 %7039  ;;  %v9176_v43 = vpop.permute.xlu1 %7034 }
 0x77b   : > { %v7036_v61 = vunpack.i.l.bf16 %v9176_v43  ;;  %v7037_v51 = vunpack.i.h.bf16 %v9176_v43 }
 0x77d   : > { %v4973_v43 = vsel %vm1187_vm1, %v8993_v8, %v7037_v51 }
 0x77e   : > { %v7055_v18 = vpop.permute.xlu0 %7054  ;;  %v7045_v62 = vpop.permute.xlu1 %7044 }
 0x77f   : > { %v7047_v54 = vunpack.i.h.bf16 %v7045_v62  ;;  %v7046_v50 = vunpack.i.l.bf16 %v7045_v62  ;;  %v7057_v7 = vunpack.i.h.bf16 %v7055_v18  ;;  %v7056_v45 = vunpack.i.l.bf16 %v7055_v18 }
 0x780   : > { %v7027_v18 = vunpack.i.h.bf16 %v9159_v44  ;;  %v7026_v62 = vunpack.i.l.bf16 %v9159_v44 }
 0x781   : > { %v5046_v37 = vsel %vm1977_vm8, %v5030_v31, %v7046_v50  ;;  %v5047_v11 = vsel %vm1977_vm8, %v5031_v23, %v7047_v54 }
 0x782   : > { %v7070_v9 = vpop.permute.xlu0 %7069  ;;  %v7050_v16 = vpop.permute.xlu1 %7049 }
 0x783   : > { %v7052_v19 = vunpack.i.h.bf16 %v7050_v16  ;;  %v7051_v10 = vunpack.i.l.bf16 %v7050_v16  ;;  %v7072_v39 = vunpack.i.h.bf16 %v7070_v9  ;;  %v7071_v34 = vunpack.i.l.bf16 %v7070_v9 }
 0x785   : > { %v5062_v15 = vsel %vm1994_vm9, %v5046_v37, %v7051_v10  ;;  %v5063_v3 = vsel %vm1994_vm9, %v5047_v11, %v7052_v19  ;;  %v5000_v38 = vsel %vm1926_vm5, %v4984_v26, %v7071_v34  ;;  %v5001_v46 = vsel %vm1926_vm5, %v4985_v21, %v7072_v39 }
 0x786   : > { %v7075_v14 = vpop.permute.xlu0 %7074  ;;  %v7060_v52 = vpop.permute.xlu1 %7059  ;;  %v5078_v53 = vsel %vm2011_vm10, %v5062_v15, %v7056_v45  ;;  %v5079_v13 = vsel %vm2011_vm10, %v5063_v3, %v7057_v7  ;;  %v7007_v15 = vunpack.i.h.bf16 %v9151_v33  ;;  %v7006_v3 = vunpack.i.l.bf16 %v9151_v33 }
 0x787   : > { %v7077_v22 = vunpack.i.h.bf16 %v7075_v14  ;;  %v7076_v41 = vunpack.i.l.bf16 %v7075_v14  ;;  %v5091_v4 = vpack.c.bf16 %v5079_v13, %v5078_v53  ;;  %v7062_v20 = vunpack.i.h.bf16 %v7060_v52 }
 0x788   : > { %v7061_v58 = vunpack.i.l.bf16 %v7060_v52  ;;  %v7011_v53 = vunpack.i.l.bf16 %v9161_v35  ;;  %v7041_v13 = vunpack.i.l.bf16 %v9174_v1  ;;  %v4972_v33 = vsel %vm1187_vm1, %v9001_v29, %v7036_v61 }
 0x789   : > { %5826 = vmatmul.mubr.msk.bf16.gmra.mrb[36].mxu1 %vm2056_vm11, %v5091_v4  ;;  %v5016_v12 = vsel %vm1943_vm6, %v5000_v38, %v7076_v41  ;;  %v5017_v0 = vsel %vm1943_vm6, %v5001_v46, %v7077_v22  ;;  %v4971_v2 = vsel %vm1187_vm1, %v9019_v25, %v7062_v20  ;;  %v7017_v41 = vunpack.i.h.bf16 %v9166_v49 }
 0x78a   : > { %v7080_v32 = vpop.permute.xlu0 %7079  ;;  %v7065_v47 = vpop.permute.xlu1 %7064  ;;  %v4970_v45 = vsel %vm1187_vm1, %v9023_v6, %v7061_v58  ;;  %v7012_v6 = vunpack.i.h.bf16 %v9161_v35  ;;  %v7016_v4 = vunpack.i.l.bf16 %v9166_v49  ;;  %v6857_v35 = vunpack.i.h.bf16 %v9047_v48 }
 0x78b   : > { %v7082_v24 = vunpack.i.h.bf16 %v7080_v32  ;;  %v7081_v55 = vunpack.i.l.bf16 %v7080_v32  ;;  %v7067_v16 = vunpack.i.h.bf16 %v7065_v47  ;;  %v7066_v44 = vunpack.i.l.bf16 %v7065_v47 }
 0x78c   : > { %v7042_v32 = vunpack.i.h.bf16 %v9174_v1  ;;  %v4988_v29 = vsel %vm1909_vm4, %v4972_v33, %v7041_v13  ;;  %v6856_v61 = vunpack.i.l.bf16 %v9047_v48  ;;  %v5310_v48 = vld [vmem:[%s9431_s17] sm:$0xf] }
 0x78d   : > { %v5032_v17 = vsel %vm1960_vm7, %v5016_v12, %v7081_v55  ;;  %v5033_v60 = vsel %vm1960_vm7, %v5017_v0, %v7082_v24  ;;  %v4986_v37 = vsel %vm1909_vm4, %v4970_v45, %v7066_v44  ;;  %v4987_v11 = vsel %vm1909_vm4, %v4971_v2, %v7067_v16  ;;  %5861 = vmatprep.subr.msk.bf16.mxu0 %vm5342_vm12, %v5310_v48 }
 0x78e   : > { %v5048_v54 = vsel %vm1977_vm8, %v5032_v17, %v7021_v42  ;;  %v5049_v50 = vsel %vm1977_vm8, %v5033_v60, %v7022_v40  ;;  %v9219_v28 = vpop.permute.xlu0 %7099  ;;  %v9221_v57 = vpop.permute.xlu1 %7084  ;;  %v5002_v25 = vsel %vm1926_vm5, %v4986_v37, %v7006_v3  ;;  %v5003_v52 = vsel %vm1926_vm5, %v4987_v11, %v7007_v15  ;;  %5862 = vmatprep.subr.msk.bf16.mxu1 %vm5342_vm12, %v5310_v48 }
 0x78f   : > { %v5064_v30 = vsel %vm1994_vm9, %v5048_v54, %v7026_v62  ;;  %v5065_v9 = vsel %vm1994_vm9, %v5049_v50, %v7027_v18  ;;  %v5018_v34 = vsel %vm1943_vm6, %v5002_v25, %v7011_v53  ;;  %v5019_v22 = vsel %vm1943_vm6, %v5003_v52, %v7012_v6 }
 0x790   : > { %v5080_v31 = vsel %vm2011_vm10, %v5064_v30, %v7031_v27  ;;  %v5081_v23 = vsel %vm2011_vm10, %v5065_v9, %v7032_v36  ;;  %v5034_v46 = vsel %vm1960_vm7, %v5018_v34, %v7016_v4  ;;  %v5035_v24 = vsel %vm1960_vm7, %v5019_v22, %v7017_v41 }
 0x791   : > { %v5092_v7 = vpack.c.bf16 %v5081_v23, %v5080_v31  ;;  %v7102_v18 = vunpack.i.h.bf16 %v9219_v28  ;;  %v4989_v62 = vsel %vm1909_vm4, %v4973_v43, %v7042_v32  ;;  %v7101_v36 = vunpack.i.l.bf16 %v9219_v28 }
 0x792   : > { %v9229_v19 = vpop.permute.xlu0 %7104  ;;  %v9231_v10 = vpop.permute.xlu1 %7089 }
 0x793   : > { %5829 = vmatprep.mubr.msk.bf16.mxu1 %vm2056_vm11, %v5092_v7  ;;  %v7107_v27 = vunpack.i.h.bf16 %v9229_v19  ;;  %v7106_v7 = vunpack.i.l.bf16 %v9229_v19  ;;  %v7091_v32 = vunpack.i.l.bf16 %v9231_v10 }
 0x796   : > { %v9243_v5 = vpop.permute.xlu1 %7094  ;;  %v7120_v14 = vpop.permute.xlu0 %7119 }
 0x797   : > { %v7122_v47 = vunpack.i.h.bf16 %v7120_v14  ;;  %v7121_v38 = vunpack.i.l.bf16 %v7120_v14  ;;  %v7087_v14 = vunpack.i.h.bf16 %v9221_v57 }
 0x79a   : > { %v7110_v56 = vpop.permute.xlu1 %7109  ;;  %v7140_v39 = vpop.permute.xlu0 %7139 }
 0x79b   : > { %v7112_v26 = vunpack.i.h.bf16 %v7110_v56  ;;  %v7111_v21 = vunpack.i.l.bf16 %v7110_v56  ;;  %v7142_v49 = vunpack.i.h.bf16 %v7140_v39  ;;  %v7141_v42 = vunpack.i.l.bf16 %v7140_v39 }
 0x79c   : > { %v7086_v56 = vunpack.i.l.bf16 %v9221_v57  ;;  %v7092_v39 = vunpack.i.h.bf16 %v9231_v10 }
 0x79d   : > { %v5051_v17 = vsel %vm1977_vm8, %v5035_v24, %v7112_v26  ;;  %v5050_v1 = vsel %vm1977_vm8, %v5034_v46, %v7111_v21  ;;  %v5005_v16 = vsel %vm1926_vm5, %v4989_v62, %v7142_v49  ;;  %v5004_v44 = vsel %vm1926_vm5, %v4988_v29, %v7141_v42 }
 0x79e   : > { %v7115_v55 = vpop.permute.xlu1 %7114  ;;  %v7145_v40 = vpop.permute.xlu0 %7144  ;;  %v7096_v46 = vunpack.i.l.bf16 %v9243_v5 }
 0x79f   : > { %v7117_v12 = vunpack.i.h.bf16 %v7115_v55  ;;  %v7116_v0 = vunpack.i.l.bf16 %v7115_v55  ;;  %v7147_v60 = vunpack.i.h.bf16 %v7145_v40  ;;  %v7146_v8 = vunpack.i.l.bf16 %v7145_v40 }
 0x7a1   : > { %v5066_v54 = vsel %vm1994_vm9, %v5050_v1, %v7116_v0  ;;  %v5067_v50 = vsel %vm1994_vm9, %v5051_v17, %v7117_v12  ;;  %v5020_v2 = vsel %vm1943_vm6, %v5004_v44, %v7146_v8  ;;  %v5021_v28 = vsel %vm1943_vm6, %v5005_v16, %v7147_v60 }
 0x7a2   : > { %v7150_v20 = vpop.permute.xlu0 %7149  ;;  %v7125_v58 = vpop.permute.xlu1 %7124  ;;  %v5082_v30 = vsel %vm2011_vm10, %v5066_v54, %v7121_v38  ;;  %v5083_v9 = vsel %vm2011_vm10, %v5067_v50, %v7122_v47  ;;  %v7097_v38 = vunpack.i.h.bf16 %v9243_v5  ;;  %v9323_v50 = vld [vmem:[%s9429_s15] ss:$0 sm:$0xff] }
 0x7a3   : > { %v7152_v31 = vunpack.i.h.bf16 %v7150_v20  ;;  %v7151_v23 = vunpack.i.l.bf16 %v7150_v20  ;;  %v5093_v45 = vpack.c.bf16 %v5083_v9, %v5082_v30  ;;  %v7127_v15 = vunpack.i.h.bf16 %v7125_v58 }
 0x7a4   : > { %v7126_v3 = vunpack.i.l.bf16 %v7125_v58 }
 0x7a5   : > { %v5036_v37 = vsel %vm1960_vm7, %v5020_v2, %v7151_v23  ;;  %v5037_v11 = vsel %vm1960_vm7, %v5021_v28, %v7152_v31  ;;  %5830 = vmatmul.mubr.msk.bf16.gmra.mrb[40].mxu1 %vm2056_vm11, %v5093_v45  ;;  %v4975_v4 = vsel %vm1187_vm1, %v9039_v59, %v7127_v15 }
 0x7a6   : > { %v5052_v25 = vsel %vm1977_vm8, %v5036_v37, %v7101_v36  ;;  %v5053_v52 = vsel %vm1977_vm8, %v5037_v11, %v7102_v18  ;;  %v7155_v19 = vpop.permute.xlu0 %7154  ;;  %v7130_v6 = vpop.permute.xlu1 %7129  ;;  %v4974_v41 = vsel %vm1187_vm1, %v9043_v63, %v7126_v3 }
 0x7a7   : > { %v7157_v53 = vunpack.i.h.bf16 %v7155_v19  ;;  %v7156_v13 = vunpack.i.l.bf16 %v7155_v19  ;;  %v5068_v51 = vsel %vm1994_vm9, %v5052_v25, %v7106_v7  ;;  %v5069_v33 = vsel %vm1994_vm9, %v5053_v52, %v7107_v27  ;;  %v9328_v27 = vld [vmem:[%s9430_s16] ss:$0 sm:$0xff] }
 0x7a8   : > { %v7132_v34 = vunpack.i.h.bf16 %v7130_v6  ;;  %v7131_v22 = vunpack.i.l.bf16 %v7130_v6 }
 0x7a9   : > { %v5084_v26 = vsel %vm2011_vm10, %v5068_v51, %v7156_v13  ;;  %v5085_v21 = vsel %vm2011_vm10, %v5069_v33, %v7157_v53 }
 0x7aa   : > { %v5094_v43 = vpack.c.bf16 %v5085_v21, %v5084_v26  ;;  %v4990_v29 = vsel %vm1909_vm4, %v4974_v41, %v7131_v22  ;;  %v4991_v57 = vsel %vm1909_vm4, %v4975_v4, %v7132_v34  ;;  %v7135_v47 = vpop.permute.xlu1 %7134 }
 0x7ab   : > { %v5006_v63 = vsel %vm1926_vm5, %v4990_v29, %v7086_v56  ;;  %v5007_v59 = vsel %vm1926_vm5, %v4991_v57, %v7087_v14  ;;  %v7137_v40 = vunpack.i.h.bf16 %v7135_v47  ;;  %v7136_v10 = vunpack.i.l.bf16 %v7135_v47 }
 0x7ac   : > { %v5022_v24 = vsel %vm1943_vm6, %v5006_v63, %v7091_v32  ;;  %v5023_v55 = vsel %vm1943_vm6, %v5007_v59, %v7092_v39  ;;  %5833 = vmatprep.mubr.msk.bf16.mxu1 %vm2056_vm11, %v5094_v43 }
 0x7ad   : > { %v5038_v49 = vsel %vm1960_vm7, %v5022_v24, %v7096_v46  ;;  %v5039_v42 = vsel %vm1960_vm7, %v5023_v55, %v7097_v38 }
 0x7ae   : > { %v5054_v12 = vsel %vm1977_vm8, %v5038_v49, %v6856_v61  ;;  %v5055_v5 = vsel %vm1977_vm8, %v5039_v42, %v6857_v35  ;;  %v7160_v0 = vpop.permute.xlu1 %7159  ;;  %v5344_v35 = vsel %vm5342_vm12, %v5310_v48, 0 }
 0x7af   : > { %v7162_v17 = vunpack.i.h.bf16 %v7160_v0  ;;  %v7161_v1 = vunpack.i.l.bf16 %v7160_v0  ;;  %v5070_v60 = vsel %vm1994_vm9, %v5054_v12, %v7136_v10  ;;  %v5071_v8 = vsel %vm1994_vm9, %v5055_v5, %v7137_v40  ;;  %5838 = vmatpush3.bf16.msra.mxu0 %v5344_v35  ;;  %5856 = vmatpush3.bf16.msra.mxu1 %v5344_v35 }
 0x7b1   : > { %v5086_v18 = vsel %vm2011_vm10, %v5070_v60, %v7161_v1  ;;  %v5087_v62 = vsel %vm2011_vm10, %v5071_v8, %v7162_v17 }
 0x7b2   : > { %v5095_v54 = vpack.c.bf16 %v5087_v62, %v5086_v18 }
 0x7b4   : > { %5834 = vmatmul.mubr.msk.bf16.gmra.mrb[44].mxu1 %vm2056_vm11, %v5095_v54 }
 0x83c   : > { %v5823_v36 = vpop.f32.mrb[32].mxu1 }
 0x83d   : > { %v5249_v20 = vmul.f32 %v5823_v36, %v9323_v50  ;;  %v5177_v58 = vpop.f32.mrb[33].mxu1 }
 0x83e   : > { %v5247_v30 = vmul.f32 %v9323_v50, %v5177_v58  ;;  %v5824_v9 = vpop.f32.mrb[34].mxu1 }
 0x83f   : > { %v5272_v16 = vadd.f32 %v9328_v27, %v5249_v20  ;;  %v5250_v44 = vmul.f32 %v5824_v9, %v9323_v50  ;;  %v5180_v31 = vpop.f32.mrb[35].mxu1 }
 0x840   : > { %v5270_v23 = vadd.f32 %v9328_v27, %v5247_v30  ;;  %v5248_v7 = vmul.f32 %v9323_v50, %v5180_v31 }
 0x841   : > { %v5273_v2 = vadd.f32 %v9328_v27, %v5250_v44  ;;  %v5288_v45 = vmax.f32 %v5272_v16, 0.0 }
 0x842   : > { %v5271_v28 = vadd.f32 %v9328_v27, %v5248_v7  ;;  %v5286_v11 = vmax.f32 %v5270_v23, 0.0 }
 0x843   : > { %v5289_v37 = vmax.f32 %v5273_v2, 0.0  ;;  %v5599_v2 = vld [vmem:[%s9432_s18] ss:$0 sm:$0xff] }
 0x844   : > { %v5287_v15 = vmax.f32 %v5271_v28, 0.0 }
 0x845   : > { %v5303_v3 = vpack.c.bf16 %v5289_v37, %v5288_v45 }
 0x846   : > { %v5302_v61 = vpack.c.bf16 %v5287_v15, %v5286_v11 }
 0x848   : > { %5839 = vmatprep.mubr.msk.bf16.mxu0 %vm1909_vm4, %v5302_v61 }
 0x849   : > { %5840 = vmatmul.mubr.msk.bf16.vlgmr.msra.gmra.mrb[48].mxu0 %vm1909_vm4, %v5303_v3 }
 0x85c   : > { %v5827_v14 = vpop.f32.mrb[36].mxu1 }
 0x85d   : > { %v5253_v25 = vmul.f32 %v5827_v14, %v9323_v50  ;;  %v5193_v52 = vpop.f32.mrb[37].mxu1 }
 0x85e   : > { %v5251_v19 = vmul.f32 %v9323_v50, %v5193_v52  ;;  %v5828_v6 = vpop.f32.mrb[38].mxu1 }
 0x85f   : > { %v5276_v53 = vadd.f32 %v9328_v27, %v5253_v25  ;;  %v5254_v13 = vmul.f32 %v5828_v6, %v9323_v50  ;;  %v5196_v51 = vpop.f32.mrb[39].mxu1 }
 0x860   : > { %v5274_v33 = vadd.f32 %v9328_v27, %v5251_v19  ;;  %v5252_v56 = vmul.f32 %v9323_v50, %v5196_v51 }
 0x861   : > { %v5277_v39 = vadd.f32 %v9328_v27, %v5254_v13  ;;  %v5292_v22 = vmax.f32 %v5276_v53, 0.0 }
 0x862   : > { %v5275_v34 = vadd.f32 %v9328_v27, %v5252_v56  ;;  %v5290_v4 = vmax.f32 %v5274_v33, 0.0 }
 0x863   : > { %v5293_v41 = vmax.f32 %v5277_v39, 0.0 }
 0x864   : > { %v5291_v26 = vmax.f32 %v5275_v34, 0.0 }
 0x865   : > { %v5305_v21 = vpack.c.bf16 %v5293_v41, %v5292_v22 }
 0x866   : > { %v5304_v32 = vpack.c.bf16 %v5291_v26, %v5290_v4 }
 0x868   : > { %5843 = vmatprep.mubr.msk.bf16.mxu0 %vm1909_vm4, %v5304_v32 }
 0x869   : > { %5844 = vmatmul.mubr.msk.bf16.gmra.mrb[52].mxu0 %vm1909_vm4, %v5305_v21 }
 0x878   : > { %v5831_v43 = vpop.f32.mrb[40].mxu1 }
 0x879   : > { %v5257_v29 = vmul.f32 %v5831_v43, %v9323_v50  ;;  %v5209_v57 = vpop.f32.mrb[41].mxu1 }
 0x87a   : > { %v5255_v47 = vmul.f32 %v9323_v50, %v5209_v57  ;;  %v5832_v38 = vpop.f32.mrb[42].mxu1 }
 0x87b   : > { %v5280_v46 = vadd.f32 %v9328_v27, %v5257_v29  ;;  %v5258_v63 = vmul.f32 %v5832_v38, %v9323_v50  ;;  %v5212_v59 = vpop.f32.mrb[43].mxu1 }
 0x87c   : > { %v5278_v24 = vadd.f32 %v9328_v27, %v5255_v47  ;;  %v5256_v55 = vmul.f32 %v9323_v50, %v5212_v59 }
 0x87d   : > { %v5281_v40 = vadd.f32 %v9328_v27, %v5258_v63  ;;  %v5296_v49 = vmax.f32 %v5280_v46, 0.0 }
 0x87e   : > { %v5279_v10 = vadd.f32 %v9328_v27, %v5256_v55  ;;  %v5294_v12 = vmax.f32 %v5278_v24, 0.0 }
 0x87f   : > { %v5297_v42 = vmax.f32 %v5281_v40, 0.0 }
 0x880   : > { %v5295_v5 = vmax.f32 %v5279_v10, 0.0 }
 0x881   : > { %v5307_v0 = vpack.c.bf16 %v5297_v42, %v5296_v49 }
 0x882   : > { %v5306_v17 = vpack.c.bf16 %v5295_v5, %v5294_v12 }
 0x884   : > { %5847 = vmatprep.mubr.msk.bf16.mxu0 %vm1909_vm4, %v5306_v17 }
 0x885   : > { %5848 = vmatmul.mubr.msk.bf16.gmra.mrb[56].mxu0 %vm1909_vm4, %v5307_v0 }
 0x887   : > { %v5835_v1 = vpop.f32.mrb[44].mxu1 }
 0x888   : > { %v5261_v60 = vmul.f32 %v5835_v1, %v9323_v50  ;;  %v5225_v8 = vpop.f32.mrb[45].mxu1 }
 0x889   : > { %v5259_v18 = vmul.f32 %v9323_v50, %v5225_v8  ;;  %v5836_v62 = vpop.f32.mrb[46].mxu1 }
 0x88a   : > { %v5284_v54 = vadd.f32 %v9328_v27, %v5261_v60  ;;  %v5262_v48 = vmul.f32 %v5836_v62, %v9323_v50  ;;  %v5228_v35 = vpop.f32.mrb[47].mxu1 }
 0x88b   : > { %v5282_v36 = vadd.f32 %v9328_v27, %v5259_v18  ;;  %v5260_v20 = vmul.f32 %v9323_v50, %v5228_v35 }
 0x88c   : > { %v5285_v58 = vadd.f32 %v9328_v27, %v5262_v48  ;;  %v5300_v9 = vmax.f32 %v5284_v54, 0.0 }
 0x88d   : > { %v5283_v30 = vadd.f32 %v9328_v27, %v5260_v20  ;;  %v5298_v44 = vmax.f32 %v5282_v36, 0.0 }
 0x88e   : > { %v5301_v16 = vmax.f32 %v5285_v58, 0.0 }
 0x88f   : > { %v5299_v31 = vmax.f32 %v5283_v30, 0.0 }
 0x890   : > { %v5309_v23 = vpack.c.bf16 %v5301_v16, %v5300_v9 }
 0x891   : > { %v5308_v7 = vpack.c.bf16 %v5299_v31, %v5298_v44 }
 0x893   : > { %5851 = vmatprep.mubr.msk.bf16.mxu1 %vm1909_vm4, %v5308_v7 }
 0x894   : > { %5852 = vmatmul.mubr.msk.bf16.vlgmr.msra.gmra.mrb[48].mxu1 %vm1909_vm4, %v5309_v23 }
 0x91c   : > { %v5841_v50 = vpop.f32.mrb[48].mxu0 }
 0x91d   : > { %v5389_v27 = vadd.f32 %v5841_v50, %v5599_v2  ;;  %v5380_v28 = vpop.f32.mrb[49].mxu0 }
 0x91e   : > { %v5381_v45 = vadd.f32 %v5599_v2, %v5380_v28  ;;  %v5842_v37 = vpop.f32.mrb[50].mxu0 }
 0x91f   : > { %5445 = vst.msk [vmem:[%s9377_s1 + $0x10] sm:$0xff] %vm2011_vm10, %v5389_v27  ;;  %v5392_v11 = vadd.f32 %v5842_v37, %v5599_v2  ;;  %v5383_v15 = vpop.f32.mrb[51].mxu0 }
 0x920   : > { %5443 = vst.msk [vmem:[%s9377_s1] sm:$0xff] %vm2011_vm10, %v5381_v45  ;;  %v5384_v3 = vadd.f32 %v5599_v2, %v5383_v15 }
 0x921   : > { %5446 = vst.msk [vmem:[%s9377_s1 + $0x18] sm:$0xff] %vm2011_vm10, %v5392_v11 }
 0x922   : > { %5444 = vst.msk [vmem:[%s9377_s1 + $0x8] sm:$0xff] %vm2011_vm10, %v5384_v3 }
 0x93c   : > { %v5845_v61 = vpop.f32.mrb[52].mxu0 }
 0x93d   : > { %v5405_v14 = vadd.f32 %v5845_v61, %v5599_v2  ;;  %v5396_v25 = vpop.f32.mrb[53].mxu0 }
 0x93e   : > { %v5397_v52 = vadd.f32 %v5599_v2, %v5396_v25  ;;  %v5846_v19 = vpop.f32.mrb[54].mxu0 }
 0x93f   : > { %5449 = vst.msk [vmem:[%s9377_s1 + $0x30] sm:$0xff] %vm2011_vm10, %v5405_v14  ;;  %v5408_v6 = vadd.f32 %v5846_v19, %v5599_v2  ;;  %v5399_v53 = vpop.f32.mrb[55].mxu0 }
 0x940   : > { %5447 = vst.msk [vmem:[%s9377_s1 + $0x20] sm:$0xff] %vm2011_vm10, %v5397_v52  ;;  %v5400_v13 = vadd.f32 %v5599_v2, %v5399_v53 }
 0x941   : > { %5450 = vst.msk [vmem:[%s9377_s1 + $0x38] sm:$0xff] %vm2011_vm10, %v5408_v6 }
 0x942   : > { %5448 = vst.msk [vmem:[%s9377_s1 + $0x28] sm:$0xff] %vm2011_vm10, %v5400_v13 }
 0x958   : > { %v5849_v51 = vpop.f32.mrb[56].mxu0 }
 0x959   : > { %v5421_v33 = vadd.f32 %v5849_v51, %v5599_v2  ;;  %v5412_v56 = vpop.f32.mrb[57].mxu0 }
 0x95a   : > { %v5413_v39 = vadd.f32 %v5599_v2, %v5412_v56  ;;  %v5850_v34 = vpop.f32.mrb[58].mxu0 }
 0x95b   : > { %5453 = vst.msk [vmem:[%s9377_s1 + $0x50] sm:$0xff] %vm2011_vm10, %v5421_v33  ;;  %v5424_v22 = vadd.f32 %v5850_v34, %v5599_v2  ;;  %v5415_v41 = vpop.f32.mrb[59].mxu0 }
 0x95c   : > { %5451 = vst.msk [vmem:[%s9377_s1 + $0x40] sm:$0xff] %vm2011_vm10, %v5413_v39  ;;  %v5416_v4 = vadd.f32 %v5599_v2, %v5415_v41 }
 0x95d   : > { %5454 = vst.msk [vmem:[%s9377_s1 + $0x58] sm:$0xff] %vm2011_vm10, %v5424_v22 }
 0x95e   : > { %5452 = vst.msk [vmem:[%s9377_s1 + $0x48] sm:$0xff] %vm2011_vm10, %v5416_v4 }
 0x967   : > { %v5853_v26 = vpop.f32.mrb[48].mxu1 }
 0x968   : > { %v5437_v21 = vadd.f32 %v5853_v26, %v5599_v2  ;;  %v5428_v32 = vpop.f32.mrb[49].mxu1 }
 0x969   : > { %v5429_v43 = vadd.f32 %v5599_v2, %v5428_v32  ;;  %v5854_v29 = vpop.f32.mrb[50].mxu1 }
 0x96a   : > { %5457 = vst.msk [vmem:[%s9377_s1 + $0x70] sm:$0xff] %vm2011_vm10, %v5437_v21  ;;  %v5440_v57 = vadd.f32 %v5854_v29, %v5599_v2  ;;  %v5431_v47 = vpop.f32.mrb[51].mxu1 }
 0x96b   : > { %5455 = vst.msk [vmem:[%s9377_s1 + $0x60] sm:$0xff] %vm2011_vm10, %v5429_v43  ;;  %v5432_v38 = vadd.f32 %v5599_v2, %v5431_v47 }
 0x96c   : > { %5458 = vst.msk [vmem:[%s9377_s1 + $0x78] sm:$0xff] %vm2011_vm10, %v5440_v57 }
 0x96d   : > { %5456 = vst.msk [vmem:[%s9377_s1 + $0x68] sm:$0xff] %vm2011_vm10, %v5432_v38 }
 0x96e PF: > { %s29_s0 = sadd.s32 1, %s7197_s0  }
 0x96f   : > { %p26_p4 = scmp.ge.s32.totalorder %s29_s0, 4  }
 0x971   :  { %28 = sbr.rel (!%p26_p4) target bundleno = 6 (0x6), region = 128 }

</bundles_post_ra>
